<compile_context>
chip_gen: v7x
topology: tpu7x:2x2x1
jax: 0.10.0
libtpu: 0.0.40
codegen_flags: <defaults>
</compile_context>

<pallas_src>
import functools

import jax
import jax.numpy as jnp
import numpy as np
from jax import lax
from jax.experimental import pallas as pl
from jax.experimental.pallas import tpu as pltpu


def _round_up(x, m):
    return (x + m - 1) // m * m


# ------------------------------- Pallas kernels -------------------------------

def _deconv_stats_kernel(cols_ref, w_ref, y_ref, sum_ref, sq_ref):
    """Pass 1: y = cols @ W (bf16 inputs, f32 accumulation) + per-tile channel stats."""
    y = jnp.dot(cols_ref[...], w_ref[...], preferred_element_type=jnp.float32)
    y_ref[...] = y
    # Padded rows of cols are all-zero (and no bias is added here), so they
    # contribute nothing to either sum -> no masking needed.
    sum_ref[...] = jnp.sum(y, axis=0, keepdims=True).reshape(1, 1, -1)
    sq_ref[...] = jnp.sum(y * y, axis=0, keepdims=True).reshape(1, 1, -1)


def _affine_act_kernel(y_ref, scale_ref, shift_ref, o_ref, *, relu, tanh):
    """Pass 2: fused per-channel scale/shift (BN or conv bias) + ReLU / Tanh."""
    y = y_ref[...] * scale_ref[...] + shift_ref[...]
    if relu:
        y = jnp.maximum(y, 0.0)
    if tanh:
        y = jnp.tanh(y)
    o_ref[...] = y


# ----------------------------- block forward (glue) ---------------------------

def generator_block_forward(x, weight, bias, gamma, beta, *, stride, padding,
                            batchnorm=True, activation=True, apply_tanh=False,
                            eps=1e-5, max_row_tile=512):
    """x: (N, Cin, H, W) NCHW.  weight: (Cin, Cout, K, K) (PyTorch ConvTranspose2d)."""
    N, Cin, H, W = x.shape
    Cin_w, Cout, K, _ = weight.shape
    assert Cin == Cin_w
    S, P = stride, padding
    Hout = (H - 1) * S - 2 * P + K
    Wout = (W - 1) * S - 2 * P + K

    # conv-transpose == zero-insert(stride) + pad(K-1-P) + ordinary conv (NHWC).
    x_nhwc = jnp.transpose(x, (0, 2, 3, 1)).astype(jnp.bfloat16)
    pe = K - 1 - P
    x_pad = lax.pad(x_nhwc, jnp.zeros((), jnp.bfloat16),
                    [(0, 0, 0), (pe, pe, S - 1), (pe, pe, S - 1), (0, 0, 0)])

    # im2col (data rearrangement only, no math).
    # TODO(synk): stream shifted windows of x_pad through extra (kh, kw) grid axes
    # instead of materializing the K^2-times-larger im2col matrix in HBM.
    patches = [x_pad[:, kh:kh + Hout, kw:kw + Wout, :]
               for kh in range(K) for kw in range(K)]
    cols = jnp.concatenate(patches, axis=-1).reshape(N * Hout * Wout, K * K * Cin)

    # Flip spatially + transpose ConvTranspose2d weight into matmul form (bf16 for MXU).
    w2 = jnp.transpose(weight[:, :, ::-1, ::-1], (2, 3, 0, 1)).reshape(K * K * Cin, Cout)
    w2 = w2.astype(jnp.bfloat16)

    R = N * Hout * Wout
    KKC = K * K * Cin

    # Lane/sublane friendly padding: lane-dense Cout, 128-aligned contraction,
    # row tile TR (multiple of 8, <= 512) so Pallas can double-buffer the cols tiles.
    Coutp = _round_up(Cout, 128)
    KKCp = _round_up(KKC, 128)
    TR = min(max_row_tile, _round_up(R, 8))
    Rp = _round_up(R, TR)
    nt = Rp // TR

    cols_p = jnp.pad(cols, ((0, Rp - R), (0, KKCp - KKC)))
    w2_p = jnp.pad(w2, ((0, KKCp - KKC), (0, Coutp - Cout)))

    cparams = pltpu.CompilerParams(dimension_semantics=("parallel",),
                                   vmem_limit_bytes=32 * 1024 * 1024)

    # ---- pass 1: tiled deconv matmul + per-tile channel statistics ----
    y_flat, psum, psq = pl.pallas_call(
        _deconv_stats_kernel,
        out_shape=(jax.ShapeDtypeStruct((Rp, Coutp), jnp.float32),
                   jax.ShapeDtypeStruct((nt, 1, Coutp), jnp.float32),
                   jax.ShapeDtypeStruct((nt, 1, Coutp), jnp.float32)),
        grid=(nt,),
        in_specs=[
            pl.BlockSpec((TR, KKCp), lambda i: (i, 0)),
            pl.BlockSpec((KKCp, Coutp), lambda i: (0, 0)),
        ],
        out_specs=(
            pl.BlockSpec((TR, Coutp), lambda i: (i, 0)),
            pl.BlockSpec((1, 1, Coutp), lambda i: (i, 0, 0)),
            pl.BlockSpec((1, 1, Coutp), lambda i: (i, 0, 0)),
        ),
        compiler_params=cparams,
    )(cols_p, w2_p)

    # ---- glue: tiny per-channel reduction; fold bias / BN into one (scale, shift) ----
    bias_p = jnp.pad(bias.astype(jnp.float32), (0, Coutp - Cout))
    if batchnorm:
        gamma_p = jnp.pad(gamma.astype(jnp.float32), (0, Coutp - Cout),
                          constant_values=1.0)
        beta_p = jnp.pad(beta.astype(jnp.float32), (0, Coutp - Cout))
        mean = jnp.sum(psum[:, 0, :], axis=0) / R
        var = jnp.maximum(jnp.sum(psq[:, 0, :], axis=0) / R - mean * mean, 0.0)
        # ConvTranspose2d bias cancels exactly under training-mode BN -> dropped.
        scale = gamma_p * lax.rsqrt(var + eps)
        shift = beta_p - mean * scale
    else:
        scale = jnp.ones((Coutp,), jnp.float32)
        shift = bias_p

    # ---- pass 2: fused normalize/bias + activation (ReLU / final Tanh) ----
    out_flat = pl.pallas_call(
        functools.partial(_affine_act_kernel, relu=activation, tanh=apply_tanh),
        out_shape=jax.ShapeDtypeStruct((Rp, Coutp), jnp.float32),
        grid=(nt,),
        in_specs=[
            pl.BlockSpec((TR, Coutp), lambda i: (i, 0)),
            pl.BlockSpec((1, Coutp), lambda i: (0, 0)),
            pl.BlockSpec((1, Coutp), lambda i: (0, 0)),
        ],
        out_specs=pl.BlockSpec((TR, Coutp), lambda i: (i, 0)),
        compiler_params=cparams,
    )(y_flat, scale.reshape(1, Coutp), shift.reshape(1, Coutp))

    out = out_flat[:R, :Cout].reshape(N, Hout, Wout, Cout)
    return jnp.transpose(out, (0, 3, 1, 2))


def generator_forward(z, params, *, strides, paddings):
    """Full Generator: 4 GeneratorBlocks (last without BN/ReLU) + final Tanh (fused)."""
    h = z
    nb = len(params)
    for i, p in enumerate(params):
        last = i == nb - 1
        h = generator_block_forward(
            h, p["weight"], p["bias"], p["gamma"], p["beta"],
            stride=strides[i], padding=paddings[i],
            batchnorm=not last, activation=not last, apply_tanh=last)
    return h


# --------------------------------- reference ----------------------------------

def _reference_block(x, weight, bias, gamma, beta, *, stride, padding,
                     batchnorm, activation, apply_tanh, eps=1e-5):
    """Pure-JAX ConvTranspose2d + BN(train) + ReLU (+Tanh), conv at bf16/f32-acc."""
    Cin, Cout, K, _ = weight.shape
    k_conv = jnp.transpose(weight[:, :, ::-1, ::-1], (1, 0, 2, 3)).astype(jnp.bfloat16)
    pe = K - 1 - padding
    y = lax.conv_general_dilated(
        x.astype(jnp.bfloat16), k_conv, window_strides=(1, 1),
        padding=[(pe, pe), (pe, pe)], lhs_dilation=(stride, stride),
        dimension_numbers=("NCHW", "OIHW", "NCHW"),
        preferred_element_type=jnp.float32)
    y = y + bias.reshape(1, -1, 1, 1).astype(jnp.float32)
    if batchnorm:
        mean = jnp.mean(y, axis=(0, 2, 3), keepdims=True)
        var = jnp.mean((y - mean) ** 2, axis=(0, 2, 3), keepdims=True)
        y = (y - mean) / jnp.sqrt(var + eps)
        y = y * gamma.reshape(1, -1, 1, 1) + beta.reshape(1, -1, 1, 1)
    if activation:
        y = jnp.maximum(y, 0.0)
    if apply_tanh:
        y = jnp.tanh(y)
    return y


def reference_generator(z, params, *, strides, paddings):
    h = z
    nb = len(params)
    for i, p in enumerate(params):
        last = i == nb - 1
        h = _reference_block(h, p["weight"], p["bias"], p["gamma"], p["beta"],
                             stride=strides[i], padding=paddings[i],
                             batchnorm=not last, activation=not last,
                             apply_tanh=last)
    return h


# ------------------------------------ main -------------------------------------

if __name__ == "__main__":
    # Small-width Generator with the module's structure: latent (N, C, 1, 1) -> 32x32
    # kernel sizes [4,4,4,4], strides [1,2,2,2], paddings [0,1,1,1].
    N = 2
    latent = 16
    channels = [latent, 64, 32, 16, 3]   # scaled-down version of [100,1024,512,256,3]
    Ks = [4, 4, 4, 4]
    Ss = [1, 2, 2, 2]
    Ps = [0, 1, 1, 1]

    key = jax.random.PRNGKey(0)
    params = []
    for i in range(4):
        key, kw_key, kb_key = jax.random.split(key, 3)
        cin, cout = channels[i], channels[i + 1]
        params.append(dict(
            weight=0.1 * jax.random.normal(kw_key, (cin, cout, Ks[i], Ks[i]), jnp.float32),
            bias=0.1 * jax.random.normal(kb_key, (cout,), jnp.float32),
            gamma=jnp.ones((cout,), jnp.float32),     # BatchNorm2d defaults
            beta=jnp.zeros((cout,), jnp.float32)))
    key, kz = jax.random.split(key)
    z = jax.random.normal(kz, (N, latent, 1, 1), jnp.float32)

    fwd = jax.jit(functools.partial(generator_forward,
                                    strides=tuple(Ss), paddings=tuple(Ps)))
    out = jax.block_until_ready(fwd(z, params))
    assert out.shape == (N, 3, 32, 32), out.shape

    ref = reference_generator(z, params, strides=Ss, paddings=Ps)
    np.testing.assert_allclose(np.asarray(out), np.asarray(ref), rtol=2e-2, atol=2e-2)

    print("KERNEL_OK")
</pallas_src>

<mosaic_0001>
module attributes {stable_mosaic.version = 11 : i64} {
  func.func @_affine_act_kernel(%arg0: i32, %arg1: memref<32x128xf32, #tpu.memory_space<vmem>>, %arg2: memref<1x128xf32, #tpu.memory_space<vmem>>, %arg3: memref<1x128xf32, #tpu.memory_space<vmem>>, %arg4: memref<32x128xf32, #tpu.memory_space<vmem>>) attributes {dimension_semantics = [#tpu.dimension_semantics<parallel>], iteration_bounds = array<i64: 1>, scalar_prefetch = 0 : i64, scratch_operands = 0 : i64, tpu.core_type = #tpu.core_type<tc>, window_params = [{transform_indices = @transform_0, window_bounds = array<i64: 32, 128>}, {pipeline_mode = #tpu.pipeline_mode<synchronous>, transform_indices = @transform_1, window_bounds = array<i64: 1, 128>}, {pipeline_mode = #tpu.pipeline_mode<synchronous>, transform_indices = @transform_2, window_bounds = array<i64: 1, 128>}, {transform_indices = @transform_3, window_bounds = array<i64: 32, 128>}]} {
    %c0 = arith.constant 0 : index
    %c0_0 = arith.constant 0 : index
    %0 = vector.load %arg1[%c0, %c0_0] : memref<32x128xf32, #tpu.memory_space<vmem>>, vector<32x128xf32>
    %c0_1 = arith.constant 0 : index
    %c0_2 = arith.constant 0 : index
    %1 = vector.load %arg2[%c0_1, %c0_2] : memref<1x128xf32, #tpu.memory_space<vmem>>, vector<1x128xf32>
    %2 = vector.broadcast %1 : vector<1x128xf32> to vector<32x128xf32>
    %3 = arith.mulf %0, %2 : vector<32x128xf32>
    %c0_3 = arith.constant 0 : index
    %c0_4 = arith.constant 0 : index
    %4 = vector.load %arg3[%c0_3, %c0_4] : memref<1x128xf32, #tpu.memory_space<vmem>>, vector<1x128xf32>
    %5 = vector.broadcast %4 : vector<1x128xf32> to vector<32x128xf32>
    %6 = arith.addf %3, %5 : vector<32x128xf32>
    %cst = arith.constant 0.000000e+00 : f32
    %7 = vector.broadcast %cst : f32 to vector<32x128xf32>
    %8 = arith.maximumf %6, %7 : vector<32x128xf32>
    %c0_5 = arith.constant 0 : index
    %c0_6 = arith.constant 0 : index
    %9 = vector.load %arg4[%c0_5, %c0_6] : memref<32x128xf32, #tpu.memory_space<vmem>>, vector<32x128xf32>
    tpu.vector_store %arg4[%c0_5, %c0_6], %8 {strides = array<i32>} : memref<32x128xf32, #tpu.memory_space<vmem>>, vector<32x128xf32>,
    return
  }
  func.func @transform_0(%arg0: i32) -> (i32, i32) {
    %c0_i32 = arith.constant 0 : i32
    %c0_i32_0 = arith.constant 0 : i32
    return %arg0, %c0_i32 : i32, i32
  }
  func.func @transform_1(%arg0: i32) -> (i32, i32) {
    %c0_i32 = arith.constant 0 : i32
    %c0_i32_0 = arith.constant 0 : i32
    %c0_i32_1 = arith.constant 0 : i32
    return %c0_i32, %c0_i32_0 : i32, i32
  }
  func.func @transform_2(%arg0: i32) -> (i32, i32) {
    %c0_i32 = arith.constant 0 : i32
    %c0_i32_0 = arith.constant 0 : i32
    %c0_i32_1 = arith.constant 0 : i32
    return %c0_i32, %c0_i32_0 : i32, i32
  }
  func.func @transform_3(%arg0: i32) -> (i32, i32) {
    %c0_i32 = arith.constant 0 : i32
    %c0_i32_0 = arith.constant 0 : i32
    return %arg0, %c0_i32 : i32, i32
  }
}

module attributes {stable_mosaic.version = 11 : i64} {
  func.func @_deconv_stats_kernel(%arg0: i32, %arg1: memref<32x256xbf16, #tpu.memory_space<vmem>>, %arg2: memref<256x128xbf16, #tpu.memory_space<vmem>>, %arg3: memref<32x128xf32, #tpu.memory_space<vmem>>, %arg4: memref<1x1x128xf32, #tpu.memory_space<vmem>>, %arg5: memref<1x1x128xf32, #tpu.memory_space<vmem>>) attributes {dimension_semantics = [#tpu.dimension_semantics<parallel>], iteration_bounds = array<i64: 1>, scalar_prefetch = 0 : i64, scratch_operands = 0 : i64, tpu.core_type = #tpu.core_type<tc>, window_params = [{transform_indices = @transform_0, window_bounds = array<i64: 32, 256>}, {pipeline_mode = #tpu.pipeline_mode<synchronous>, transform_indices = @transform_1, window_bounds = array<i64: 256, 128>}, {transform_indices = @transform_2, window_bounds = array<i64: 32, 128>}, {transform_indices = @transform_3, window_bounds = array<i64: 1, 1, 128>}, {transform_indices = @transform_4, window_bounds = array<i64: 1, 1, 128>}]} {
    %c0 = arith.constant 0 : index
    %c0_0 = arith.constant 0 : index
    %0 = vector.load %arg1[%c0, %c0_0] : memref<32x256xbf16, #tpu.memory_space<vmem>>, vector<32x256xbf16>
    %c0_1 = arith.constant 0 : index
    %c0_2 = arith.constant 0 : index
    %1 = vector.load %arg2[%c0_1, %c0_2] : memref<256x128xbf16, #tpu.memory_space<vmem>>, vector<256x128xbf16>
    %cst = arith.constant dense<0.000000e+00> : vector<32x128xf32>
    %2 = tpu.matmul %0, %1, %cst {dimension_numbers = #tpu.dot_dimension_numbers<[1], [0], [0], [1], [0, 0, 1, 1], [], []>} : vector<32x256xbf16>, vector<256x128xbf16>, vector<32x128xf32> -> vector<32x128xf32>
    %c0_3 = arith.constant 0 : index
    %c0_4 = arith.constant 0 : index
    %3 = vector.load %arg3[%c0_3, %c0_4] : memref<32x128xf32, #tpu.memory_space<vmem>>, vector<32x128xf32>
    tpu.vector_store %arg3[%c0_3, %c0_4], %2 {strides = array<i32>} : memref<32x128xf32, #tpu.memory_space<vmem>>, vector<32x128xf32>,
    %cst_5 = arith.constant dense<0.000000e+00> : vector<128xf32>
    %4 = vector.multi_reduction <add>, %2, %cst_5 [0] : vector<32x128xf32> to vector<128xf32>
    %5 = vector.shape_cast %4 : vector<128xf32> to vector<1x128xf32>
    %6 = vector.shape_cast %5 : vector<1x128xf32> to vector<1x1x128xf32>
    %c0_6 = arith.constant 0 : index
    %c0_7 = arith.constant 0 : index
    %c0_8 = arith.constant 0 : index
    %7 = vector.load %arg4[%c0_6, %c0_7, %c0_8] : memref<1x1x128xf32, #tpu.memory_space<vmem>>, vector<1x1x128xf32>
    tpu.vector_store %arg4[%c0_6, %c0_7, %c0_8], %6 {strides = array<i32>} : memref<1x1x128xf32, #tpu.memory_space<vmem>>, vector<1x1x128xf32>,
    %8 = arith.mulf %2, %2 : vector<32x128xf32>
    %cst_9 = arith.constant dense<0.000000e+00> : vector<128xf32>
    %9 = vector.multi_reduction <add>, %8, %cst_9 [0] : vector<32x128xf32> to vector<128xf32>
    %10 = vector.shape_cast %9 : vector<128xf32> to vector<1x128xf32>
    %11 = vector.shape_cast %10 : vector<1x128xf32> to vector<1x1x128xf32>
    %c0_10 = arith.constant 0 : index
    %c0_11 = arith.constant 0 : index
    %c0_12 = arith.constant 0 : index
    %12 = vector.load %arg5[%c0_10, %c0_11, %c0_12] : memref<1x1x128xf32, #tpu.memory_space<vmem>>, vector<1x1x128xf32>
    tpu.vector_store %arg5[%c0_10, %c0_11, %c0_12], %11 {strides = array<i32>} : memref<1x1x128xf32, #tpu.memory_space<vmem>>, vector<1x1x128xf32>,
    return
  }
  func.func @transform_0(%arg0: i32) -> (i32, i32) {
    %c0_i32 = arith.constant 0 : i32
    %c0_i32_0 = arith.constant 0 : i32
    return %arg0, %c0_i32 : i32, i32
  }
  func.func @transform_1(%arg0: i32) -> (i32, i32) {
    %c0_i32 = arith.constant 0 : i32
    %c0_i32_0 = arith.constant 0 : i32
    %c0_i32_1 = arith.constant 0 : i32
    return %c0_i32, %c0_i32_0 : i32, i32
  }
  func.func @transform_2(%arg0: i32) -> (i32, i32) {
    %c0_i32 = arith.constant 0 : i32
    %c0_i32_0 = arith.constant 0 : i32
    return %arg0, %c0_i32 : i32, i32
  }
  func.func @transform_3(%arg0: i32) -> (i32, i32, i32) {
    %c0_i32 = arith.constant 0 : i32
    %c0_i32_0 = arith.constant 0 : i32
    %c0_i32_1 = arith.constant 0 : i32
    return %arg0, %c0_i32, %c0_i32_0 : i32, i32, i32
  }
  func.func @transform_4(%arg0: i32) -> (i32, i32, i32) {
    %c0_i32 = arith.constant 0 : i32
    %c0_i32_0 = arith.constant 0 : i32
    %c0_i32_1 = arith.constant 0 : i32
    return %arg0, %c0_i32, %c0_i32_0 : i32, i32, i32
  }
}

module attributes {stable_mosaic.version = 11 : i64} {
  func.func @_deconv_stats_kernel(%arg0: i32, %arg1: memref<128x1024xbf16, #tpu.memory_space<vmem>>, %arg2: memref<1024x128xbf16, #tpu.memory_space<vmem>>, %arg3: memref<128x128xf32, #tpu.memory_space<vmem>>, %arg4: memref<1x1x128xf32, #tpu.memory_space<vmem>>, %arg5: memref<1x1x128xf32, #tpu.memory_space<vmem>>) attributes {dimension_semantics = [#tpu.dimension_semantics<parallel>], iteration_bounds = array<i64: 1>, scalar_prefetch = 0 : i64, scratch_operands = 0 : i64, tpu.core_type = #tpu.core_type<tc>, window_params = [{transform_indices = @transform_0, window_bounds = array<i64: 128, 1024>}, {pipeline_mode = #tpu.pipeline_mode<synchronous>, transform_indices = @transform_1, window_bounds = array<i64: 1024, 128>}, {transform_indices = @transform_2, window_bounds = array<i64: 128, 128>}, {transform_indices = @transform_3, window_bounds = array<i64: 1, 1, 128>}, {transform_indices = @transform_4, window_bounds = array<i64: 1, 1, 128>}]} {
    %c0 = arith.constant 0 : index
    %c0_0 = arith.constant 0 : index
    %0 = vector.load %arg1[%c0, %c0_0] : memref<128x1024xbf16, #tpu.memory_space<vmem>>, vector<128x1024xbf16>
    %c0_1 = arith.constant 0 : index
    %c0_2 = arith.constant 0 : index
    %1 = vector.load %arg2[%c0_1, %c0_2] : memref<1024x128xbf16, #tpu.memory_space<vmem>>, vector<1024x128xbf16>
    %cst = arith.constant dense<0.000000e+00> : vector<128x128xf32>
    %2 = tpu.matmul %0, %1, %cst {dimension_numbers = #tpu.dot_dimension_numbers<[1], [0], [0], [1], [0, 0, 1, 1], [], []>} : vector<128x1024xbf16>, vector<1024x128xbf16>, vector<128x128xf32> -> vector<128x128xf32>
    %c0_3 = arith.constant 0 : index
    %c0_4 = arith.constant 0 : index
    %3 = vector.load %arg3[%c0_3, %c0_4] : memref<128x128xf32, #tpu.memory_space<vmem>>, vector<128x128xf32>
    tpu.vector_store %arg3[%c0_3, %c0_4], %2 {strides = array<i32>} : memref<128x128xf32, #tpu.memory_space<vmem>>, vector<128x128xf32>,
    %cst_5 = arith.constant dense<0.000000e+00> : vector<128xf32>
    %4 = vector.multi_reduction <add>, %2, %cst_5 [0] : vector<128x128xf32> to vector<128xf32>
    %5 = vector.shape_cast %4 : vector<128xf32> to vector<1x128xf32>
    %6 = vector.shape_cast %5 : vector<1x128xf32> to vector<1x1x128xf32>
    %c0_6 = arith.constant 0 : index
    %c0_7 = arith.constant 0 : index
    %c0_8 = arith.constant 0 : index
    %7 = vector.load %arg4[%c0_6, %c0_7, %c0_8] : memref<1x1x128xf32, #tpu.memory_space<vmem>>, vector<1x1x128xf32>
    tpu.vector_store %arg4[%c0_6, %c0_7, %c0_8], %6 {strides = array<i32>} : memref<1x1x128xf32, #tpu.memory_space<vmem>>, vector<1x1x128xf32>,
    %8 = arith.mulf %2, %2 : vector<128x128xf32>
    %cst_9 = arith.constant dense<0.000000e+00> : vector<128xf32>
    %9 = vector.multi_reduction <add>, %8, %cst_9 [0] : vector<128x128xf32> to vector<128xf32>
    %10 = vector.shape_cast %9 : vector<128xf32> to vector<1x128xf32>
    %11 = vector.shape_cast %10 : vector<1x128xf32> to vector<1x1x128xf32>
    %c0_10 = arith.constant 0 : index
    %c0_11 = arith.constant 0 : index
    %c0_12 = arith.constant 0 : index
    %12 = vector.load %arg5[%c0_10, %c0_11, %c0_12] : memref<1x1x128xf32, #tpu.memory_space<vmem>>, vector<1x1x128xf32>
    tpu.vector_store %arg5[%c0_10, %c0_11, %c0_12], %11 {strides = array<i32>} : memref<1x1x128xf32, #tpu.memory_space<vmem>>, vector<1x1x128xf32>,
    return
  }
  func.func @transform_0(%arg0: i32) -> (i32, i32) {
    %c0_i32 = arith.constant 0 : i32
    %c0_i32_0 = arith.constant 0 : i32
    return %arg0, %c0_i32 : i32, i32
  }
  func.func @transform_1(%arg0: i32) -> (i32, i32) {
    %c0_i32 = arith.constant 0 : i32
    %c0_i32_0 = arith.constant 0 : i32
    %c0_i32_1 = arith.constant 0 : i32
    return %c0_i32, %c0_i32_0 : i32, i32
  }
  func.func @transform_2(%arg0: i32) -> (i32, i32) {
    %c0_i32 = arith.constant 0 : i32
    %c0_i32_0 = arith.constant 0 : i32
    return %arg0, %c0_i32 : i32, i32
  }
  func.func @transform_3(%arg0: i32) -> (i32, i32, i32) {
    %c0_i32 = arith.constant 0 : i32
    %c0_i32_0 = arith.constant 0 : i32
    %c0_i32_1 = arith.constant 0 : i32
    return %arg0, %c0_i32, %c0_i32_0 : i32, i32, i32
  }
  func.func @transform_4(%arg0: i32) -> (i32, i32, i32) {
    %c0_i32 = arith.constant 0 : i32
    %c0_i32_0 = arith.constant 0 : i32
    %c0_i32_1 = arith.constant 0 : i32
    return %arg0, %c0_i32, %c0_i32_0 : i32, i32, i32
  }
}

module attributes {stable_mosaic.version = 11 : i64} {
  func.func @_affine_act_kernel(%arg0: i32, %arg1: memref<128x128xf32, #tpu.memory_space<vmem>>, %arg2: memref<1x128xf32, #tpu.memory_space<vmem>>, %arg3: memref<1x128xf32, #tpu.memory_space<vmem>>, %arg4: memref<128x128xf32, #tpu.memory_space<vmem>>) attributes {dimension_semantics = [#tpu.dimension_semantics<parallel>], iteration_bounds = array<i64: 1>, scalar_prefetch = 0 : i64, scratch_operands = 0 : i64, tpu.core_type = #tpu.core_type<tc>, window_params = [{transform_indices = @transform_0, window_bounds = array<i64: 128, 128>}, {pipeline_mode = #tpu.pipeline_mode<synchronous>, transform_indices = @transform_1, window_bounds = array<i64: 1, 128>}, {pipeline_mode = #tpu.pipeline_mode<synchronous>, transform_indices = @transform_2, window_bounds = array<i64: 1, 128>}, {transform_indices = @transform_3, window_bounds = array<i64: 128, 128>}]} {
    %c0 = arith.constant 0 : index
    %c0_0 = arith.constant 0 : index
    %0 = vector.load %arg1[%c0, %c0_0] : memref<128x128xf32, #tpu.memory_space<vmem>>, vector<128x128xf32>
    %c0_1 = arith.constant 0 : index
    %c0_2 = arith.constant 0 : index
    %1 = vector.load %arg2[%c0_1, %c0_2] : memref<1x128xf32, #tpu.memory_space<vmem>>, vector<1x128xf32>
    %2 = vector.broadcast %1 : vector<1x128xf32> to vector<128x128xf32>
    %3 = arith.mulf %0, %2 : vector<128x128xf32>
    %c0_3 = arith.constant 0 : index
    %c0_4 = arith.constant 0 : index
    %4 = vector.load %arg3[%c0_3, %c0_4] : memref<1x128xf32, #tpu.memory_space<vmem>>, vector<1x128xf32>
    %5 = vector.broadcast %4 : vector<1x128xf32> to vector<128x128xf32>
    %6 = arith.addf %3, %5 : vector<128x128xf32>
    %cst = arith.constant 0.000000e+00 : f32
    %7 = vector.broadcast %cst : f32 to vector<128x128xf32>
    %8 = arith.maximumf %6, %7 : vector<128x128xf32>
    %c0_5 = arith.constant 0 : index
    %c0_6 = arith.constant 0 : index
    %9 = vector.load %arg4[%c0_5, %c0_6] : memref<128x128xf32, #tpu.memory_space<vmem>>, vector<128x128xf32>
    tpu.vector_store %arg4[%c0_5, %c0_6], %8 {strides = array<i32>} : memref<128x128xf32, #tpu.memory_space<vmem>>, vector<128x128xf32>,
    return
  }
  func.func @transform_0(%arg0: i32) -> (i32, i32) {
    %c0_i32 = arith.constant 0 : i32
    %c0_i32_0 = arith.constant 0 : i32
    return %arg0, %c0_i32 : i32, i32
  }
  func.func @transform_1(%arg0: i32) -> (i32, i32) {
    %c0_i32 = arith.constant 0 : i32
    %c0_i32_0 = arith.constant 0 : i32
    %c0_i32_1 = arith.constant 0 : i32
    return %c0_i32, %c0_i32_0 : i32, i32
  }
  func.func @transform_2(%arg0: i32) -> (i32, i32) {
    %c0_i32 = arith.constant 0 : i32
    %c0_i32_0 = arith.constant 0 : i32
    %c0_i32_1 = arith.constant 0 : i32
    return %c0_i32, %c0_i32_0 : i32, i32
  }
  func.func @transform_3(%arg0: i32) -> (i32, i32) {
    %c0_i32 = arith.constant 0 : i32
    %c0_i32_0 = arith.constant 0 : i32
    return %arg0, %c0_i32 : i32, i32
  }
}

module attributes {stable_mosaic.version = 11 : i64} {
  func.func @_deconv_stats_kernel(%arg0: i32, %arg1: memref<512x512xbf16, #tpu.memory_space<vmem>>, %arg2: memref<512x128xbf16, #tpu.memory_space<vmem>>, %arg3: memref<512x128xf32, #tpu.memory_space<vmem>>, %arg4: memref<1x1x128xf32, #tpu.memory_space<vmem>>, %arg5: memref<1x1x128xf32, #tpu.memory_space<vmem>>) attributes {dimension_semantics = [#tpu.dimension_semantics<parallel>], iteration_bounds = array<i64: 1>, scalar_prefetch = 0 : i64, scratch_operands = 0 : i64, tpu.core_type = #tpu.core_type<tc>, window_params = [{transform_indices = @transform_0, window_bounds = array<i64: 512, 512>}, {pipeline_mode = #tpu.pipeline_mode<synchronous>, transform_indices = @transform_1, window_bounds = array<i64: 512, 128>}, {transform_indices = @transform_2, window_bounds = array<i64: 512, 128>}, {transform_indices = @transform_3, window_bounds = array<i64: 1, 1, 128>}, {transform_indices = @transform_4, window_bounds = array<i64: 1, 1, 128>}]} {
    %c0 = arith.constant 0 : index
    %c0_0 = arith.constant 0 : index
    %0 = vector.load %arg1[%c0, %c0_0] : memref<512x512xbf16, #tpu.memory_space<vmem>>, vector<512x512xbf16>
    %c0_1 = arith.constant 0 : index
    %c0_2 = arith.constant 0 : index
    %1 = vector.load %arg2[%c0_1, %c0_2] : memref<512x128xbf16, #tpu.memory_space<vmem>>, vector<512x128xbf16>
    %cst = arith.constant dense<0.000000e+00> : vector<512x128xf32>
    %2 = tpu.matmul %0, %1, %cst {dimension_numbers = #tpu.dot_dimension_numbers<[1], [0], [0], [1], [0, 0, 1, 1], [], []>} : vector<512x512xbf16>, vector<512x128xbf16>, vector<512x128xf32> -> vector<512x128xf32>
    %c0_3 = arith.constant 0 : index
    %c0_4 = arith.constant 0 : index
    %3 = vector.load %arg3[%c0_3, %c0_4] : memref<512x128xf32, #tpu.memory_space<vmem>>, vector<512x128xf32>
    tpu.vector_store %arg3[%c0_3, %c0_4], %2 {strides = array<i32>} : memref<512x128xf32, #tpu.memory_space<vmem>>, vector<512x128xf32>,
    %cst_5 = arith.constant dense<0.000000e+00> : vector<128xf32>
    %4 = vector.multi_reduction <add>, %2, %cst_5 [0] : vector<512x128xf32> to vector<128xf32>
    %5 = vector.shape_cast %4 : vector<128xf32> to vector<1x128xf32>
    %6 = vector.shape_cast %5 : vector<1x128xf32> to vector<1x1x128xf32>
    %c0_6 = arith.constant 0 : index
    %c0_7 = arith.constant 0 : index
    %c0_8 = arith.constant 0 : index
    %7 = vector.load %arg4[%c0_6, %c0_7, %c0_8] : memref<1x1x128xf32, #tpu.memory_space<vmem>>, vector<1x1x128xf32>
    tpu.vector_store %arg4[%c0_6, %c0_7, %c0_8], %6 {strides = array<i32>} : memref<1x1x128xf32, #tpu.memory_space<vmem>>, vector<1x1x128xf32>,
    %8 = arith.mulf %2, %2 : vector<512x128xf32>
    %cst_9 = arith.constant dense<0.000000e+00> : vector<128xf32>
    %9 = vector.multi_reduction <add>, %8, %cst_9 [0] : vector<512x128xf32> to vector<128xf32>
    %10 = vector.shape_cast %9 : vector<128xf32> to vector<1x128xf32>
    %11 = vector.shape_cast %10 : vector<1x128xf32> to vector<1x1x128xf32>
    %c0_10 = arith.constant 0 : index
    %c0_11 = arith.constant 0 : index
    %c0_12 = arith.constant 0 : index
    %12 = vector.load %arg5[%c0_10, %c0_11, %c0_12] : memref<1x1x128xf32, #tpu.memory_space<vmem>>, vector<1x1x128xf32>
    tpu.vector_store %arg5[%c0_10, %c0_11, %c0_12], %11 {strides = array<i32>} : memref<1x1x128xf32, #tpu.memory_space<vmem>>, vector<1x1x128xf32>,
    return
  }
  func.func @transform_0(%arg0: i32) -> (i32, i32) {
    %c0_i32 = arith.constant 0 : i32
    %c0_i32_0 = arith.constant 0 : i32
    return %arg0, %c0_i32 : i32, i32
  }
  func.func @transform_1(%arg0: i32) -> (i32, i32) {
    %c0_i32 = arith.constant 0 : i32
    %c0_i32_0 = arith.constant 0 : i32
    %c0_i32_1 = arith.constant 0 : i32
    return %c0_i32, %c0_i32_0 : i32, i32
  }
  func.func @transform_2(%arg0: i32) -> (i32, i32) {
    %c0_i32 = arith.constant 0 : i32
    %c0_i32_0 = arith.constant 0 : i32
    return %arg0, %c0_i32 : i32, i32
  }
  func.func @transform_3(%arg0: i32) -> (i32, i32, i32) {
    %c0_i32 = arith.constant 0 : i32
    %c0_i32_0 = arith.constant 0 : i32
    %c0_i32_1 = arith.constant 0 : i32
    return %arg0, %c0_i32, %c0_i32_0 : i32, i32, i32
  }
  func.func @transform_4(%arg0: i32) -> (i32, i32, i32) {
    %c0_i32 = arith.constant 0 : i32
    %c0_i32_0 = arith.constant 0 : i32
    %c0_i32_1 = arith.constant 0 : i32
    return %arg0, %c0_i32, %c0_i32_0 : i32, i32, i32
  }
}

module attributes {stable_mosaic.version = 11 : i64} {
  func.func @_affine_act_kernel(%arg0: i32, %arg1: memref<512x128xf32, #tpu.memory_space<vmem>>, %arg2: memref<1x128xf32, #tpu.memory_space<vmem>>, %arg3: memref<1x128xf32, #tpu.memory_space<vmem>>, %arg4: memref<512x128xf32, #tpu.memory_space<vmem>>) attributes {dimension_semantics = [#tpu.dimension_semantics<parallel>], iteration_bounds = array<i64: 1>, scalar_prefetch = 0 : i64, scratch_operands = 0 : i64, tpu.core_type = #tpu.core_type<tc>, window_params = [{transform_indices = @transform_0, window_bounds = array<i64: 512, 128>}, {pipeline_mode = #tpu.pipeline_mode<synchronous>, transform_indices = @transform_1, window_bounds = array<i64: 1, 128>}, {pipeline_mode = #tpu.pipeline_mode<synchronous>, transform_indices = @transform_2, window_bounds = array<i64: 1, 128>}, {transform_indices = @transform_3, window_bounds = array<i64: 512, 128>}]} {
    %c0 = arith.constant 0 : index
    %c0_0 = arith.constant 0 : index
    %0 = vector.load %arg1[%c0, %c0_0] : memref<512x128xf32, #tpu.memory_space<vmem>>, vector<512x128xf32>
    %c0_1 = arith.constant 0 : index
    %c0_2 = arith.constant 0 : index
    %1 = vector.load %arg2[%c0_1, %c0_2] : memref<1x128xf32, #tpu.memory_space<vmem>>, vector<1x128xf32>
    %2 = vector.broadcast %1 : vector<1x128xf32> to vector<512x128xf32>
    %3 = arith.mulf %0, %2 : vector<512x128xf32>
    %c0_3 = arith.constant 0 : index
    %c0_4 = arith.constant 0 : index
    %4 = vector.load %arg3[%c0_3, %c0_4] : memref<1x128xf32, #tpu.memory_space<vmem>>, vector<1x128xf32>
    %5 = vector.broadcast %4 : vector<1x128xf32> to vector<512x128xf32>
    %6 = arith.addf %3, %5 : vector<512x128xf32>
    %cst = arith.constant 0.000000e+00 : f32
    %7 = vector.broadcast %cst : f32 to vector<512x128xf32>
    %8 = arith.maximumf %6, %7 : vector<512x128xf32>
    %c0_5 = arith.constant 0 : index
    %c0_6 = arith.constant 0 : index
    %9 = vector.load %arg4[%c0_5, %c0_6] : memref<512x128xf32, #tpu.memory_space<vmem>>, vector<512x128xf32>
    tpu.vector_store %arg4[%c0_5, %c0_6], %8 {strides = array<i32>} : memref<512x128xf32, #tpu.memory_space<vmem>>, vector<512x128xf32>,
    return
  }
  func.func @transform_0(%arg0: i32) -> (i32, i32) {
    %c0_i32 = arith.constant 0 : i32
    %c0_i32_0 = arith.constant 0 : i32
    return %arg0, %c0_i32 : i32, i32
  }
  func.func @transform_1(%arg0: i32) -> (i32, i32) {
    %c0_i32 = arith.constant 0 : i32
    %c0_i32_0 = arith.constant 0 : i32
    %c0_i32_1 = arith.constant 0 : i32
    return %c0_i32, %c0_i32_0 : i32, i32
  }
  func.func @transform_2(%arg0: i32) -> (i32, i32) {
    %c0_i32 = arith.constant 0 : i32
    %c0_i32_0 = arith.constant 0 : i32
    %c0_i32_1 = arith.constant 0 : i32
    return %c0_i32, %c0_i32_0 : i32, i32
  }
  func.func @transform_3(%arg0: i32) -> (i32, i32) {
    %c0_i32 = arith.constant 0 : i32
    %c0_i32_0 = arith.constant 0 : i32
    return %arg0, %c0_i32 : i32, i32
  }
}

module attributes {stable_mosaic.version = 11 : i64} {
  func.func @_deconv_stats_kernel(%arg0: i32, %arg1: memref<512x256xbf16, #tpu.memory_space<vmem>>, %arg2: memref<256x128xbf16, #tpu.memory_space<vmem>>, %arg3: memref<512x128xf32, #tpu.memory_space<vmem>>, %arg4: memref<1x1x128xf32, #tpu.memory_space<vmem>>, %arg5: memref<1x1x128xf32, #tpu.memory_space<vmem>>) attributes {dimension_semantics = [#tpu.dimension_semantics<parallel>], iteration_bounds = array<i64: 4>, scalar_prefetch = 0 : i64, scratch_operands = 0 : i64, tpu.core_type = #tpu.core_type<tc>, window_params = [{transform_indices = @transform_0, window_bounds = array<i64: 512, 256>}, {pipeline_mode = #tpu.pipeline_mode<synchronous>, transform_indices = @transform_1, window_bounds = array<i64: 256, 128>}, {transform_indices = @transform_2, window_bounds = array<i64: 512, 128>}, {transform_indices = @transform_3, window_bounds = array<i64: 1, 1, 128>}, {transform_indices = @transform_4, window_bounds = array<i64: 1, 1, 128>}]} {
    %c0 = arith.constant 0 : index
    %c0_0 = arith.constant 0 : index
    %0 = vector.load %arg1[%c0, %c0_0] : memref<512x256xbf16, #tpu.memory_space<vmem>>, vector<512x256xbf16>
    %c0_1 = arith.constant 0 : index
    %c0_2 = arith.constant 0 : index
    %1 = vector.load %arg2[%c0_1, %c0_2] : memref<256x128xbf16, #tpu.memory_space<vmem>>, vector<256x128xbf16>
    %cst = arith.constant dense<0.000000e+00> : vector<512x128xf32>
    %2 = tpu.matmul %0, %1, %cst {dimension_numbers = #tpu.dot_dimension_numbers<[1], [0], [0], [1], [0, 0, 1, 1], [], []>} : vector<512x256xbf16>, vector<256x128xbf16>, vector<512x128xf32> -> vector<512x128xf32>
    %c0_3 = arith.constant 0 : index
    %c0_4 = arith.constant 0 : index
    %3 = vector.load %arg3[%c0_3, %c0_4] : memref<512x128xf32, #tpu.memory_space<vmem>>, vector<512x128xf32>
    tpu.vector_store %arg3[%c0_3, %c0_4], %2 {strides = array<i32>} : memref<512x128xf32, #tpu.memory_space<vmem>>, vector<512x128xf32>,
    %cst_5 = arith.constant dense<0.000000e+00> : vector<128xf32>
    %4 = vector.multi_reduction <add>, %2, %cst_5 [0] : vector<512x128xf32> to vector<128xf32>
    %5 = vector.shape_cast %4 : vector<128xf32> to vector<1x128xf32>
    %6 = vector.shape_cast %5 : vector<1x128xf32> to vector<1x1x128xf32>
    %c0_6 = arith.constant 0 : index
    %c0_7 = arith.constant 0 : index
    %c0_8 = arith.constant 0 : index
    %7 = vector.load %arg4[%c0_6, %c0_7, %c0_8] : memref<1x1x128xf32, #tpu.memory_space<vmem>>, vector<1x1x128xf32>
    tpu.vector_store %arg4[%c0_6, %c0_7, %c0_8], %6 {strides = array<i32>} : memref<1x1x128xf32, #tpu.memory_space<vmem>>, vector<1x1x128xf32>,
    %8 = arith.mulf %2, %2 : vector<512x128xf32>
    %cst_9 = arith.constant dense<0.000000e+00> : vector<128xf32>
    %9 = vector.multi_reduction <add>, %8, %cst_9 [0] : vector<512x128xf32> to vector<128xf32>
    %10 = vector.shape_cast %9 : vector<128xf32> to vector<1x128xf32>
    %11 = vector.shape_cast %10 : vector<1x128xf32> to vector<1x1x128xf32>
    %c0_10 = arith.constant 0 : index
    %c0_11 = arith.constant 0 : index
    %c0_12 = arith.constant 0 : index
    %12 = vector.load %arg5[%c0_10, %c0_11, %c0_12] : memref<1x1x128xf32, #tpu.memory_space<vmem>>, vector<1x1x128xf32>
    tpu.vector_store %arg5[%c0_10, %c0_11, %c0_12], %11 {strides = array<i32>} : memref<1x1x128xf32, #tpu.memory_space<vmem>>, vector<1x1x128xf32>,
    return
  }
  func.func @transform_0(%arg0: i32) -> (i32, i32) {
    %c0_i32 = arith.constant 0 : i32
    %c0_i32_0 = arith.constant 0 : i32
    return %arg0, %c0_i32 : i32, i32
  }
  func.func @transform_1(%arg0: i32) -> (i32, i32) {
    %c0_i32 = arith.constant 0 : i32
    %c0_i32_0 = arith.constant 0 : i32
    %c0_i32_1 = arith.constant 0 : i32
    return %c0_i32, %c0_i32_0 : i32, i32
  }
  func.func @transform_2(%arg0: i32) -> (i32, i32) {
    %c0_i32 = arith.constant 0 : i32
    %c0_i32_0 = arith.constant 0 : i32
    return %arg0, %c0_i32 : i32, i32
  }
  func.func @transform_3(%arg0: i32) -> (i32, i32, i32) {
    %c0_i32 = arith.constant 0 : i32
    %c0_i32_0 = arith.constant 0 : i32
    %c0_i32_1 = arith.constant 0 : i32
    return %arg0, %c0_i32, %c0_i32_0 : i32, i32, i32
  }
  func.func @transform_4(%arg0: i32) -> (i32, i32, i32) {
    %c0_i32 = arith.constant 0 : i32
    %c0_i32_0 = arith.constant 0 : i32
    %c0_i32_1 = arith.constant 0 : i32
    return %arg0, %c0_i32, %c0_i32_0 : i32, i32, i32
  }
}

module attributes {stable_mosaic.version = 11 : i64} {
  func.func @_affine_act_kernel(%arg0: i32, %arg1: memref<512x128xf32, #tpu.memory_space<vmem>>, %arg2: memref<1x128xf32, #tpu.memory_space<vmem>>, %arg3: memref<1x128xf32, #tpu.memory_space<vmem>>, %arg4: memref<512x128xf32, #tpu.memory_space<vmem>>) attributes {dimension_semantics = [#tpu.dimension_semantics<parallel>], iteration_bounds = array<i64: 4>, scalar_prefetch = 0 : i64, scratch_operands = 0 : i64, tpu.core_type = #tpu.core_type<tc>, window_params = [{transform_indices = @transform_0, window_bounds = array<i64: 512, 128>}, {pipeline_mode = #tpu.pipeline_mode<synchronous>, transform_indices = @transform_1, window_bounds = array<i64: 1, 128>}, {pipeline_mode = #tpu.pipeline_mode<synchronous>, transform_indices = @transform_2, window_bounds = array<i64: 1, 128>}, {transform_indices = @transform_3, window_bounds = array<i64: 512, 128>}]} {
    %c0 = arith.constant 0 : index
    %c0_0 = arith.constant 0 : index
    %0 = vector.load %arg1[%c0, %c0_0] : memref<512x128xf32, #tpu.memory_space<vmem>>, vector<512x128xf32>
    %c0_1 = arith.constant 0 : index
    %c0_2 = arith.constant 0 : index
    %1 = vector.load %arg2[%c0_1, %c0_2] : memref<1x128xf32, #tpu.memory_space<vmem>>, vector<1x128xf32>
    %2 = vector.broadcast %1 : vector<1x128xf32> to vector<512x128xf32>
    %3 = arith.mulf %0, %2 : vector<512x128xf32>
    %c0_3 = arith.constant 0 : index
    %c0_4 = arith.constant 0 : index
    %4 = vector.load %arg3[%c0_3, %c0_4] : memref<1x128xf32, #tpu.memory_space<vmem>>, vector<1x128xf32>
    %5 = vector.broadcast %4 : vector<1x128xf32> to vector<512x128xf32>
    %6 = arith.addf %3, %5 : vector<512x128xf32>
    %7 = math.tanh %6 : vector<512x128xf32>
    %c0_5 = arith.constant 0 : index
    %c0_6 = arith.constant 0 : index
    %8 = vector.load %arg4[%c0_5, %c0_6] : memref<512x128xf32, #tpu.memory_space<vmem>>, vector<512x128xf32>
    tpu.vector_store %arg4[%c0_5, %c0_6], %7 {strides = array<i32>} : memref<512x128xf32, #tpu.memory_space<vmem>>, vector<512x128xf32>,
    return
  }
  func.func @transform_0(%arg0: i32) -> (i32, i32) {
    %c0_i32 = arith.constant 0 : i32
    %c0_i32_0 = arith.constant 0 : i32
    return %arg0, %c0_i32 : i32, i32
  }
  func.func @transform_1(%arg0: i32) -> (i32, i32) {
    %c0_i32 = arith.constant 0 : i32
    %c0_i32_0 = arith.constant 0 : i32
    %c0_i32_1 = arith.constant 0 : i32
    return %c0_i32, %c0_i32_0 : i32, i32
  }
  func.func @transform_2(%arg0: i32) -> (i32, i32) {
    %c0_i32 = arith.constant 0 : i32
    %c0_i32_0 = arith.constant 0 : i32
    %c0_i32_1 = arith.constant 0 : i32
    return %c0_i32, %c0_i32_0 : i32, i32
  }
  func.func @transform_3(%arg0: i32) -> (i32, i32) {
    %c0_i32 = arith.constant 0 : i32
    %c0_i32_0 = arith.constant 0 : i32
    return %arg0, %c0_i32 : i32, i32
  }
}

</mosaic_0001>

<bundles_post_ra>
// kernel: generator_forward.9
= control target key start
LH: loop header
LB: loop body
LE: loop exit
PB: predicated region body
PF: predicated region fallthrough
CT: control target
= control target key end

     0   :  { %s104_s0 = inlined_call_operand.vmem [shape: f32[32,128], index: 0, kind: input, shape index: {}]   ;;  %s105_s1 = inlined_call_operand.vmem [shape: f32[1,128], index: 1, kind: input, shape index: {}]   ;;  %s106_s2 = inlined_call_operand.vmem [shape: f32[1,128], index: 2, kind: input, shape index: {}]   ;;  %s107_s3 = inlined_call_operand.vmem [shape: f32[32,128], index: 3, kind: output, shape index: {}]  }
   0x1   :  { %v14_v0 = vld [vmem:[%s104_s0] sm:$0xff]  ;;  %v15_v4 = vld [vmem:[%s104_s0 + $0x8] sm:$0xff]  ;;  %v16_v5 = vld [vmem:[%s104_s0 + $0x10] sm:$0xff] }
   0x2   :  { %v52_v1 = vld [vmem:[%s105_s1] ss:$0 sm:$0xff]  ;;  %v17_v6 = vld [vmem:[%s104_s0 + $0x18] sm:$0xff] }
   0x3   :  { %v53_v2 = vld [vmem:[%s106_s2] ss:$0 sm:$0xff]  ;;  %v25_v3 = vmul.f32 %v52_v1, %v14_v0  ;;  %v26_v7 = vmul.f32 %v52_v1, %v15_v4  ;;  %v27_v8 = vmul.f32 %v52_v1, %v16_v5  ;;  %v28_v9 = vmul.f32 %v52_v1, %v17_v6 }
   0x5   :  { %v36_v10 = vadd.f32 %v53_v2, %v25_v3  ;;  %v37_v11 = vadd.f32 %v53_v2, %v26_v7  ;;  %v38_v12 = vadd.f32 %v53_v2, %v27_v8  ;;  %v39_v13 = vadd.f32 %v53_v2, %v28_v9 }
   0x7   :  { %v40_v14 = vmax.f32 %v36_v10, 0.0  ;;  %v41_v15 = vmax.f32 %v37_v11, 0.0  ;;  %v42_v16 = vmax.f32 %v38_v12, 0.0  ;;  %v43_v17 = vmax.f32 %v39_v13, 0.0 }
   0x9   :  { %44 = vst [vmem:[%s107_s3] sm:$0xff] %v40_v14  ;;  %45 = vst [vmem:[%s107_s3 + $0x8] sm:$0xff] %v41_v15 }
   0xa   :  { %46 = vst [vmem:[%s107_s3 + $0x10] sm:$0xff] %v42_v16  ;;  %47 = vst [vmem:[%s107_s3 + $0x18] sm:$0xff] %v43_v17 }

// kernel: generator_forward.8
= control target key start
LH: loop header
LB: loop body
LE: loop exit
PB: predicated region body
PF: predicated region fallthrough
CT: control target
= control target key end

     0   :  { %s445_s1 = inlined_call_operand.vmem [shape: bf16[256,128], index: 1, kind: input, shape index: {}]   ;;  %s446_s0 = inlined_call_operand.vmem [shape: bf16[32,256], index: 0, kind: input, shape index: {}]   ;;  %s447_s2 = inlined_call_operand.vmem [shape: f32[32,128], index: 2, kind: output, shape index: {0}]   ;;  %s448_s3 = inlined_call_operand.vmem [shape: f32[1,1,128], index: 3, kind: output, shape index: {1}]   ;;  %s449_s4 = inlined_call_operand.vmem [shape: f32[1,1,128], index: 4, kind: output, shape index: {2}]  }
   0x1   :  { %v320_v0 = vld [vmem:[%s445_s1 + $0x40] sm:$0xff]   ;;  %v322_v2 = vld [vmem:[%s445_s1 + $0x48] sm:$0xff]   ;;  %v324_v4 = vld [vmem:[%s445_s1 + $0x50] sm:$0xff]  }
   0x2   :  { %v321_v1 = vld [vmem:[%s445_s1] sm:$0xff]   ;;  %276 = vmatprep.subr.bf16.mxu0 %v320_v0  ;;  %304 = vmatprep.subr.bf16.mxu1 %v320_v0  ;;  %v323_v3 = vld [vmem:[%s445_s1 + $0x8] sm:$0xff]   ;;  %v325_v5 = vld [vmem:[%s445_s1 + $0x10] sm:$0xff]  }
   0x3   :  { %277 = vmatpush3.bf16.msra.mxu0 %v321_v1  ;;  %312 = vmatpush3.bf16.msra.mxu1 %v321_v1  ;;  %v326_v6 = vld [vmem:[%s445_s1 + $0x58] sm:$0xff]   ;;  %v328_v8 = vld [vmem:[%s445_s1 + $0x60] sm:$0xff]   ;;  %v330_v10 = vld [vmem:[%s445_s1 + $0x68] sm:$0xff]  }
   0x4   :  { %278 = vmatprep.subr.bf16.mxu0 %v322_v2  ;;  %305 = vmatprep.subr.bf16.mxu1 %v322_v2  ;;  %v327_v7 = vld [vmem:[%s445_s1 + $0x18] sm:$0xff]   ;;  %v329_v9 = vld [vmem:[%s445_s1 + $0x20] sm:$0xff]   ;;  %v331_v13 = vld [vmem:[%s445_s1 + $0x28] sm:$0xff]  }
   0x5   :  { %v338_v11 = vld [vmem:[%s446_s0 + $0x4] ss:$8 sps:$4 sm:$0xff]   ;;  %v341_v12 = vld [vmem:[%s446_s0 + $0x14] ss:$8 sps:$4 sm:$0xff]   ;;  %v336_v18 = vld [vmem:[%s446_s0] ss:$8 sps:$4 sm:$0xff]  }
   0x6   :  { %v332_v14 = vld [vmem:[%s445_s1 + $0x70] sm:$0xff]   ;;  %199 = vmatprep.mubr.bf16.mxu0 %v338_v11  ;;  %207 = vmatprep.mubr.bf16.mxu1 %v341_v12  ;;  %v334_v16 = vld [vmem:[%s445_s1 + $0x78] sm:$0xff]  }
   0x7   :  { %279 = vmatpush3.bf16.msra.mxu0 %v323_v3  ;;  %313 = vmatpush3.bf16.msra.mxu1 %v323_v3  ;;  %v333_v15 = vld [vmem:[%s445_s1 + $0x30] sm:$0xff]   ;;  %v335_v17 = vld [vmem:[%s445_s1 + $0x38] sm:$0xff]  }
   0x8   :  { %280 = vmatprep.subr.bf16.mxu0 %v324_v4  ;;  %306 = vmatprep.subr.bf16.mxu1 %v324_v4  ;;  %v339_v19 = vld [vmem:[%s446_s0 + $0x10] ss:$8 sps:$4 sm:$0xff]  }
   0xb   :  { %281 = vmatpush3.bf16.msra.mxu0 %v325_v5  ;;  %314 = vmatpush3.bf16.msra.mxu1 %v325_v5 }
   0xc   :  { %282 = vmatprep.subr.bf16.mxu0 %v326_v6  ;;  %307 = vmatprep.subr.bf16.mxu1 %v326_v6 }
   0xf   :  { %283 = vmatpush3.bf16.msra.mxu0 %v327_v7  ;;  %315 = vmatpush3.bf16.msra.mxu1 %v327_v7 }
  0x10   :  { %284 = vmatprep.subr.bf16.mxu0 %v328_v8  ;;  %308 = vmatprep.subr.bf16.mxu1 %v328_v8 }
  0x13   :  { %285 = vmatpush3.bf16.msra.mxu0 %v329_v9  ;;  %316 = vmatpush3.bf16.msra.mxu1 %v329_v9 }
  0x14   :  { %286 = vmatprep.subr.bf16.mxu0 %v330_v10  ;;  %309 = vmatprep.subr.bf16.mxu1 %v330_v10 }
  0x17   :  { %287 = vmatpush3.bf16.msra.mxu0 %v331_v13  ;;  %317 = vmatpush3.bf16.msra.mxu1 %v331_v13 }
  0x18   :  { %288 = vmatprep.subr.bf16.mxu0 %v332_v14  ;;  %310 = vmatprep.subr.bf16.mxu1 %v332_v14 }
  0x1b   :  { %289 = vmatpush3.bf16.msra.mxu0 %v333_v15  ;;  %318 = vmatpush3.bf16.msra.mxu1 %v333_v15 }
  0x1c   :  { %290 = vmatprep.subr.bf16.mxu0 %v334_v16  ;;  %311 = vmatprep.subr.bf16.mxu1 %v334_v16 }
  0x1f   :  { %291 = vmatpush3.bf16.msra.mxu0 %v335_v17  ;;  %319 = vmatpush3.bf16.msra.mxu1 %v335_v17 }
  0x22   :  { %200 = vmatmul.mubr.bf16.vlgmr.msra.gmra.mrb[0].mxu0 %v336_v18  ;;  %208 = vmatmul.mubr.bf16.vlgmr.msra.gmra.mrb[0].mxu1 %v339_v19 }
  0xf5   :  { %v292_v20 = vpop.f32.mrb[0].mxu0  ;;  %v298_v21 = vpop.f32.mrb[0].mxu1 }
  0xf6   :  { %v293_v22 = vpop.f32.mrb[1].mxu0  ;;  %v299_v23 = vpop.f32.mrb[1].mxu1 }
  0xf7   :  { %v294_v24 = vadd.f32 %v293_v22, %v292_v20  ;;  %v295_v25 = vpop.f32.mrb[2].mxu0  ;;  %v300_v26 = vadd.f32 %v299_v23, %v298_v21  ;;  %v301_v27 = vpop.f32.mrb[2].mxu1 }
  0xf8   :  { %v296_v28 = vpop.f32.mrb[3].mxu0  ;;  %v302_v29 = vpop.f32.mrb[3].mxu1 }
  0xf9   :  { %216 = vst [vmem:[%s447_s2] sm:$0xff] %v294_v24  ;;  %218 = vst [vmem:[%s447_s2 + $0x10] sm:$0xff] %v300_v26  ;;  %v297_v30 = vadd.f32 %v296_v28, %v295_v25  ;;  %v303_v31 = vadd.f32 %v302_v29, %v301_v27  ;;  %v230_v32 = vmul.f32 %v294_v24, %v294_v24 }
  0xfa   :  { %v232_v33 = vmul.f32 %v300_v26, %v300_v26 }
  0xfb   :  { %217 = vst [vmem:[%s447_s2 + $0x8] sm:$0xff] %v297_v30  ;;  %v220_v34 = vadd.f32 %v297_v30, %v294_v24  ;;  %v231_v35 = vmul.f32 %v297_v30, %v297_v30  ;;  %219 = vst [vmem:[%s447_s2 + $0x18] sm:$0xff] %v303_v31  ;;  %v233_v39 = vmul.f32 %v303_v31, %v303_v31 }
  0xfd   :  { %v234_v36 = vadd.f32 %v231_v35, %v230_v32  ;;  %v221_v37 = vadd.f32 %v300_v26, %v220_v34 }
  0xff   :  { %v222_v38 = vadd.f32 %v303_v31, %v221_v37  ;;  %v235_v40 = vadd.f32 %v234_v36, %v232_v33 }
 0x101   :  { %v223_v41 = vrot.slane %v222_v38, 4  ;;  %v236_v42 = vadd.f32 %v235_v40, %v233_v39 }
 0x103   :  { %v224_v43 = vadd.f32 %v223_v41, %v222_v38  ;;  %v237_v44 = vrot.slane %v236_v42, 4 }
 0x105   :  { %v225_v45 = vrot.slane %v224_v43, 2  ;;  %v238_v46 = vadd.f32 %v237_v44, %v236_v42 }
 0x107   :  { %v226_v47 = vadd.f32 %v225_v45, %v224_v43  ;;  %v239_v48 = vrot.slane %v238_v46, 2 }
 0x109   :  { %v227_v49 = vrot.slane %v226_v47, 1  ;;  %v240_v50 = vadd.f32 %v239_v48, %v238_v46 }
 0x10b   :  { %v228_v51 = vadd.f32 %v227_v49, %v226_v47  ;;  %v241_v52 = vrot.slane %v240_v50, 1 }
 0x10d   :  { %229 = vst [vmem:[%s448_s3] sm:$0x1] %v228_v51  ;;  %v242_v53 = vadd.f32 %v241_v52, %v240_v50 }
 0x10f   :  { %243 = vst [vmem:[%s449_s4] sm:$0x1] %v242_v53 }

// kernel: generator_forward.11
= control target key start
LH: loop header
LB: loop body
LE: loop exit
PB: predicated region body
PF: predicated region fallthrough
CT: control target
= control target key end

     0   :  { %s254_s0 = inlined_call_operand.vmem [shape: f32[128,128], index: 0, kind: input, shape index: {}]   ;;  %s255_s1 = inlined_call_operand.vmem [shape: f32[1,128], index: 1, kind: input, shape index: {}]   ;;  %s256_s2 = inlined_call_operand.vmem [shape: f32[1,128], index: 2, kind: input, shape index: {}]   ;;  %s257_s3 = inlined_call_operand.vmem [shape: f32[128,128], index: 3, kind: output, shape index: {}]  }
   0x1   :  { %v14_v0 = vld [vmem:[%s254_s0] sm:$0xff]  ;;  %v15_v4 = vld [vmem:[%s254_s0 + $0x8] sm:$0xff]  ;;  %v16_v5 = vld [vmem:[%s254_s0 + $0x10] sm:$0xff] }
   0x2   :  { %v112_v1 = vld [vmem:[%s255_s1] ss:$0 sm:$0xff]  ;;  %v17_v6 = vld [vmem:[%s254_s0 + $0x18] sm:$0xff]  ;;  %v19_v11 = vld [vmem:[%s254_s0 + $0x28] sm:$0xff] }
   0x3   :  { %v143_v2 = vld [vmem:[%s256_s2] ss:$0 sm:$0xff]  ;;  %v37_v3 = vmul.f32 %v112_v1, %v14_v0  ;;  %v38_v7 = vmul.f32 %v112_v1, %v15_v4  ;;  %v39_v8 = vmul.f32 %v112_v1, %v16_v5  ;;  %v40_v9 = vmul.f32 %v112_v1, %v17_v6  ;;  %v20_v12 = vld [vmem:[%s254_s0 + $0x30] sm:$0xff]  ;;  %v21_v17 = vld [vmem:[%s254_s0 + $0x38] sm:$0xff] }
   0x4   :  { %v18_v10 = vld [vmem:[%s254_s0 + $0x20] sm:$0xff]  ;;  %v42_v15 = vmul.f32 %v112_v1, %v19_v11  ;;  %v43_v16 = vmul.f32 %v112_v1, %v20_v12  ;;  %v44_v21 = vmul.f32 %v112_v1, %v21_v17  ;;  %v23_v27 = vld [vmem:[%s254_s0 + $0x48] sm:$0xff]  ;;  %v24_v28 = vld [vmem:[%s254_s0 + $0x50] sm:$0xff] }
   0x5   :  { %v60_v13 = vadd.f32 %v143_v2, %v37_v3  ;;  %v41_v14 = vmul.f32 %v112_v1, %v18_v10  ;;  %v61_v18 = vadd.f32 %v143_v2, %v38_v7  ;;  %v62_v19 = vadd.f32 %v143_v2, %v39_v8  ;;  %v22_v22 = vld [vmem:[%s254_s0 + $0x40] sm:$0xff]  ;;  %v25_v29 = vld [vmem:[%s254_s0 + $0x58] sm:$0xff]  ;;  %v27_v35 = vld [vmem:[%s254_s0 + $0x68] sm:$0xff] }
   0x6   :  { %v63_v20 = vadd.f32 %v143_v2, %v40_v9  ;;  %v65_v25 = vadd.f32 %v143_v2, %v42_v15  ;;  %v66_v26 = vadd.f32 %v143_v2, %v43_v16  ;;  %v67_v33 = vadd.f32 %v143_v2, %v44_v21  ;;  %v26_v34 = vld [vmem:[%s254_s0 + $0x60] sm:$0xff]  ;;  %v28_v36 = vld [vmem:[%s254_s0 + $0x70] sm:$0xff]  ;;  %v29_v41 = vld [vmem:[%s254_s0 + $0x78] sm:$0xff] }
   0x7   :  { %v76_v23 = vmax.f32 %v60_v13, 0.0  ;;  %v64_v24 = vadd.f32 %v143_v2, %v41_v14  ;;  %v77_v30 = vmax.f32 %v61_v18, 0.0  ;;  %v78_v31 = vmax.f32 %v62_v19, 0.0 }
   0x8   :  { %v79_v32 = vmax.f32 %v63_v20, 0.0  ;;  %v81_v38 = vmax.f32 %v65_v25, 0.0  ;;  %v82_v39 = vmax.f32 %v66_v26, 0.0  ;;  %v45_v40 = vmul.f32 %v112_v1, %v22_v22 }
   0x9   :  { %92 = vst [vmem:[%s257_s3] sm:$0xff] %v76_v23  ;;  %v80_v37 = vmax.f32 %v64_v24, 0.0  ;;  %93 = vst [vmem:[%s257_s3 + $0x8] sm:$0xff] %v77_v30  ;;  %v83_v42 = vmax.f32 %v67_v33, 0.0  ;;  %v46_v43 = vmul.f32 %v112_v1, %v23_v27  ;;  %v47_v44 = vmul.f32 %v112_v1, %v24_v28 }
   0xa   :  { %94 = vst [vmem:[%s257_s3 + $0x10] sm:$0xff] %v78_v31  ;;  %95 = vst [vmem:[%s257_s3 + $0x18] sm:$0xff] %v79_v32  ;;  %v48_v45 = vmul.f32 %v112_v1, %v25_v29  ;;  %v68_v46 = vadd.f32 %v143_v2, %v45_v40  ;;  %v49_v47 = vmul.f32 %v112_v1, %v26_v34 }
   0xb   :  { %96 = vst [vmem:[%s257_s3 + $0x20] sm:$0xff] %v80_v37  ;;  %97 = vst [vmem:[%s257_s3 + $0x28] sm:$0xff] %v81_v38  ;;  %v50_v48 = vmul.f32 %v112_v1, %v27_v35  ;;  %v51_v49 = vmul.f32 %v112_v1, %v28_v36  ;;  %v69_v50 = vadd.f32 %v143_v2, %v46_v43 }
   0xc   :  { %98 = vst [vmem:[%s257_s3 + $0x30] sm:$0xff] %v82_v39  ;;  %99 = vst [vmem:[%s257_s3 + $0x38] sm:$0xff] %v83_v42  ;;  %v70_v51 = vadd.f32 %v143_v2, %v47_v44  ;;  %v71_v52 = vadd.f32 %v143_v2, %v48_v45  ;;  %v52_v53 = vmul.f32 %v112_v1, %v29_v41  ;;  %v84_v54 = vmax.f32 %v68_v46, 0.0 }
   0xd   :  { %v72_v55 = vadd.f32 %v143_v2, %v49_v47  ;;  %v73_v56 = vadd.f32 %v143_v2, %v50_v48  ;;  %v74_v57 = vadd.f32 %v143_v2, %v51_v49  ;;  %v85_v58 = vmax.f32 %v69_v50, 0.0 }
   0xe   :  { %v86_v59 = vmax.f32 %v70_v51, 0.0  ;;  %v87_v60 = vmax.f32 %v71_v52, 0.0  ;;  %v75_v61 = vadd.f32 %v143_v2, %v52_v53  ;;  %100 = vst [vmem:[%s257_s3 + $0x40] sm:$0xff] %v84_v54 }
   0xf   :  { %v88_v62 = vmax.f32 %v72_v55, 0.0  ;;  %v89_v63 = vmax.f32 %v73_v56, 0.0  ;;  %v90_v0 = vmax.f32 %v74_v57, 0.0  ;;  %101 = vst [vmem:[%s257_s3 + $0x48] sm:$0xff] %v85_v58 }
  0x10   :  { %102 = vst [vmem:[%s257_s3 + $0x50] sm:$0xff] %v86_v59  ;;  %103 = vst [vmem:[%s257_s3 + $0x58] sm:$0xff] %v87_v60  ;;  %v91_v1 = vmax.f32 %v75_v61, 0.0 }
  0x11   :  { %104 = vst [vmem:[%s257_s3 + $0x60] sm:$0xff] %v88_v62  ;;  %105 = vst [vmem:[%s257_s3 + $0x68] sm:$0xff] %v89_v63 }
  0x12   :  { %106 = vst [vmem:[%s257_s3 + $0x70] sm:$0xff] %v90_v0  ;;  %107 = vst [vmem:[%s257_s3 + $0x78] sm:$0xff] %v91_v1 }

// kernel: generator_forward.10
= control target key start
LH: loop header
LB: loop body
LE: loop exit
PB: predicated region body
PF: predicated region fallthrough
CT: control target
= control target key end

     0   :  { %s2346_s1 = inlined_call_operand.vmem [shape: bf16[1024,128], index: 1, kind: input, shape index: {}]   ;;  %s2347_s0 = inlined_call_operand.vmem [shape: bf16[128,1024], index: 0, kind: input, shape index: {}]   ;;  %s2348_s2 = inlined_call_operand.vmem [shape: f32[128,128], index: 2, kind: output, shape index: {0}]   ;;  %s2349_s3 = inlined_call_operand.vmem [shape: f32[1,1,128], index: 3, kind: output, shape index: {1}]   ;;  %s2350_s4 = inlined_call_operand.vmem [shape: f32[1,1,128], index: 4, kind: output, shape index: {2}]  }
   0x1   :  { %v1771_v0 = vld [vmem:[%s2346_s1 + $0x40] sm:$0xff]   ;;  %v1775_v4 = vld [vmem:[%s2346_s1 + $0x48] sm:$0xff]   ;;  %v1779_v8 = vld [vmem:[%s2346_s1 + $0x50] sm:$0xff]  }
   0x2   :  { %v1772_v1 = vld [vmem:[%s2346_s1 + $0xc0] sm:$0xff]   ;;  %1515 = vmatprep.subr.bf16.mxu0 %v1771_v0  ;;  %v1776_v5 = vld [vmem:[%s2346_s1 + $0xc8] sm:$0xff]   ;;  %v1780_v9 = vld [vmem:[%s2346_s1 + $0xd0] sm:$0xff]  }
   0x3   :  { %v1773_v2 = vld [vmem:[%s2346_s1] sm:$0xff]   ;;  %1579 = vmatprep.subr.bf16.mxu1 %v1772_v1  ;;  %v1777_v6 = vld [vmem:[%s2346_s1 + $0x8] sm:$0xff]   ;;  %v1781_v10 = vld [vmem:[%s2346_s1 + $0x10] sm:$0xff]  }
   0x4   :  { %v1774_v3 = vld [vmem:[%s2346_s1 + $0x80] sm:$0xff]   ;;  %1516 = vmatpush3.bf16.msra.mxu0 %v1773_v2  ;;  %v1778_v7 = vld [vmem:[%s2346_s1 + $0x88] sm:$0xff]   ;;  %v1782_v11 = vld [vmem:[%s2346_s1 + $0x90] sm:$0xff]  }
   0x5   :  { %1580 = vmatpush3.bf16.msra.mxu1 %v1774_v3  ;;  %1517 = vmatprep.subr.bf16.mxu0 %v1775_v4  ;;  %v1783_v12 = vld [vmem:[%s2346_s1 + $0x58] sm:$0xff]   ;;  %v1787_v16 = vld [vmem:[%s2346_s1 + $0x60] sm:$0xff]   ;;  %v1791_v20 = vld [vmem:[%s2346_s1 + $0x68] sm:$0xff]  }
   0x6   :  { %1581 = vmatprep.subr.bf16.mxu1 %v1776_v5  ;;  %v1784_v13 = vld [vmem:[%s2346_s1 + $0xd8] sm:$0xff]   ;;  %v1788_v17 = vld [vmem:[%s2346_s1 + $0xe0] sm:$0xff]   ;;  %v1792_v21 = vld [vmem:[%s2346_s1 + $0xe8] sm:$0xff]  }
   0x7   :  { %v1785_v14 = vld [vmem:[%s2346_s1 + $0x18] sm:$0xff]   ;;  %v1789_v18 = vld [vmem:[%s2346_s1 + $0x20] sm:$0xff]   ;;  %v1793_v22 = vld [vmem:[%s2346_s1 + $0x28] sm:$0xff]  }
   0x8   :  { %1518 = vmatpush3.bf16.msra.mxu0 %v1777_v6  ;;  %v1786_v15 = vld [vmem:[%s2346_s1 + $0x98] sm:$0xff]   ;;  %v1790_v19 = vld [vmem:[%s2346_s1 + $0xa0] sm:$0xff]   ;;  %v1794_v23 = vld [vmem:[%s2346_s1 + $0xa8] sm:$0xff]  }
   0x9   :  { %1582 = vmatpush3.bf16.msra.mxu1 %v1778_v7  ;;  %1519 = vmatprep.subr.bf16.mxu0 %v1779_v8  ;;  %v1795_v24 = vld [vmem:[%s2346_s1 + $0x70] sm:$0xff]   ;;  %v1799_v28 = vld [vmem:[%s2346_s1 + $0x78] sm:$0xff]   ;;  %v15_v32 = vld [vmem:[%s2347_s0] sm:$0xff] }
   0xa   :  { %1583 = vmatprep.subr.bf16.mxu1 %v1780_v9  ;;  %v1796_v25 = vld [vmem:[%s2346_s1 + $0xf0] sm:$0xff]   ;;  %v1800_v29 = vld [vmem:[%s2346_s1 + $0xf8] sm:$0xff]   ;;  %v19_v33 = vld [vmem:[%s2347_s0 + $0x20] sm:$0xff] }
   0xb   :  { %v1797_v26 = vld [vmem:[%s2346_s1 + $0x30] sm:$0xff]   ;;  %v1801_v30 = vld [vmem:[%s2346_s1 + $0x38] sm:$0xff]   ;;  %v16_v34 = vld [vmem:[%s2347_s0 + $0x8] sm:$0xff]  ;;  %v1387_v35 = vcombine.low %v15_v32, %v19_v33  ;;  %v1388_v36 = vcombine.high %v15_v32, %v19_v33 }
   0xc   :  { %1520 = vmatpush3.bf16.msra.mxu0 %v1781_v10  ;;  %v1798_v27 = vld [vmem:[%s2346_s1 + $0xb0] sm:$0xff]   ;;  %v1802_v31 = vld [vmem:[%s2346_s1 + $0xb8] sm:$0xff]   ;;  %v20_v37 = vld [vmem:[%s2347_s0 + $0x28] sm:$0xff] }
   0xd   :  { %1584 = vmatpush3.bf16.msra.mxu1 %v1782_v11  ;;  %1521 = vmatprep.subr.bf16.mxu0 %v1783_v12  ;;  %v1389_v38 = vcombine.low %v16_v34, %v20_v37  ;;  %v1390_v39 = vcombine.high %v16_v34, %v20_v37  ;;  %v1803_v40 = vld [vmem:[%s2346_s1 + $0x140] sm:$0xff]   ;;  %v24_v47 = vld [vmem:[%s2347_s0 + $0x48] sm:$0xff]  ;;  %v1811_v62 = vld [vmem:[%s2346_s1 + $0x150] sm:$0xff]  }
   0xe   :  { %1585 = vmatprep.subr.bf16.mxu1 %v1784_v13  ;;  %943 = vmatprep.mubr.bf16.mxu0 %v1388_v36  ;;  %v1804_v41 = vld [vmem:[%s2346_s1 + $0x100] sm:$0xff]   ;;  %v28_v48 = vld [vmem:[%s2347_s0 + $0x68] sm:$0xff]  ;;  %v1812_v63 = vld [vmem:[%s2346_s1 + $0x110] sm:$0xff]  }
   0xf   :  { %1040 = vmatprep.mubr.bf16.mxu1 %v1390_v39  ;;  %v1805_v42 = vld [vmem:[%s2346_s1 + $0x1c0] sm:$0xff]   ;;  %v1398_v49 = vcombine.high %v24_v47, %v28_v48  ;;  %v1807_v50 = vld [vmem:[%s2346_s1 + $0x148] sm:$0xff]   ;;  %v1397_v53 = vcombine.low %v24_v47, %v28_v48  ;;  %v1813_v0 = vld [vmem:[%s2346_s1 + $0x1d0] sm:$0xff]  }
  0x10   :  { %1522 = vmatpush3.bf16.msra.mxu0 %v1785_v14  ;;  %v1806_v43 = vld [vmem:[%s2346_s1 + $0x180] sm:$0xff]   ;;  %v1808_v52 = vld [vmem:[%s2346_s1 + $0x108] sm:$0xff]   ;;  %v1814_v1 = vld [vmem:[%s2346_s1 + $0x190] sm:$0xff]  }
  0x11   :  { %1586 = vmatpush3.bf16.msra.mxu1 %v1786_v15  ;;  %1523 = vmatprep.subr.bf16.mxu0 %v1787_v16  ;;  %v23_v44 = vld [vmem:[%s2347_s0 + $0x40] sm:$0xff]  ;;  %v1809_v54 = vld [vmem:[%s2346_s1 + $0x1c8] sm:$0xff]   ;;  %v1815_v10 = vld [vmem:[%s2346_s1 + $0x158] sm:$0xff]  }
  0x12   :  { %1587 = vmatprep.subr.bf16.mxu1 %v1788_v17  ;;  %v27_v45 = vld [vmem:[%s2347_s0 + $0x60] sm:$0xff]  ;;  %v1810_v55 = vld [vmem:[%s2346_s1 + $0x188] sm:$0xff]   ;;  %v1816_v11 = vld [vmem:[%s2346_s1 + $0x118] sm:$0xff]  }
  0x13   :  { %v1396_v46 = vcombine.high %v23_v44, %v27_v45  ;;  %v1395_v51 = vcombine.low %v23_v44, %v27_v45  ;;  %v31_v56 = vld [vmem:[%s2347_s0 + $0x80] sm:$0xff]  ;;  %v32_v58 = vld [vmem:[%s2347_s0 + $0x88] sm:$0xff]  ;;  %v1817_v12 = vld [vmem:[%s2346_s1 + $0x1d8] sm:$0xff]  }
  0x14   :  { %1524 = vmatpush3.bf16.msra.mxu0 %v1789_v18  ;;  %v35_v57 = vld [vmem:[%s2347_s0 + $0xa0] sm:$0xff]  ;;  %v36_v59 = vld [vmem:[%s2347_s0 + $0xa8] sm:$0xff]  ;;  %v1818_v13 = vld [vmem:[%s2346_s1 + $0x198] sm:$0xff]  }
  0x15   :  { %1588 = vmatpush3.bf16.msra.mxu1 %v1790_v19  ;;  %1525 = vmatprep.subr.bf16.mxu0 %v1791_v20  ;;  %v1404_v60 = vcombine.high %v31_v56, %v35_v57  ;;  %v1406_v61 = vcombine.high %v32_v58, %v36_v59  ;;  %v1403_v2 = vcombine.low %v31_v56, %v35_v57  ;;  %v39_v3 = vld [vmem:[%s2347_s0 + $0xc0] sm:$0xff]  ;;  %v40_v5 = vld [vmem:[%s2347_s0 + $0xc8] sm:$0xff]  ;;  %v1828_v39 = vld [vmem:[%s2346_s1 + $0x130] sm:$0xff]  }
  0x16   :  { %1589 = vmatprep.subr.bf16.mxu1 %v1792_v21  ;;  %v43_v4 = vld [vmem:[%s2347_s0 + $0xe0] sm:$0xff]  ;;  %v1405_v6 = vcombine.low %v32_v58, %v36_v59  ;;  %v44_v8 = vld [vmem:[%s2347_s0 + $0xe8] sm:$0xff]  ;;  %v1832_v48 = vld [vmem:[%s2346_s1 + $0x138] sm:$0xff]  }
  0x17   :  { %v1412_v7 = vcombine.high %v39_v3, %v43_v4  ;;  %v1414_v9 = vcombine.high %v40_v5, %v44_v8  ;;  %v47_v14 = vld [vmem:[%s2347_s0 + $0x100] sm:$0xff]  ;;  %v48_v16 = vld [vmem:[%s2347_s0 + $0x108] sm:$0xff]  ;;  %v1411_v19 = vcombine.low %v39_v3, %v43_v4  ;;  %v1413_v21 = vcombine.low %v40_v5, %v44_v8  ;;  %v26_v8 = vld [vmem:[%s2347_s0 + $0x58] sm:$0xff] }
  0x18   :  { %1526 = vmatpush3.bf16.msra.mxu0 %v1793_v22  ;;  %v51_v15 = vld [vmem:[%s2347_s0 + $0x120] sm:$0xff]  ;;  %v52_v17 = vld [vmem:[%s2347_s0 + $0x128] sm:$0xff] }
  0x19   :  { %1590 = vmatpush3.bf16.msra.mxu1 %v1794_v23  ;;  %1527 = vmatprep.subr.bf16.mxu0 %v1795_v24  ;;  %v1819_v18 = vld [vmem:[%s2346_s1 + $0x160] sm:$0xff]   ;;  %v1420_v22 = vcombine.high %v47_v14, %v51_v15  ;;  %v1422_v24 = vcombine.high %v48_v16, %v52_v17  ;;  %v1825_v32 = vld [vmem:[%s2346_s1 + $0x1e8] sm:$0xff]   ;;  %v1419_v34 = vcombine.low %v47_v14, %v51_v15  ;;  %v33_v14 = vld [vmem:[%s2347_s0 + $0x90] sm:$0xff] }
  0x1a   :  { %1591 = vmatprep.subr.bf16.mxu1 %v1796_v25  ;;  %v1820_v20 = vld [vmem:[%s2346_s1 + $0x120] sm:$0xff]   ;;  %v1826_v33 = vld [vmem:[%s2346_s1 + $0x1a8] sm:$0xff]   ;;  %v37_v15 = vld [vmem:[%s2347_s0 + $0xb0] sm:$0xff] }
  0x1b   :  { %v1821_v23 = vld [vmem:[%s2346_s1 + $0x1e0] sm:$0xff]   ;;  %v64_v44 = vld [vmem:[%s2347_s0 + $0x188] sm:$0xff] }
  0x1c   :  { %1528 = vmatpush3.bf16.msra.mxu0 %v1797_v26  ;;  %v1822_v25 = vld [vmem:[%s2346_s1 + $0x1a0] sm:$0xff]   ;;  %v68_v45 = vld [vmem:[%s2347_s0 + $0x1a8] sm:$0xff] }
  0x1d   :  { %1592 = vmatpush3.bf16.msra.mxu1 %v1798_v27  ;;  %1529 = vmatprep.subr.bf16.mxu0 %v1799_v28  ;;  %v55_v26 = vld [vmem:[%s2347_s0 + $0x140] sm:$0xff]  ;;  %v1823_v28 = vld [vmem:[%s2346_s1 + $0x168] sm:$0xff]   ;;  %v1437_v59 = vcombine.low %v64_v44, %v68_v45 }
  0x1e   :  { %1593 = vmatprep.subr.bf16.mxu1 %v1800_v29  ;;  %v59_v27 = vld [vmem:[%s2347_s0 + $0x160] sm:$0xff]  ;;  %v56_v29 = vld [vmem:[%s2347_s0 + $0x148] sm:$0xff] }
  0x1f   :  { %v1428_v36 = vcombine.high %v55_v26, %v59_v27  ;;  %v1427_v47 = vcombine.low %v55_v26, %v59_v27  ;;  %v72_v56 = vld [vmem:[%s2347_s0 + $0x1c8] sm:$0xff]  ;;  %v1407_v26 = vcombine.low %v33_v14, %v37_v15 }
  0x20   :  { %1530 = vmatpush3.bf16.msra.mxu0 %v1801_v30  ;;  %v60_v30 = vld [vmem:[%s2347_s0 + $0x168] sm:$0xff] }
  0x21   :  { %1594 = vmatpush3.bf16.msra.mxu1 %v1802_v31  ;;  %1643 = vmatprep.subr.bf16.mxu0 %v1803_v40  ;;  %v1824_v31 = vld [vmem:[%s2346_s1 + $0x128] sm:$0xff]   ;;  %v1430_v37 = vcombine.high %v56_v29, %v60_v30  ;;  %v1829_v40 = vld [vmem:[%s2346_s1 + $0x1f0] sm:$0xff]  }
  0x22   :  { %1707 = vmatprep.subr.bf16.mxu1 %v1805_v42  ;;  %v67_v42 = vld [vmem:[%s2347_s0 + $0x1a0] sm:$0xff]  ;;  %v76_v57 = vld [vmem:[%s2347_s0 + $0x1e8] sm:$0xff] }
  0x23   :  { %944 = vmatmul.mubr.bf16.vlgmr.msra.gmra.mrb[0].mxu0 %v1387_v35  ;;  %v1421_v35 = vcombine.low %v48_v16, %v52_v17  ;;  %v1445_v3 = vcombine.low %v72_v56, %v76_v57  ;;  %v34_v16 = vld [vmem:[%s2347_s0 + $0x98] sm:$0xff] }
  0x24   :  { %1041 = vmatmul.mubr.bf16.vlgmr.msra.gmra.mrb[0].mxu1 %v1389_v38  ;;  %1644 = vmatpush3.bf16.msra.mxu0 %v1804_v41  ;;  %v1827_v38 = vld [vmem:[%s2346_s1 + $0x170] sm:$0xff]   ;;  %v63_v41 = vld [vmem:[%s2347_s0 + $0x180] sm:$0xff]  ;;  %v38_v17 = vld [vmem:[%s2347_s0 + $0xb8] sm:$0xff] }
  0x25   :  { %1708 = vmatpush3.bf16.msra.mxu1 %v1806_v43  ;;  %951 = vmatprep.mubr.bf16.mxu0 %v1396_v46  ;;  %v1830_v43 = vld [vmem:[%s2346_s1 + $0x1b0] sm:$0xff]   ;;  %v1831_v46 = vld [vmem:[%s2346_s1 + $0x178] sm:$0xff]   ;;  %v1435_v58 = vcombine.low %v63_v41, %v67_v42  ;;  %v1409_v27 = vcombine.low %v34_v16, %v38_v17 }
  0x26   :  { %1048 = vmatprep.mubr.bf16.mxu1 %v1398_v49  ;;  %1645 = vmatprep.subr.bf16.mxu0 %v1807_v50  ;;  %v1429_v49 = vcombine.low %v56_v29, %v60_v30  ;;  %v1436_v50 = vcombine.high %v63_v41, %v67_v42  ;;  %v49_v30 = vld [vmem:[%s2347_s0 + $0x110] sm:$0xff]  ;;  %v62_v41 = vld [vmem:[%s2347_s0 + $0x178] sm:$0xff] }
  0x27   :  { %1709 = vmatprep.subr.bf16.mxu1 %v1809_v54  ;;  %v71_v54 = vld [vmem:[%s2347_s0 + $0x1c0] sm:$0xff] }
  0x28   :  { %1646 = vmatpush3.bf16.msra.mxu0 %v1808_v52  ;;  %v1438_v52 = vcombine.high %v64_v44, %v68_v45 }
  0x29   :  { %1710 = vmatpush3.bf16.msra.mxu1 %v1810_v55  ;;  %1647 = vmatprep.subr.bf16.mxu0 %v1811_v62  ;;  %v75_v55 = vld [vmem:[%s2347_s0 + $0x1e0] sm:$0xff]  ;;  %v17_v62 = vld [vmem:[%s2347_s0 + $0x10] sm:$0xff] }
  0x2a   :  { %1711 = vmatprep.subr.bf16.mxu1 %v1813_v0  ;;  %v18_v0 = vld [vmem:[%s2347_s0 + $0x18] sm:$0xff] }
  0x2b   :  { %952 = vmatmul.mubr.bf16.gmra.mrb[4].mxu0 %v1395_v51  ;;  %v1833_v51 = vld [vmem:[%s2346_s1 + $0x1f8] sm:$0xff]  }
  0x2c   :  { %1049 = vmatmul.mubr.bf16.gmra.mrb[4].mxu1 %v1397_v53  ;;  %959 = vmatprep.mubr.bf16.mxu0 %v1404_v60  ;;  %v1834_v53 = vld [vmem:[%s2346_s1 + $0x1b8] sm:$0xff]   ;;  %v1444_v60 = vcombine.high %v71_v54, %v75_v55 }
  0x2d   :  { %1056 = vmatprep.mubr.bf16.mxu1 %v1406_v61  ;;  %1648 = vmatpush3.bf16.msra.mxu0 %v1812_v63  ;;  %v1446_v61 = vcombine.high %v72_v56, %v76_v57  ;;  %v21_v63 = vld [vmem:[%s2347_s0 + $0x30] sm:$0xff]  ;;  %v74_v56 = vld [vmem:[%s2347_s0 + $0x1d8] sm:$0xff] }
  0x2e   :  { %1712 = vmatpush3.bf16.msra.mxu1 %v1814_v1  ;;  %1649 = vmatprep.subr.bf16.mxu0 %v1815_v10  ;;  %v22_v1 = vld [vmem:[%s2347_s0 + $0x38] sm:$0xff]  ;;  %v1392_v4 = vcombine.high %v17_v62, %v21_v63  ;;  %v1391_v10 = vcombine.low %v17_v62, %v21_v63 }
  0x2f   :  { %1713 = vmatprep.subr.bf16.mxu1 %v1817_v12  ;;  %v1394_v5 = vcombine.high %v18_v0, %v22_v1  ;;  %v78_v57 = vld [vmem:[%s2347_s0 + $0x1f8] sm:$0xff] }
  0x30   :  { %v1449_v63 = vcombine.low %v74_v56, %v78_v57 }
  0x31   :  { %1650 = vmatpush3.bf16.msra.mxu0 %v1816_v11  ;;  %v1393_v11 = vcombine.low %v18_v0, %v22_v1 }
  0x32   :  { %1714 = vmatpush3.bf16.msra.mxu1 %v1818_v13  ;;  %1651 = vmatprep.subr.bf16.mxu0 %v1819_v18 }
  0x33   :  { %960 = vmatmul.mubr.bf16.gmra.mrb[8].mxu0 %v1403_v2  ;;  %1715 = vmatprep.subr.bf16.mxu1 %v1821_v23  ;;  %v1443_v2 = vcombine.low %v71_v54, %v75_v55  ;;  %v45_v23 = vld [vmem:[%s2347_s0 + $0xf0] sm:$0xff] }
  0x34   :  { %1057 = vmatmul.mubr.bf16.gmra.mrb[8].mxu1 %v1405_v6  ;;  %967 = vmatprep.mubr.bf16.mxu0 %v1412_v7  ;;  %v25_v6 = vld [vmem:[%s2347_s0 + $0x50] sm:$0xff] }
  0x35   :  { %1064 = vmatprep.mubr.bf16.mxu1 %v1414_v9  ;;  %1652 = vmatpush3.bf16.msra.mxu0 %v1820_v20  ;;  %v29_v7 = vld [vmem:[%s2347_s0 + $0x70] sm:$0xff]  ;;  %v30_v9 = vld [vmem:[%s2347_s0 + $0x78] sm:$0xff]  ;;  %v1408_v20 = vcombine.high %v33_v14, %v37_v15 }
  0x36   :  { %1716 = vmatpush3.bf16.msra.mxu1 %v1822_v25  ;;  %1653 = vmatprep.subr.bf16.mxu0 %v1823_v28  ;;  %v1400_v12 = vcombine.high %v25_v6, %v29_v7  ;;  %v1402_v13 = vcombine.high %v26_v8, %v30_v9  ;;  %v1399_v18 = vcombine.low %v25_v6, %v29_v7  ;;  %v46_v25 = vld [vmem:[%s2347_s0 + $0xf8] sm:$0xff]  ;;  %v73_v54 = vld [vmem:[%s2347_s0 + $0x1d0] sm:$0xff] }
  0x37   :  { %1717 = vmatprep.subr.bf16.mxu1 %v1825_v32  ;;  %v50_v32 = vld [vmem:[%s2347_s0 + $0x118] sm:$0xff]  ;;  %v77_v55 = vld [vmem:[%s2347_s0 + $0x1f0] sm:$0xff] }
  0x38   :  { %v1447_v62 = vcombine.low %v73_v54, %v77_v55 }
  0x39   :  { %1654 = vmatpush3.bf16.msra.mxu0 %v1824_v31  ;;  %v53_v31 = vld [vmem:[%s2347_s0 + $0x130] sm:$0xff] }
  0x3a   :  { %1718 = vmatpush3.bf16.msra.mxu1 %v1826_v33  ;;  %1655 = vmatprep.subr.bf16.mxu0 %v1827_v38  ;;  %v54_v33 = vld [vmem:[%s2347_s0 + $0x138] sm:$0xff]  ;;  %v57_v38 = vld [vmem:[%s2347_s0 + $0x150] sm:$0xff]  ;;  %v1423_v42 = vcombine.low %v49_v30, %v53_v31 }
  0x3b   :  { %968 = vmatmul.mubr.bf16.gmra.mrb[12].mxu0 %v1411_v19  ;;  %1719 = vmatprep.subr.bf16.mxu1 %v1829_v40  ;;  %v1401_v19 = vcombine.low %v26_v8, %v30_v9  ;;  %v58_v40 = vld [vmem:[%s2347_s0 + $0x158] sm:$0xff] }
  0x3c   :  { %1065 = vmatmul.mubr.bf16.gmra.mrb[12].mxu1 %v1413_v21  ;;  %975 = vmatprep.mubr.bf16.mxu0 %v1420_v22  ;;  %v1410_v21 = vcombine.high %v34_v16, %v38_v17  ;;  %v41_v22 = vld [vmem:[%s2347_s0 + $0xd0] sm:$0xff]  ;;  %v1434_v45 = vcombine.high %v58_v40, %v62_v41 }
  0x3d   :  { %1072 = vmatprep.mubr.bf16.mxu1 %v1422_v24  ;;  %1656 = vmatpush3.bf16.msra.mxu0 %v1828_v39  ;;  %v42_v24 = vld [vmem:[%s2347_s0 + $0xd8] sm:$0xff]  ;;  %v1416_v28 = vcombine.high %v41_v22, %v45_v23  ;;  %v61_v39 = vld [vmem:[%s2347_s0 + $0x170] sm:$0xff] }
  0x3e   :  { %1720 = vmatpush3.bf16.msra.mxu1 %v1830_v43  ;;  %1657 = vmatprep.subr.bf16.mxu0 %v1831_v46  ;;  %v1418_v29 = vcombine.high %v42_v24, %v46_v25  ;;  %v1425_v43 = vcombine.low %v50_v32, %v54_v33  ;;  %v1432_v44 = vcombine.high %v57_v38, %v61_v39  ;;  %v65_v46 = vld [vmem:[%s2347_s0 + $0x190] sm:$0xff] }
  0x3f   :  { %1721 = vmatprep.subr.bf16.mxu1 %v1833_v51  ;;  %v1433_v51 = vcombine.low %v58_v40, %v62_v41 }
  0x41   :  { %1658 = vmatpush3.bf16.msra.mxu0 %v1832_v48  ;;  %v66_v48 = vld [vmem:[%s2347_s0 + $0x198] sm:$0xff] }
  0x42   :  { %1722 = vmatpush3.bf16.msra.mxu1 %v1834_v53 }
  0x43   :  { %976 = vmatmul.mubr.bf16.gmra.mrb[16].mxu0 %v1419_v34  ;;  %v1415_v34 = vcombine.low %v41_v22, %v45_v23 }
  0x44   :  { %1073 = vmatmul.mubr.bf16.gmra.mrb[16].mxu1 %v1421_v35  ;;  %983 = vmatprep.mubr.bf16.mxu0 %v1428_v36  ;;  %v1417_v35 = vcombine.low %v42_v24, %v46_v25  ;;  %v1424_v36 = vcombine.high %v49_v30, %v53_v31 }
  0x45   :  { %1080 = vmatprep.mubr.bf16.mxu1 %v1430_v37  ;;  %v1426_v37 = vcombine.high %v50_v32, %v54_v33 }
  0x4b   :  { %984 = vmatmul.mubr.bf16.gmra.mrb[20].mxu0 %v1427_v47  ;;  %v69_v47 = vld [vmem:[%s2347_s0 + $0x1b0] sm:$0xff] }
  0x4c   :  { %1081 = vmatmul.mubr.bf16.gmra.mrb[20].mxu1 %v1429_v49  ;;  %991 = vmatprep.mubr.bf16.mxu0 %v1436_v50  ;;  %v70_v49 = vld [vmem:[%s2347_s0 + $0x1b8] sm:$0xff]  ;;  %v1431_v50 = vcombine.low %v57_v38, %v61_v39 }
  0x4d   :  { %1088 = vmatprep.mubr.bf16.mxu1 %v1438_v52  ;;  %v1440_v52 = vcombine.high %v65_v46, %v69_v47  ;;  %v1442_v53 = vcombine.high %v66_v48, %v70_v49 }
  0x53   :  { %992 = vmatmul.mubr.bf16.gmra.mrb[24].mxu0 %v1435_v58  ;;  %v1439_v58 = vcombine.low %v65_v46, %v69_v47 }
  0x54   :  { %1089 = vmatmul.mubr.bf16.gmra.mrb[24].mxu1 %v1437_v59  ;;  %999 = vmatprep.mubr.bf16.mxu0 %v1444_v60  ;;  %v1441_v59 = vcombine.low %v66_v48, %v70_v49  ;;  %v1448_v60 = vcombine.high %v73_v54, %v77_v55 }
  0x55   :  { %1096 = vmatprep.mubr.bf16.mxu1 %v1446_v61  ;;  %v1450_v61 = vcombine.high %v74_v56, %v78_v57 }
  0x5b   :  { %1000 = vmatmul.mubr.bf16.gmra.mrb[28].mxu0 %v1443_v2 }
  0x5c   :  { %1097 = vmatmul.mubr.bf16.gmra.mrb[28].mxu1 %v1445_v3  ;;  %1137 = vmatprep.mubr.bf16.mxu0 %v1392_v4 }
  0x5d   :  { %1234 = vmatprep.mubr.bf16.mxu1 %v1394_v5 }
  0x63   :  { %1138 = vmatmul.mubr.bf16.vlgmr.msra.gmra.mrb[32].mxu0 %v1391_v10 }
  0x64   :  { %1235 = vmatmul.mubr.bf16.vlgmr.msra.gmra.mrb[32].mxu1 %v1393_v11  ;;  %1145 = vmatprep.mubr.bf16.mxu0 %v1400_v12 }
  0x65   :  { %1242 = vmatprep.mubr.bf16.mxu1 %v1402_v13 }
  0x6b   :  { %1146 = vmatmul.mubr.bf16.gmra.mrb[36].mxu0 %v1399_v18 }
  0x6c   :  { %1243 = vmatmul.mubr.bf16.gmra.mrb[36].mxu1 %v1401_v19  ;;  %1153 = vmatprep.mubr.bf16.mxu0 %v1408_v20 }
  0x6d   :  { %1250 = vmatprep.mubr.bf16.mxu1 %v1410_v21 }
  0x73   :  { %1154 = vmatmul.mubr.bf16.gmra.mrb[40].mxu0 %v1407_v26 }
  0x74   :  { %1251 = vmatmul.mubr.bf16.gmra.mrb[40].mxu1 %v1409_v27  ;;  %1161 = vmatprep.mubr.bf16.mxu0 %v1416_v28 }
  0x75   :  { %1258 = vmatprep.mubr.bf16.mxu1 %v1418_v29 }
  0x7b   :  { %1162 = vmatmul.mubr.bf16.gmra.mrb[44].mxu0 %v1415_v34 }
  0x7c   :  { %1259 = vmatmul.mubr.bf16.gmra.mrb[44].mxu1 %v1417_v35  ;;  %1169 = vmatprep.mubr.bf16.mxu0 %v1424_v36 }
  0x7d   :  { %1266 = vmatprep.mubr.bf16.mxu1 %v1426_v37 }
  0x83   :  { %1170 = vmatmul.mubr.bf16.gmra.mrb[48].mxu0 %v1423_v42 }
  0x84   :  { %1267 = vmatmul.mubr.bf16.gmra.mrb[48].mxu1 %v1425_v43  ;;  %1177 = vmatprep.mubr.bf16.mxu0 %v1432_v44 }
  0x85   :  { %1274 = vmatprep.mubr.bf16.mxu1 %v1434_v45 }
  0x8b   :  { %1178 = vmatmul.mubr.bf16.gmra.mrb[52].mxu0 %v1431_v50 }
  0x8c   :  { %1275 = vmatmul.mubr.bf16.gmra.mrb[52].mxu1 %v1433_v51  ;;  %1185 = vmatprep.mubr.bf16.mxu0 %v1440_v52 }
  0x8d   :  { %1282 = vmatprep.mubr.bf16.mxu1 %v1442_v53 }
  0x93   :  { %1186 = vmatmul.mubr.bf16.gmra.mrb[56].mxu0 %v1439_v58 }
  0x94   :  { %1283 = vmatmul.mubr.bf16.gmra.mrb[56].mxu1 %v1441_v59  ;;  %1193 = vmatprep.mubr.bf16.mxu0 %v1448_v60 }
  0x95   :  { %1290 = vmatprep.mubr.bf16.mxu1 %v1450_v61 }
  0x9b   :  { %1194 = vmatmul.mubr.bf16.gmra.mrb[60].mxu0 %v1447_v62 }
  0x9c   :  { %1291 = vmatmul.mubr.bf16.gmra.mrb[60].mxu1 %v1449_v63 }
  0xf6   :  { %v1531_v0 = vpop.f32.mrb[0].mxu0 }
  0xf7   :  { %v1595_v1 = vpop.f32.mrb[0].mxu1  ;;  %v1532_v2 = vpop.f32.mrb[1].mxu0 }
  0xf8   :  { %v1533_v3 = vadd.f32 %v1532_v2, %v1531_v0  ;;  %v1596_v4 = vpop.f32.mrb[1].mxu1  ;;  %v1534_v5 = vpop.f32.mrb[2].mxu0 }
  0xf9   :  { %v1597_v6 = vadd.f32 %v1596_v4, %v1595_v1  ;;  %v1598_v7 = vpop.f32.mrb[2].mxu1  ;;  %v1535_v8 = vpop.f32.mrb[3].mxu0 }
  0xfa   :  { %v1536_v9 = vadd.f32 %v1535_v8, %v1534_v5  ;;  %v1599_v10 = vpop.f32.mrb[3].mxu1 }
  0xfb   :  { %v2244_v11 = vadd.f32 %v1597_v6, %v1533_v3  ;;  %v1600_v12 = vadd.f32 %v1599_v10, %v1598_v7 }
  0xfd   :  { %v2246_v13 = vadd.f32 %v1600_v12, %v1536_v9 }
  0xfe   :  { %v1537_v14 = vpop.f32.mrb[4].mxu0 }
  0xff   :  { %v1601_v15 = vpop.f32.mrb[4].mxu1  ;;  %v1538_v16 = vpop.f32.mrb[5].mxu0 }
 0x100   :  { %v1539_v17 = vadd.f32 %v1538_v16, %v1537_v14  ;;  %v1602_v18 = vpop.f32.mrb[5].mxu1  ;;  %v1540_v19 = vpop.f32.mrb[6].mxu0 }
 0x101   :  { %v1603_v20 = vadd.f32 %v1602_v18, %v1601_v15  ;;  %v1604_v21 = vpop.f32.mrb[6].mxu1  ;;  %v1541_v22 = vpop.f32.mrb[7].mxu0 }
 0x102   :  { %v1542_v23 = vadd.f32 %v1541_v22, %v1540_v19  ;;  %v1605_v24 = vpop.f32.mrb[7].mxu1 }
 0x103   :  { %v2248_v25 = vadd.f32 %v1603_v20, %v1539_v17  ;;  %v1606_v26 = vadd.f32 %v1605_v24, %v1604_v21 }
 0x105   :  { %v2250_v27 = vadd.f32 %v1606_v26, %v1542_v23 }
 0x106   :  { %v1543_v28 = vpop.f32.mrb[8].mxu0 }
 0x107   :  { %v1607_v29 = vpop.f32.mrb[8].mxu1  ;;  %v1544_v30 = vpop.f32.mrb[9].mxu0 }
 0x108   :  { %v1545_v31 = vadd.f32 %v1544_v30, %v1543_v28  ;;  %v1608_v32 = vpop.f32.mrb[9].mxu1  ;;  %v1546_v33 = vpop.f32.mrb[10].mxu0 }
 0x109   :  { %v1609_v34 = vadd.f32 %v1608_v32, %v1607_v29  ;;  %v1610_v35 = vpop.f32.mrb[10].mxu1  ;;  %v1547_v36 = vpop.f32.mrb[11].mxu0 }
 0x10a   :  { %v1548_v37 = vadd.f32 %v1547_v36, %v1546_v33  ;;  %v1611_v38 = vpop.f32.mrb[11].mxu1 }
 0x10b   :  { %v2252_v39 = vadd.f32 %v1609_v34, %v1545_v31  ;;  %v1612_v40 = vadd.f32 %v1611_v38, %v1610_v35 }
 0x10d   :  { %v2254_v41 = vadd.f32 %v1612_v40, %v1548_v37 }
 0x10e   :  { %v1549_v42 = vpop.f32.mrb[12].mxu0 }
 0x10f   :  { %v1613_v43 = vpop.f32.mrb[12].mxu1  ;;  %v1550_v44 = vpop.f32.mrb[13].mxu0 }
 0x110   :  { %v1551_v45 = vadd.f32 %v1550_v44, %v1549_v42  ;;  %v1614_v46 = vpop.f32.mrb[13].mxu1  ;;  %v1552_v47 = vpop.f32.mrb[14].mxu0 }
 0x111   :  { %v1615_v48 = vadd.f32 %v1614_v46, %v1613_v43  ;;  %v1616_v49 = vpop.f32.mrb[14].mxu1  ;;  %v1553_v50 = vpop.f32.mrb[15].mxu0 }
 0x112   :  { %v1554_v51 = vadd.f32 %v1553_v50, %v1552_v47  ;;  %v1617_v52 = vpop.f32.mrb[15].mxu1 }
 0x113   :  { %v2256_v53 = vadd.f32 %v1615_v48, %v1551_v45  ;;  %v1618_v54 = vadd.f32 %v1617_v52, %v1616_v49 }
 0x115   :  { %v2258_v55 = vadd.f32 %v1618_v54, %v1554_v51 }
 0x116   :  { %v1555_v56 = vpop.f32.mrb[16].mxu0 }
 0x117   :  { %v1619_v57 = vpop.f32.mrb[16].mxu1  ;;  %v1556_v58 = vpop.f32.mrb[17].mxu0 }
 0x118   :  { %v1557_v59 = vadd.f32 %v1556_v58, %v1555_v56  ;;  %v1620_v60 = vpop.f32.mrb[17].mxu1  ;;  %v1558_v61 = vpop.f32.mrb[18].mxu0 }
 0x119   :  { %v1621_v62 = vadd.f32 %v1620_v60, %v1619_v57  ;;  %v1622_v63 = vpop.f32.mrb[18].mxu1  ;;  %v1559_v0 = vpop.f32.mrb[19].mxu0 }
 0x11a   :  { %v1560_v1 = vadd.f32 %v1559_v0, %v1558_v61  ;;  %v1623_v2 = vpop.f32.mrb[19].mxu1 }
 0x11b   :  { %v2260_v3 = vadd.f32 %v1621_v62, %v1557_v59  ;;  %v1624_v4 = vadd.f32 %v1623_v2, %v1622_v63 }
 0x11d   :  { %v2262_v5 = vadd.f32 %v1624_v4, %v1560_v1 }
 0x11e   :  { %v1561_v6 = vpop.f32.mrb[20].mxu0 }
 0x11f   :  { %v1625_v7 = vpop.f32.mrb[20].mxu1  ;;  %v1562_v8 = vpop.f32.mrb[21].mxu0 }
 0x120   :  { %v1563_v9 = vadd.f32 %v1562_v8, %v1561_v6  ;;  %v1626_v10 = vpop.f32.mrb[21].mxu1  ;;  %v1564_v12 = vpop.f32.mrb[22].mxu0 }
 0x121   :  { %v1627_v14 = vadd.f32 %v1626_v10, %v1625_v7  ;;  %v1628_v15 = vpop.f32.mrb[22].mxu1  ;;  %v1565_v16 = vpop.f32.mrb[23].mxu0 }
 0x122   :  { %v1566_v17 = vadd.f32 %v1565_v16, %v1564_v12  ;;  %v1629_v18 = vpop.f32.mrb[23].mxu1 }
 0x123   :  { %v2264_v19 = vadd.f32 %v1627_v14, %v1563_v9  ;;  %v1630_v20 = vadd.f32 %v1629_v18, %v1628_v15 }
 0x125   :  { %v2266_v21 = vadd.f32 %v1630_v20, %v1566_v17 }
 0x126   :  { %v1567_v22 = vpop.f32.mrb[24].mxu0 }
 0x127   :  { %v1631_v23 = vpop.f32.mrb[24].mxu1  ;;  %v1568_v24 = vpop.f32.mrb[25].mxu0 }
 0x128   :  { %v1569_v26 = vadd.f32 %v1568_v24, %v1567_v22  ;;  %v1632_v28 = vpop.f32.mrb[25].mxu1  ;;  %v1570_v29 = vpop.f32.mrb[26].mxu0 }
 0x129   :  { %v1633_v30 = vadd.f32 %v1632_v28, %v1631_v23  ;;  %v1634_v31 = vpop.f32.mrb[26].mxu1  ;;  %v1571_v32 = vpop.f32.mrb[27].mxu0 }
 0x12a   :  { %v1572_v33 = vadd.f32 %v1571_v32, %v1570_v29  ;;  %v1635_v34 = vpop.f32.mrb[27].mxu1 }
 0x12b   :  { %v2268_v35 = vadd.f32 %v1633_v30, %v1569_v26  ;;  %v1636_v36 = vadd.f32 %v1635_v34, %v1634_v31 }
 0x12d   :  { %v2270_v37 = vadd.f32 %v1636_v36, %v1572_v33 }
 0x12e   :  { %v1573_v38 = vpop.f32.mrb[28].mxu0 }
 0x12f   :  { %v1637_v40 = vpop.f32.mrb[28].mxu1  ;;  %v1574_v42 = vpop.f32.mrb[29].mxu0 }
 0x130   :  { %v1575_v43 = vadd.f32 %v1574_v42, %v1573_v38  ;;  %v1638_v44 = vpop.f32.mrb[29].mxu1  ;;  %v1576_v45 = vpop.f32.mrb[30].mxu0 }
 0x131   :  { %v1639_v46 = vadd.f32 %v1638_v44, %v1637_v40  ;;  %v1640_v47 = vpop.f32.mrb[30].mxu1  ;;  %v1577_v48 = vpop.f32.mrb[31].mxu0 }
 0x132   :  { %v1578_v49 = vadd.f32 %v1577_v48, %v1576_v45  ;;  %v1641_v50 = vpop.f32.mrb[31].mxu1 }
 0x133   :  { %v2272_v51 = vadd.f32 %v1639_v46, %v1575_v43  ;;  %v1642_v52 = vadd.f32 %v1641_v50, %v1640_v47 }
 0x135   :  { %v2274_v54 = vadd.f32 %v1642_v52, %v1578_v49 }
 0x136   :  { %v1659_v56 = vpop.f32.mrb[32].mxu0 }
 0x137   :  { %v1723_v57 = vpop.f32.mrb[32].mxu1  ;;  %v1660_v58 = vpop.f32.mrb[33].mxu0 }
 0x138   :  { %v1661_v59 = vadd.f32 %v1660_v58, %v1659_v56  ;;  %v1724_v60 = vpop.f32.mrb[33].mxu1  ;;  %v1662_v61 = vpop.f32.mrb[34].mxu0 }
 0x139   :  { %v1725_v62 = vadd.f32 %v1724_v60, %v1723_v57  ;;  %v1726_v63 = vpop.f32.mrb[34].mxu1  ;;  %v1663_v0 = vpop.f32.mrb[35].mxu0 }
 0x13a   :  { %v1140_v1 = vadd.f32 %v1661_v59, %v2244_v11  ;;  %v1664_v2 = vadd.f32 %v1663_v0, %v1662_v61  ;;  %v1727_v4 = vpop.f32.mrb[35].mxu1 }
 0x13b   :  { %v1728_v6 = vadd.f32 %v1727_v4, %v1726_v63 }
 0x13c   :  { %v1237_v7 = vadd.f32 %v1725_v62, %v1140_v1  ;;  %v1143_v8 = vadd.f32 %v1664_v2, %v2246_v13 }
 0x13e   :  { %1299 = vst [vmem:[%s2348_s2] sm:$0xff] %v1237_v7  ;;  %v1240_v9 = vadd.f32 %v1728_v6, %v1143_v8  ;;  %v1665_v10 = vpop.f32.mrb[36].mxu0  ;;  %v1337_v15 = vmul.f32 %v1237_v7, %v1237_v7 }
 0x13f   :  { %v1729_v12 = vpop.f32.mrb[36].mxu1  ;;  %v1666_v14 = vpop.f32.mrb[37].mxu0 }
 0x140   :  { %1300 = vst [vmem:[%s2348_s2 + $0x8] sm:$0xff] %v1240_v9  ;;  %v1315_v11 = vadd.f32 %v1240_v9, %v1237_v7  ;;  %v1338_v16 = vmul.f32 %v1240_v9, %v1240_v9  ;;  %v1667_v17 = vadd.f32 %v1666_v14, %v1665_v10  ;;  %v1730_v18 = vpop.f32.mrb[37].mxu1  ;;  %v1668_v20 = vpop.f32.mrb[38].mxu0 }
 0x141   :  { %v1731_v22 = vadd.f32 %v1730_v18, %v1729_v12  ;;  %v1732_v13 = vpop.f32.mrb[38].mxu1  ;;  %v1669_v23 = vpop.f32.mrb[39].mxu0 }
 0x142   :  { %v1353_v24 = vadd.f32 %v1338_v16, %v1337_v15  ;;  %v1148_v26 = vadd.f32 %v1667_v17, %v2248_v25  ;;  %v1670_v28 = vadd.f32 %v1669_v23, %v1668_v20  ;;  %v1733_v29 = vpop.f32.mrb[39].mxu1 }
 0x143   :  { %v1734_v30 = vadd.f32 %v1733_v29, %v1732_v13 }
 0x144   :  { %v1245_v31 = vadd.f32 %v1731_v22, %v1148_v26  ;;  %v1151_v32 = vadd.f32 %v1670_v28, %v2250_v27 }
 0x146   :  { %1301 = vst [vmem:[%s2348_s2 + $0x10] sm:$0xff] %v1245_v31  ;;  %v1316_v33 = vadd.f32 %v1315_v11, %v1245_v31  ;;  %v1339_v34 = vmul.f32 %v1245_v31, %v1245_v31  ;;  %v1248_v36 = vadd.f32 %v1734_v30, %v1151_v32  ;;  %v1671_v38 = vpop.f32.mrb[40].mxu0 }
 0x147   :  { %v1735_v40 = vpop.f32.mrb[40].mxu1  ;;  %v1672_v42 = vpop.f32.mrb[41].mxu0 }
 0x148   :  { %v1354_v43 = vadd.f32 %v1353_v24, %v1339_v34  ;;  %1302 = vst [vmem:[%s2348_s2 + $0x18] sm:$0xff] %v1248_v36  ;;  %v1317_v25 = vadd.f32 %v1316_v33, %v1248_v36  ;;  %v1340_v44 = vmul.f32 %v1248_v36, %v1248_v36  ;;  %v1673_v45 = vadd.f32 %v1672_v42, %v1671_v38  ;;  %v1736_v46 = vpop.f32.mrb[41].mxu1  ;;  %v1674_v27 = vpop.f32.mrb[42].mxu0 }
 0x149   :  { %v1737_v47 = vadd.f32 %v1736_v46, %v1735_v40  ;;  %v1738_v48 = vpop.f32.mrb[42].mxu1  ;;  %v1675_v49 = vpop.f32.mrb[43].mxu0 }
 0x14a   :  { %v1355_v50 = vadd.f32 %v1354_v43, %v1340_v44  ;;  %v1156_v52 = vadd.f32 %v1673_v45, %v2252_v39  ;;  %v1676_v56 = vadd.f32 %v1675_v49, %v1674_v27  ;;  %v1739_v57 = vpop.f32.mrb[43].mxu1 }
 0x14b   :  { %v1740_v58 = vadd.f32 %v1739_v57, %v1738_v48 }
 0x14c   :  { %v1253_v59 = vadd.f32 %v1737_v47, %v1156_v52  ;;  %v1159_v60 = vadd.f32 %v1676_v56, %v2254_v41 }
 0x14e   :  { %1303 = vst [vmem:[%s2348_s2 + $0x20] sm:$0xff] %v1253_v59  ;;  %v1318_v61 = vadd.f32 %v1317_v25, %v1253_v59  ;;  %v1341_v62 = vmul.f32 %v1253_v59, %v1253_v59  ;;  %v1256_v63 = vadd.f32 %v1740_v58, %v1159_v60  ;;  %v1677_v0 = vpop.f32.mrb[44].mxu0 }
 0x14f   :  { %v1741_v1 = vpop.f32.mrb[44].mxu1  ;;  %v1678_v2 = vpop.f32.mrb[45].mxu0 }
 0x150   :  { %v1356_v4 = vadd.f32 %v1355_v50, %v1341_v62  ;;  %1304 = vst [vmem:[%s2348_s2 + $0x28] sm:$0xff] %v1256_v63  ;;  %v1319_v39 = vadd.f32 %v1318_v61, %v1256_v63  ;;  %v1342_v6 = vmul.f32 %v1256_v63, %v1256_v63  ;;  %v1679_v7 = vadd.f32 %v1678_v2, %v1677_v0  ;;  %v1742_v8 = vpop.f32.mrb[45].mxu1  ;;  %v1680_v41 = vpop.f32.mrb[46].mxu0 }
 0x151   :  { %v1743_v9 = vadd.f32 %v1742_v8, %v1741_v1  ;;  %v1744_v10 = vpop.f32.mrb[46].mxu1  ;;  %v1681_v12 = vpop.f32.mrb[47].mxu0 }
 0x152   :  { %v1357_v14 = vadd.f32 %v1356_v4, %v1342_v6  ;;  %v1164_v15 = vadd.f32 %v1679_v7, %v2256_v53  ;;  %v1682_v11 = vadd.f32 %v1681_v12, %v1680_v41  ;;  %v1745_v16 = vpop.f32.mrb[47].mxu1 }
 0x153   :  { %v1746_v17 = vadd.f32 %v1745_v16, %v1744_v10 }
 0x154   :  { %v1261_v18 = vadd.f32 %v1743_v9, %v1164_v15  ;;  %v1167_v20 = vadd.f32 %v1682_v11, %v2258_v55 }
 0x156   :  { %1305 = vst [vmem:[%s2348_s2 + $0x30] sm:$0xff] %v1261_v18  ;;  %v1320_v22 = vadd.f32 %v1319_v39, %v1261_v18  ;;  %v1343_v13 = vmul.f32 %v1261_v18, %v1261_v18  ;;  %v1264_v23 = vadd.f32 %v1746_v17, %v1167_v20  ;;  %v1683_v24 = vpop.f32.mrb[48].mxu0 }
 0x157   :  { %v1747_v26 = vpop.f32.mrb[48].mxu1  ;;  %v1684_v28 = vpop.f32.mrb[49].mxu0 }
 0x158   :  { %v1358_v29 = vadd.f32 %v1357_v14, %v1343_v13  ;;  %1306 = vst [vmem:[%s2348_s2 + $0x38] sm:$0xff] %v1264_v23  ;;  %v1321_v53 = vadd.f32 %v1320_v22, %v1264_v23  ;;  %v1344_v30 = vmul.f32 %v1264_v23, %v1264_v23  ;;  %v1685_v31 = vadd.f32 %v1684_v28, %v1683_v24  ;;  %v1748_v32 = vpop.f32.mrb[49].mxu1  ;;  %v1686_v55 = vpop.f32.mrb[50].mxu0 }
 0x159   :  { %v1749_v33 = vadd.f32 %v1748_v32, %v1747_v26  ;;  %v1750_v34 = vpop.f32.mrb[50].mxu1  ;;  %v1687_v36 = vpop.f32.mrb[51].mxu0 }
 0x15a   :  { %v1359_v38 = vadd.f32 %v1358_v29, %v1344_v30  ;;  %v1172_v40 = vadd.f32 %v1685_v31, %v2260_v3  ;;  %v1688_v42 = vadd.f32 %v1687_v36, %v1686_v55  ;;  %v1751_v43 = vpop.f32.mrb[51].mxu1 }
 0x15b   :  { %v1752_v25 = vadd.f32 %v1751_v43, %v1750_v34 }
 0x15c   :  { %v1269_v44 = vadd.f32 %v1749_v33, %v1172_v40  ;;  %v1175_v45 = vadd.f32 %v1688_v42, %v2262_v5 }
 0x15e   :  { %1307 = vst [vmem:[%s2348_s2 + $0x40] sm:$0xff] %v1269_v44  ;;  %v1322_v46 = vadd.f32 %v1321_v53, %v1269_v44  ;;  %v1345_v27 = vmul.f32 %v1269_v44, %v1269_v44  ;;  %v1272_v47 = vadd.f32 %v1752_v25, %v1175_v45  ;;  %v1689_v48 = vpop.f32.mrb[52].mxu0 }
 0x15f   :  { %v1753_v49 = vpop.f32.mrb[52].mxu1  ;;  %v1690_v50 = vpop.f32.mrb[53].mxu0 }
 0x160   :  { %v1360_v52 = vadd.f32 %v1359_v38, %v1345_v27  ;;  %1308 = vst [vmem:[%s2348_s2 + $0x48] sm:$0xff] %v1272_v47  ;;  %v1323_v3 = vadd.f32 %v1322_v46, %v1272_v47  ;;  %v1346_v56 = vmul.f32 %v1272_v47, %v1272_v47  ;;  %v1691_v57 = vadd.f32 %v1690_v50, %v1689_v48  ;;  %v1754_v58 = vpop.f32.mrb[53].mxu1  ;;  %v1692_v5 = vpop.f32.mrb[54].mxu0 }
 0x161   :  { %v1755_v59 = vadd.f32 %v1754_v58, %v1753_v49  ;;  %v1756_v60 = vpop.f32.mrb[54].mxu1  ;;  %v1693_v61 = vpop.f32.mrb[55].mxu0 }
 0x162   :  { %v1361_v62 = vadd.f32 %v1360_v52, %v1346_v56  ;;  %v1180_v63 = vadd.f32 %v1691_v57, %v2264_v19  ;;  %v1694_v0 = vadd.f32 %v1693_v61, %v1692_v5  ;;  %v1757_v1 = vpop.f32.mrb[55].mxu1 }
 0x163   :  { %v1758_v2 = vadd.f32 %v1757_v1, %v1756_v60 }
 0x164   :  { %v1277_v4 = vadd.f32 %v1755_v59, %v1180_v63  ;;  %v1183_v39 = vadd.f32 %v1694_v0, %v2266_v21 }
 0x166   :  { %1309 = vst [vmem:[%s2348_s2 + $0x50] sm:$0xff] %v1277_v4  ;;  %v1324_v6 = vadd.f32 %v1323_v3, %v1277_v4  ;;  %v1347_v7 = vmul.f32 %v1277_v4, %v1277_v4  ;;  %v1280_v8 = vadd.f32 %v1758_v2, %v1183_v39  ;;  %v1695_v41 = vpop.f32.mrb[56].mxu0 }
 0x167   :  { %v1759_v9 = vpop.f32.mrb[56].mxu1  ;;  %v1696_v10 = vpop.f32.mrb[57].mxu0 }
 0x168   :  { %v1362_v12 = vadd.f32 %v1361_v62, %v1347_v7  ;;  %1310 = vst [vmem:[%s2348_s2 + $0x58] sm:$0xff] %v1280_v8  ;;  %v1325_v19 = vadd.f32 %v1324_v6, %v1280_v8  ;;  %v1348_v14 = vmul.f32 %v1280_v8, %v1280_v8  ;;  %v1697_v15 = vadd.f32 %v1696_v10, %v1695_v41  ;;  %v1760_v11 = vpop.f32.mrb[57].mxu1  ;;  %v1698_v21 = vpop.f32.mrb[58].mxu0 }
 0x169   :  { %v1761_v16 = vadd.f32 %v1760_v11, %v1759_v9  ;;  %v1762_v17 = vpop.f32.mrb[58].mxu1  ;;  %v1699_v18 = vpop.f32.mrb[59].mxu0 }
 0x16a   :  { %v1363_v20 = vadd.f32 %v1362_v12, %v1348_v14  ;;  %v1188_v22 = vadd.f32 %v1697_v15, %v2268_v35  ;;  %v1700_v13 = vadd.f32 %v1699_v18, %v1698_v21  ;;  %v1763_v23 = vpop.f32.mrb[59].mxu1 }
 0x16b   :  { %v1764_v24 = vadd.f32 %v1763_v23, %v1762_v17 }
 0x16c   :  { %v1285_v26 = vadd.f32 %v1761_v16, %v1188_v22  ;;  %v1191_v28 = vadd.f32 %v1700_v13, %v2270_v37 }
 0x16e   :  { %1311 = vst [vmem:[%s2348_s2 + $0x60] sm:$0xff] %v1285_v26  ;;  %v1326_v29 = vadd.f32 %v1325_v19, %v1285_v26  ;;  %v1349_v53 = vmul.f32 %v1285_v26, %v1285_v26  ;;  %v1288_v30 = vadd.f32 %v1764_v24, %v1191_v28  ;;  %v1701_v31 = vpop.f32.mrb[60].mxu0 }
 0x16f   :  { %v1765_v32 = vpop.f32.mrb[60].mxu1  ;;  %v1702_v55 = vpop.f32.mrb[61].mxu0 }
 0x170   :  { %v1364_v33 = vadd.f32 %v1363_v20, %v1349_v53  ;;  %1312 = vst [vmem:[%s2348_s2 + $0x68] sm:$0xff] %v1288_v30  ;;  %v1327_v35 = vadd.f32 %v1326_v29, %v1288_v30  ;;  %v1350_v34 = vmul.f32 %v1288_v30, %v1288_v30  ;;  %v1703_v36 = vadd.f32 %v1702_v55, %v1701_v31  ;;  %v1766_v38 = vpop.f32.mrb[61].mxu1  ;;  %v1704_v37 = vpop.f32.mrb[62].mxu0 }
 0x171   :  { %v1767_v40 = vadd.f32 %v1766_v38, %v1765_v32  ;;  %v1768_v42 = vpop.f32.mrb[62].mxu1  ;;  %v1705_v43 = vpop.f32.mrb[63].mxu0 }
 0x172   :  { %v1365_v25 = vadd.f32 %v1364_v33, %v1350_v34  ;;  %v1196_v44 = vadd.f32 %v1703_v36, %v2272_v51  ;;  %v1706_v45 = vadd.f32 %v1705_v43, %v1704_v37  ;;  %v1769_v46 = vpop.f32.mrb[63].mxu1 }
 0x173   :  { %v1770_v27 = vadd.f32 %v1769_v46, %v1768_v42 }
 0x174   :  { %v1293_v47 = vadd.f32 %v1767_v40, %v1196_v44  ;;  %v1199_v48 = vadd.f32 %v1706_v45, %v2274_v54 }
 0x176   :  { %1313 = vst [vmem:[%s2348_s2 + $0x70] sm:$0xff] %v1293_v47  ;;  %v1328_v49 = vadd.f32 %v1327_v35, %v1293_v47  ;;  %v1351_v50 = vmul.f32 %v1293_v47, %v1293_v47  ;;  %v1296_v52 = vadd.f32 %v1770_v27, %v1199_v48 }
 0x178   :  { %v1366_v3 = vadd.f32 %v1365_v25, %v1351_v50  ;;  %1314 = vst [vmem:[%s2348_s2 + $0x78] sm:$0xff] %v1296_v52  ;;  %v1329_v56 = vadd.f32 %v1328_v49, %v1296_v52  ;;  %v1352_v51 = vmul.f32 %v1296_v52, %v1296_v52 }
 0x17a   :  { %v1330_v57 = vrot.slane %v1329_v56, 4  ;;  %v1367_v58 = vadd.f32 %v1366_v3, %v1352_v51 }
 0x17c   :  { %v1331_v5 = vadd.f32 %v1330_v57, %v1329_v56  ;;  %v1368_v59 = vrot.slane %v1367_v58, 4 }
 0x17e   :  { %v1332_v60 = vrot.slane %v1331_v5, 2  ;;  %v1369_v54 = vadd.f32 %v1368_v59, %v1367_v58 }
 0x180   :  { %v1333_v61 = vadd.f32 %v1332_v60, %v1331_v5  ;;  %v1370_v62 = vrot.slane %v1369_v54, 2 }
 0x182   :  { %v1334_v63 = vrot.slane %v1333_v61, 1  ;;  %v1371_v0 = vadd.f32 %v1370_v62, %v1369_v54 }
 0x184   :  { %v1335_v1 = vadd.f32 %v1334_v63, %v1333_v61  ;;  %v1372_v2 = vrot.slane %v1371_v0, 1 }
 0x186   :  { %1336 = vst [vmem:[%s2349_s3] sm:$0x1] %v1335_v1  ;;  %v1373_v4 = vadd.f32 %v1372_v2, %v1371_v0 }
 0x188   :  { %1374 = vst [vmem:[%s2350_s4] sm:$0x1] %v1373_v4 }

// kernel: generator_forward.13
= control target key start
LH: loop header
LB: loop body
LE: loop exit
PB: predicated region body
PF: predicated region fallthrough
CT: control target
= control target key end

     0   :  { %s896_s0 = inlined_call_operand.vmem [shape: f32[512,128], index: 0, kind: input, shape index: {}]   ;;  %s897_s1 = inlined_call_operand.vmem [shape: f32[1,128], index: 1, kind: input, shape index: {}]   ;;  %s898_s2 = inlined_call_operand.vmem [shape: f32[1,128], index: 2, kind: input, shape index: {}]   ;;  %s899_s3 = inlined_call_operand.vmem [shape: f32[512,128], index: 3, kind: output, shape index: {}]  }
   0x1   :  { %v14_v0 = vld [vmem:[%s896_s0] sm:$0xff]  ;;  %v15_v4 = vld [vmem:[%s896_s0 + $0x8] sm:$0xff]  ;;  %v16_v5 = vld [vmem:[%s896_s0 + $0x10] sm:$0xff] }
   0x2   :  { %v380_v1 = vld [vmem:[%s897_s1] ss:$0 sm:$0xff]  ;;  %v17_v6 = vld [vmem:[%s896_s0 + $0x18] sm:$0xff]  ;;  %v19_v11 = vld [vmem:[%s896_s0 + $0x28] sm:$0xff] }
   0x3   :  { %v385_v2 = vld [vmem:[%s898_s2] ss:$0 sm:$0xff]  ;;  %v85_v3 = vmul.f32 %v380_v1, %v14_v0  ;;  %v86_v7 = vmul.f32 %v380_v1, %v15_v4  ;;  %v87_v8 = vmul.f32 %v380_v1, %v16_v5  ;;  %v88_v9 = vmul.f32 %v380_v1, %v17_v6  ;;  %v20_v12 = vld [vmem:[%s896_s0 + $0x30] sm:$0xff]  ;;  %v21_v17 = vld [vmem:[%s896_s0 + $0x38] sm:$0xff] }
   0x4   :  { %v18_v10 = vld [vmem:[%s896_s0 + $0x20] sm:$0xff]  ;;  %v90_v15 = vmul.f32 %v380_v1, %v19_v11  ;;  %v91_v16 = vmul.f32 %v380_v1, %v20_v12  ;;  %v92_v21 = vmul.f32 %v380_v1, %v21_v17  ;;  %v23_v27 = vld [vmem:[%s896_s0 + $0x48] sm:$0xff]  ;;  %v24_v28 = vld [vmem:[%s896_s0 + $0x50] sm:$0xff] }
   0x5   :  { %v156_v13 = vadd.f32 %v385_v2, %v85_v3  ;;  %v89_v14 = vmul.f32 %v380_v1, %v18_v10  ;;  %v157_v18 = vadd.f32 %v385_v2, %v86_v7  ;;  %v158_v19 = vadd.f32 %v385_v2, %v87_v8  ;;  %v22_v22 = vld [vmem:[%s896_s0 + $0x40] sm:$0xff]  ;;  %v25_v29 = vld [vmem:[%s896_s0 + $0x58] sm:$0xff]  ;;  %v27_v35 = vld [vmem:[%s896_s0 + $0x68] sm:$0xff] }
   0x6   :  { %v159_v20 = vadd.f32 %v385_v2, %v88_v9  ;;  %v161_v25 = vadd.f32 %v385_v2, %v90_v15  ;;  %v162_v26 = vadd.f32 %v385_v2, %v91_v16  ;;  %v163_v33 = vadd.f32 %v385_v2, %v92_v21  ;;  %v26_v34 = vld [vmem:[%s896_s0 + $0x60] sm:$0xff]  ;;  %v28_v36 = vld [vmem:[%s896_s0 + $0x70] sm:$0xff]  ;;  %v29_v41 = vld [vmem:[%s896_s0 + $0x78] sm:$0xff] }
   0x7   :  { %v220_v23 = vmax.f32 %v156_v13, 0.0  ;;  %v160_v24 = vadd.f32 %v385_v2, %v89_v14  ;;  %v221_v30 = vmax.f32 %v157_v18, 0.0  ;;  %v222_v31 = vmax.f32 %v158_v19, 0.0  ;;  %v30_v54 = vld [vmem:[%s896_s0 + $0x80] sm:$0xff]  ;;  %v31_v59 = vld [vmem:[%s896_s0 + $0x88] sm:$0xff]  ;;  %v32_v60 = vld [vmem:[%s896_s0 + $0x90] sm:$0xff] }
   0x8   :  { %v223_v32 = vmax.f32 %v159_v20, 0.0  ;;  %v225_v38 = vmax.f32 %v161_v25, 0.0  ;;  %v226_v39 = vmax.f32 %v162_v26, 0.0  ;;  %v93_v40 = vmul.f32 %v380_v1, %v22_v22  ;;  %v33_v61 = vld [vmem:[%s896_s0 + $0x98] sm:$0xff]  ;;  %v34_v4 = vld [vmem:[%s896_s0 + $0xa0] sm:$0xff]  ;;  %v35_v5 = vld [vmem:[%s896_s0 + $0xa8] sm:$0xff] }
   0x9   :  { %284 = vst [vmem:[%s899_s3] sm:$0xff] %v220_v23  ;;  %v224_v37 = vmax.f32 %v160_v24, 0.0  ;;  %285 = vst [vmem:[%s899_s3 + $0x8] sm:$0xff] %v221_v30  ;;  %v227_v42 = vmax.f32 %v163_v33, 0.0  ;;  %v94_v43 = vmul.f32 %v380_v1, %v23_v27  ;;  %v95_v44 = vmul.f32 %v380_v1, %v24_v28  ;;  %v36_v6 = vld [vmem:[%s896_s0 + $0xb0] sm:$0xff]  ;;  %v37_v11 = vld [vmem:[%s896_s0 + $0xb8] sm:$0xff] }
   0xa   :  { %286 = vst [vmem:[%s899_s3 + $0x10] sm:$0xff] %v222_v31  ;;  %287 = vst [vmem:[%s899_s3 + $0x18] sm:$0xff] %v223_v32  ;;  %v96_v45 = vmul.f32 %v380_v1, %v25_v29  ;;  %v164_v46 = vadd.f32 %v385_v2, %v93_v40  ;;  %v97_v47 = vmul.f32 %v380_v1, %v26_v34  ;;  %v38_v24 = vld [vmem:[%s896_s0 + $0xc0] sm:$0xff]  ;;  %v39_v29 = vld [vmem:[%s896_s0 + $0xc8] sm:$0xff] }
   0xb   :  { %288 = vst [vmem:[%s899_s3 + $0x20] sm:$0xff] %v224_v37  ;;  %289 = vst [vmem:[%s899_s3 + $0x28] sm:$0xff] %v225_v38  ;;  %v98_v48 = vmul.f32 %v380_v1, %v27_v35  ;;  %v99_v49 = vmul.f32 %v380_v1, %v28_v36  ;;  %v165_v50 = vadd.f32 %v385_v2, %v94_v43  ;;  %v40_v30 = vld [vmem:[%s896_s0 + $0xd0] sm:$0xff]  ;;  %v41_v31 = vld [vmem:[%s896_s0 + $0xd8] sm:$0xff] }
   0xc   :  { %290 = vst [vmem:[%s899_s3 + $0x30] sm:$0xff] %v226_v39  ;;  %291 = vst [vmem:[%s899_s3 + $0x38] sm:$0xff] %v227_v42  ;;  %v166_v51 = vadd.f32 %v385_v2, %v95_v44  ;;  %v167_v52 = vadd.f32 %v385_v2, %v96_v45  ;;  %v100_v53 = vmul.f32 %v380_v1, %v29_v41  ;;  %v228_v55 = vmax.f32 %v164_v46, 0.0  ;;  %v42_v36 = vld [vmem:[%s896_s0 + $0xe0] sm:$0xff]  ;;  %v43_v37 = vld [vmem:[%s896_s0 + $0xe8] sm:$0xff] }
   0xd   :  { %v168_v56 = vadd.f32 %v385_v2, %v97_v47  ;;  %v169_v57 = vadd.f32 %v385_v2, %v98_v48  ;;  %v170_v58 = vadd.f32 %v385_v2, %v99_v49  ;;  %v229_v62 = vmax.f32 %v165_v50, 0.0  ;;  %v44_v38 = vld [vmem:[%s896_s0 + $0xf0] sm:$0xff]  ;;  %v45_v43 = vld [vmem:[%s896_s0 + $0xf8] sm:$0xff] }
   0xe   :  { %v230_v63 = vmax.f32 %v166_v51, 0.0  ;;  %v231_v0 = vmax.f32 %v167_v52, 0.0  ;;  %v171_v3 = vadd.f32 %v385_v2, %v100_v53  ;;  %292 = vst [vmem:[%s899_s3 + $0x40] sm:$0xff] %v228_v55  ;;  %v101_v10 = vmul.f32 %v380_v1, %v30_v54 }
   0xf   :  { %v232_v7 = vmax.f32 %v168_v56, 0.0  ;;  %v233_v8 = vmax.f32 %v169_v57, 0.0  ;;  %v234_v9 = vmax.f32 %v170_v58, 0.0  ;;  %293 = vst [vmem:[%s899_s3 + $0x48] sm:$0xff] %v229_v62  ;;  %v102_v13 = vmul.f32 %v380_v1, %v31_v59  ;;  %v46_v56 = vld [vmem:[%s896_s0 + $0x100] sm:$0xff]  ;;  %v48_v62 = vld [vmem:[%s896_s0 + $0x110] sm:$0xff] }
  0x10   :  { %294 = vst [vmem:[%s899_s3 + $0x50] sm:$0xff] %v230_v63  ;;  %295 = vst [vmem:[%s899_s3 + $0x58] sm:$0xff] %v231_v0  ;;  %v235_v12 = vmax.f32 %v171_v3, 0.0  ;;  %v103_v14 = vmul.f32 %v380_v1, %v32_v60  ;;  %v104_v15 = vmul.f32 %v380_v1, %v33_v61  ;;  %v172_v16 = vadd.f32 %v385_v2, %v101_v10  ;;  %v47_v61 = vld [vmem:[%s896_s0 + $0x108] sm:$0xff]  ;;  %v49_v63 = vld [vmem:[%s896_s0 + $0x118] sm:$0xff] }
  0x11   :  { %296 = vst [vmem:[%s899_s3 + $0x60] sm:$0xff] %v232_v7  ;;  %297 = vst [vmem:[%s899_s3 + $0x68] sm:$0xff] %v233_v8  ;;  %v105_v17 = vmul.f32 %v380_v1, %v34_v4  ;;  %v106_v18 = vmul.f32 %v380_v1, %v35_v5  ;;  %v107_v19 = vmul.f32 %v380_v1, %v36_v6  ;;  %v50_v6 = vld [vmem:[%s896_s0 + $0x120] sm:$0xff]  ;;  %v51_v7 = vld [vmem:[%s896_s0 + $0x128] sm:$0xff] }
  0x12   :  { %298 = vst [vmem:[%s899_s3 + $0x70] sm:$0xff] %v234_v9  ;;  %299 = vst [vmem:[%s899_s3 + $0x78] sm:$0xff] %v235_v12  ;;  %v173_v20 = vadd.f32 %v385_v2, %v102_v13  ;;  %v174_v21 = vadd.f32 %v385_v2, %v103_v14  ;;  %v175_v22 = vadd.f32 %v385_v2, %v104_v15  ;;  %v236_v25 = vmax.f32 %v172_v16, 0.0  ;;  %v52_v8 = vld [vmem:[%s896_s0 + $0x130] sm:$0xff]  ;;  %v53_v13 = vld [vmem:[%s896_s0 + $0x138] sm:$0xff] }
  0x13   :  { %v108_v23 = vmul.f32 %v380_v1, %v37_v11  ;;  %v176_v26 = vadd.f32 %v385_v2, %v105_v17  ;;  %v177_v27 = vadd.f32 %v385_v2, %v106_v18  ;;  %v178_v28 = vadd.f32 %v385_v2, %v107_v19 }
  0x14   :  { %v237_v32 = vmax.f32 %v173_v20, 0.0  ;;  %v238_v33 = vmax.f32 %v174_v21, 0.0  ;;  %v239_v34 = vmax.f32 %v175_v22, 0.0  ;;  %300 = vst [vmem:[%s899_s3 + $0x80] sm:$0xff] %v236_v25  ;;  %v109_v42 = vmul.f32 %v380_v1, %v38_v24 }
  0x15   :  { %v179_v35 = vadd.f32 %v385_v2, %v108_v23  ;;  %v240_v39 = vmax.f32 %v176_v26, 0.0  ;;  %v241_v40 = vmax.f32 %v177_v27, 0.0  ;;  %v242_v41 = vmax.f32 %v178_v28, 0.0  ;;  %v54_v26 = vld [vmem:[%s896_s0 + $0x140] sm:$0xff] }
  0x16   :  { %301 = vst [vmem:[%s899_s3 + $0x88] sm:$0xff] %v237_v32  ;;  %302 = vst [vmem:[%s899_s3 + $0x90] sm:$0xff] %v238_v33  ;;  %v110_v45 = vmul.f32 %v380_v1, %v39_v29  ;;  %v111_v46 = vmul.f32 %v380_v1, %v40_v30  ;;  %v112_v47 = vmul.f32 %v380_v1, %v41_v31  ;;  %v55_v31 = vld [vmem:[%s896_s0 + $0x148] sm:$0xff]  ;;  %v56_v32 = vld [vmem:[%s896_s0 + $0x150] sm:$0xff] }
  0x17   :  { %303 = vst [vmem:[%s899_s3 + $0x98] sm:$0xff] %v239_v34  ;;  %v243_v44 = vmax.f32 %v179_v35, 0.0  ;;  %304 = vst [vmem:[%s899_s3 + $0xa0] sm:$0xff] %v240_v39  ;;  %v180_v48 = vadd.f32 %v385_v2, %v109_v42  ;;  %v113_v49 = vmul.f32 %v380_v1, %v42_v36  ;;  %v114_v50 = vmul.f32 %v380_v1, %v43_v37  ;;  %v57_v33 = vld [vmem:[%s896_s0 + $0x158] sm:$0xff]  ;;  %v59_v39 = vld [vmem:[%s896_s0 + $0x168] sm:$0xff] }
  0x18   :  { %305 = vst [vmem:[%s899_s3 + $0xa8] sm:$0xff] %v241_v40  ;;  %306 = vst [vmem:[%s899_s3 + $0xb0] sm:$0xff] %v242_v41  ;;  %v115_v51 = vmul.f32 %v380_v1, %v44_v38  ;;  %v181_v52 = vadd.f32 %v385_v2, %v110_v45  ;;  %v182_v53 = vadd.f32 %v385_v2, %v111_v46  ;;  %v58_v38 = vld [vmem:[%s896_s0 + $0x160] sm:$0xff]  ;;  %v60_v40 = vld [vmem:[%s896_s0 + $0x170] sm:$0xff] }
  0x19   :  { %307 = vst [vmem:[%s899_s3 + $0xb8] sm:$0xff] %v243_v44  ;;  %v183_v54 = vadd.f32 %v385_v2, %v112_v47  ;;  %v116_v55 = vmul.f32 %v380_v1, %v45_v43  ;;  %v244_v57 = vmax.f32 %v180_v48, 0.0  ;;  %v184_v58 = vadd.f32 %v385_v2, %v113_v49  ;;  %v61_v45 = vld [vmem:[%s896_s0 + $0x178] sm:$0xff] }
  0x1a   :  { %v185_v59 = vadd.f32 %v385_v2, %v114_v50  ;;  %v186_v60 = vadd.f32 %v385_v2, %v115_v51  ;;  %v245_v0 = vmax.f32 %v181_v52, 0.0  ;;  %v246_v3 = vmax.f32 %v182_v53, 0.0 }
  0x1b   :  { %v247_v4 = vmax.f32 %v183_v54, 0.0  ;;  %v187_v5 = vadd.f32 %v385_v2, %v116_v55  ;;  %308 = vst [vmem:[%s899_s3 + $0xc0] sm:$0xff] %v244_v57  ;;  %v248_v9 = vmax.f32 %v184_v58, 0.0  ;;  %v117_v12 = vmul.f32 %v380_v1, %v46_v56  ;;  %v62_v58 = vld [vmem:[%s896_s0 + $0x180] sm:$0xff] }
  0x1c   :  { %v249_v10 = vmax.f32 %v185_v59, 0.0  ;;  %v250_v11 = vmax.f32 %v186_v60, 0.0  ;;  %309 = vst [vmem:[%s899_s3 + $0xc8] sm:$0xff] %v245_v0  ;;  %310 = vst [vmem:[%s899_s3 + $0xd0] sm:$0xff] %v246_v3  ;;  %v118_v15 = vmul.f32 %v380_v1, %v47_v61  ;;  %v119_v16 = vmul.f32 %v380_v1, %v48_v62  ;;  %v64_v0 = vld [vmem:[%s896_s0 + $0x190] sm:$0xff]  ;;  %v65_v3 = vld [vmem:[%s896_s0 + $0x198] sm:$0xff] }
  0x1d   :  { %311 = vst [vmem:[%s899_s3 + $0xd8] sm:$0xff] %v247_v4  ;;  %v251_v14 = vmax.f32 %v187_v5, 0.0  ;;  %v120_v17 = vmul.f32 %v380_v1, %v49_v63  ;;  %312 = vst [vmem:[%s899_s3 + $0xe0] sm:$0xff] %v248_v9  ;;  %v188_v18 = vadd.f32 %v385_v2, %v117_v12  ;;  %v121_v19 = vmul.f32 %v380_v1, %v50_v6  ;;  %v63_v63 = vld [vmem:[%s896_s0 + $0x188] sm:$0xff] }
  0x1e   :  { %313 = vst [vmem:[%s899_s3 + $0xe8] sm:$0xff] %v249_v10  ;;  %314 = vst [vmem:[%s899_s3 + $0xf0] sm:$0xff] %v250_v11  ;;  %v122_v20 = vmul.f32 %v380_v1, %v51_v7  ;;  %v123_v21 = vmul.f32 %v380_v1, %v52_v8  ;;  %v189_v22 = vadd.f32 %v385_v2, %v118_v15  ;;  %v66_v8 = vld [vmem:[%s896_s0 + $0x1a0] sm:$0xff]  ;;  %v67_v9 = vld [vmem:[%s896_s0 + $0x1a8] sm:$0xff] }
  0x1f   :  { %315 = vst [vmem:[%s899_s3 + $0xf8] sm:$0xff] %v251_v14  ;;  %v190_v23 = vadd.f32 %v385_v2, %v119_v16  ;;  %v191_v24 = vadd.f32 %v385_v2, %v120_v17  ;;  %v124_v25 = vmul.f32 %v380_v1, %v53_v13  ;;  %v252_v27 = vmax.f32 %v188_v18, 0.0  ;;  %v68_v10 = vld [vmem:[%s896_s0 + $0x1b0] sm:$0xff]  ;;  %v69_v15 = vld [vmem:[%s896_s0 + $0x1b8] sm:$0xff] }
  0x20   :  { %v192_v28 = vadd.f32 %v385_v2, %v121_v19  ;;  %v193_v29 = vadd.f32 %v385_v2, %v122_v20  ;;  %v194_v30 = vadd.f32 %v385_v2, %v123_v21  ;;  %v253_v34 = vmax.f32 %v189_v22, 0.0 }
  0x21   :  { %v254_v35 = vmax.f32 %v190_v23, 0.0  ;;  %v255_v36 = vmax.f32 %v191_v24, 0.0  ;;  %v195_v37 = vadd.f32 %v385_v2, %v124_v25  ;;  %316 = vst [vmem:[%s899_s3 + $0x100] sm:$0xff] %v252_v27  ;;  %v125_v44 = vmul.f32 %v380_v1, %v54_v26 }
  0x22   :  { %v256_v41 = vmax.f32 %v192_v28, 0.0  ;;  %v257_v42 = vmax.f32 %v193_v29, 0.0  ;;  %v258_v43 = vmax.f32 %v194_v30, 0.0  ;;  %317 = vst [vmem:[%s899_s3 + $0x108] sm:$0xff] %v253_v34  ;;  %v126_v47 = vmul.f32 %v380_v1, %v55_v31  ;;  %v70_v28 = vld [vmem:[%s896_s0 + $0x1c0] sm:$0xff]  ;;  %v72_v34 = vld [vmem:[%s896_s0 + $0x1d0] sm:$0xff] }
  0x23   :  { %318 = vst [vmem:[%s899_s3 + $0x110] sm:$0xff] %v254_v35  ;;  %319 = vst [vmem:[%s899_s3 + $0x118] sm:$0xff] %v255_v36  ;;  %v259_v46 = vmax.f32 %v195_v37, 0.0  ;;  %v127_v48 = vmul.f32 %v380_v1, %v56_v32  ;;  %v128_v49 = vmul.f32 %v380_v1, %v57_v33  ;;  %v196_v50 = vadd.f32 %v385_v2, %v125_v44  ;;  %v71_v33 = vld [vmem:[%s896_s0 + $0x1c8] sm:$0xff]  ;;  %v73_v35 = vld [vmem:[%s896_s0 + $0x1d8] sm:$0xff] }
  0x24   :  { %320 = vst [vmem:[%s899_s3 + $0x120] sm:$0xff] %v256_v41  ;;  %321 = vst [vmem:[%s899_s3 + $0x128] sm:$0xff] %v257_v42  ;;  %v129_v51 = vmul.f32 %v380_v1, %v58_v38  ;;  %v130_v52 = vmul.f32 %v380_v1, %v59_v39  ;;  %v131_v53 = vmul.f32 %v380_v1, %v60_v40  ;;  %v74_v40 = vld [vmem:[%s896_s0 + $0x1e0] sm:$0xff]  ;;  %v75_v41 = vld [vmem:[%s896_s0 + $0x1e8] sm:$0xff] }
  0x25   :  { %322 = vst [vmem:[%s899_s3 + $0x130] sm:$0xff] %v258_v43  ;;  %323 = vst [vmem:[%s899_s3 + $0x138] sm:$0xff] %v259_v46  ;;  %v197_v54 = vadd.f32 %v385_v2, %v126_v47  ;;  %v198_v55 = vadd.f32 %v385_v2, %v127_v48  ;;  %v199_v56 = vadd.f32 %v385_v2, %v128_v49  ;;  %v260_v59 = vmax.f32 %v196_v50, 0.0  ;;  %v76_v42 = vld [vmem:[%s896_s0 + $0x1f0] sm:$0xff]  ;;  %v77_v47 = vld [vmem:[%s896_s0 + $0x1f8] sm:$0xff] }
  0x26   :  { %v132_v57 = vmul.f32 %v380_v1, %v61_v45  ;;  %v200_v60 = vadd.f32 %v385_v2, %v129_v51  ;;  %v201_v61 = vadd.f32 %v385_v2, %v130_v52  ;;  %v202_v62 = vadd.f32 %v385_v2, %v131_v53 }
  0x27   :  { %v261_v4 = vmax.f32 %v197_v54, 0.0  ;;  %v262_v5 = vmax.f32 %v198_v55, 0.0  ;;  %v263_v6 = vmax.f32 %v199_v56, 0.0  ;;  %324 = vst [vmem:[%s899_s3 + $0x140] sm:$0xff] %v260_v59  ;;  %v133_v14 = vmul.f32 %v380_v1, %v62_v58 }
  0x28   :  { %v203_v7 = vadd.f32 %v385_v2, %v132_v57  ;;  %v264_v11 = vmax.f32 %v200_v60, 0.0  ;;  %v265_v12 = vmax.f32 %v201_v61, 0.0  ;;  %v266_v13 = vmax.f32 %v202_v62, 0.0 }
  0x29   :  { %325 = vst [vmem:[%s899_s3 + $0x148] sm:$0xff] %v261_v4  ;;  %326 = vst [vmem:[%s899_s3 + $0x150] sm:$0xff] %v262_v5  ;;  %v134_v17 = vmul.f32 %v380_v1, %v63_v63  ;;  %v135_v18 = vmul.f32 %v380_v1, %v64_v0  ;;  %v136_v19 = vmul.f32 %v380_v1, %v65_v3 }
  0x2a   :  { %327 = vst [vmem:[%s899_s3 + $0x158] sm:$0xff] %v263_v6  ;;  %v267_v16 = vmax.f32 %v203_v7, 0.0  ;;  %328 = vst [vmem:[%s899_s3 + $0x160] sm:$0xff] %v264_v11  ;;  %v204_v20 = vadd.f32 %v385_v2, %v133_v14  ;;  %v137_v21 = vmul.f32 %v380_v1, %v66_v8  ;;  %v138_v22 = vmul.f32 %v380_v1, %v67_v9 }
  0x2b   :  { %329 = vst [vmem:[%s899_s3 + $0x168] sm:$0xff] %v265_v12  ;;  %330 = vst [vmem:[%s899_s3 + $0x170] sm:$0xff] %v266_v13  ;;  %v139_v23 = vmul.f32 %v380_v1, %v68_v10  ;;  %v205_v24 = vadd.f32 %v385_v2, %v134_v17  ;;  %v206_v25 = vadd.f32 %v385_v2, %v135_v18 }
  0x2c   :  { %331 = vst [vmem:[%s899_s3 + $0x178] sm:$0xff] %v267_v16  ;;  %v207_v26 = vadd.f32 %v385_v2, %v136_v19  ;;  %v140_v27 = vmul.f32 %v380_v1, %v69_v15  ;;  %v268_v29 = vmax.f32 %v204_v20, 0.0  ;;  %v208_v30 = vadd.f32 %v385_v2, %v137_v21 }
  0x2d   :  { %v209_v31 = vadd.f32 %v385_v2, %v138_v22  ;;  %v210_v32 = vadd.f32 %v385_v2, %v139_v23  ;;  %v269_v36 = vmax.f32 %v205_v24, 0.0  ;;  %v270_v37 = vmax.f32 %v206_v25, 0.0 }
  0x2e   :  { %v271_v38 = vmax.f32 %v207_v26, 0.0  ;;  %v211_v39 = vadd.f32 %v385_v2, %v140_v27  ;;  %332 = vst [vmem:[%s899_s3 + $0x180] sm:$0xff] %v268_v29  ;;  %v272_v43 = vmax.f32 %v208_v30, 0.0  ;;  %v141_v46 = vmul.f32 %v380_v1, %v70_v28 }
  0x2f   :  { %v273_v44 = vmax.f32 %v209_v31, 0.0  ;;  %v274_v45 = vmax.f32 %v210_v32, 0.0  ;;  %333 = vst [vmem:[%s899_s3 + $0x188] sm:$0xff] %v269_v36  ;;  %334 = vst [vmem:[%s899_s3 + $0x190] sm:$0xff] %v270_v37  ;;  %v142_v49 = vmul.f32 %v380_v1, %v71_v33  ;;  %v143_v50 = vmul.f32 %v380_v1, %v72_v34 }
  0x30   :  { %335 = vst [vmem:[%s899_s3 + $0x198] sm:$0xff] %v271_v38  ;;  %v275_v48 = vmax.f32 %v211_v39, 0.0  ;;  %v144_v51 = vmul.f32 %v380_v1, %v73_v35  ;;  %336 = vst [vmem:[%s899_s3 + $0x1a0] sm:$0xff] %v272_v43  ;;  %v212_v52 = vadd.f32 %v385_v2, %v141_v46  ;;  %v145_v53 = vmul.f32 %v380_v1, %v74_v40 }
  0x31   :  { %337 = vst [vmem:[%s899_s3 + $0x1a8] sm:$0xff] %v273_v44  ;;  %338 = vst [vmem:[%s899_s3 + $0x1b0] sm:$0xff] %v274_v45  ;;  %v146_v54 = vmul.f32 %v380_v1, %v75_v41  ;;  %v147_v55 = vmul.f32 %v380_v1, %v76_v42  ;;  %v213_v56 = vadd.f32 %v385_v2, %v142_v49 }
  0x32   :  { %339 = vst [vmem:[%s899_s3 + $0x1b8] sm:$0xff] %v275_v48  ;;  %v214_v57 = vadd.f32 %v385_v2, %v143_v50  ;;  %v215_v58 = vadd.f32 %v385_v2, %v144_v51  ;;  %v148_v59 = vmul.f32 %v380_v1, %v77_v47  ;;  %v276_v60 = vmax.f32 %v212_v52, 0.0 }
  0x33   :  { %v216_v61 = vadd.f32 %v385_v2, %v145_v53  ;;  %v217_v62 = vadd.f32 %v385_v2, %v146_v54  ;;  %v218_v63 = vadd.f32 %v385_v2, %v147_v55  ;;  %v277_v0 = vmax.f32 %v213_v56, 0.0 }
  0x34   :  { %v278_v3 = vmax.f32 %v214_v57, 0.0  ;;  %v279_v4 = vmax.f32 %v215_v58, 0.0  ;;  %v219_v5 = vadd.f32 %v385_v2, %v148_v59  ;;  %340 = vst [vmem:[%s899_s3 + $0x1c0] sm:$0xff] %v276_v60 }
  0x35   :  { %v280_v6 = vmax.f32 %v216_v61, 0.0  ;;  %v281_v7 = vmax.f32 %v217_v62, 0.0  ;;  %v282_v8 = vmax.f32 %v218_v63, 0.0  ;;  %341 = vst [vmem:[%s899_s3 + $0x1c8] sm:$0xff] %v277_v0 }
  0x36   :  { %342 = vst [vmem:[%s899_s3 + $0x1d0] sm:$0xff] %v278_v3  ;;  %343 = vst [vmem:[%s899_s3 + $0x1d8] sm:$0xff] %v279_v4  ;;  %v283_v1 = vmax.f32 %v219_v5, 0.0 }
  0x37   :  { %344 = vst [vmem:[%s899_s3 + $0x1e0] sm:$0xff] %v280_v6  ;;  %345 = vst [vmem:[%s899_s3 + $0x1e8] sm:$0xff] %v281_v7 }
  0x38   :  { %346 = vst [vmem:[%s899_s3 + $0x1f0] sm:$0xff] %v282_v8  ;;  %347 = vst [vmem:[%s899_s3 + $0x1f8] sm:$0xff] %v283_v1 }

// kernel: generator_forward.12
= control target key start
LH: loop header
LB: loop body
LE: loop exit
PB: predicated region body
PF: predicated region fallthrough
CT: control target
= control target key end

     0   :  { %v2346_v0 = vmov 0   ;;  %s3082_s1 = inlined_call_operand.vmem [shape: bf16[512,128], index: 1, kind: input, shape index: {}]   ;;  %s3083_s0 = inlined_call_operand.vmem [shape: bf16[512,512], index: 0, kind: input, shape index: {}]   ;;  %s3084_s2 = inlined_call_operand.vmem [shape: f32[512,128], index: 2, kind: output, shape index: {0}]   ;;  %s3085_s3 = inlined_call_operand.vmem [shape: f32[1,1,128], index: 3, kind: output, shape index: {1}]   ;;  %s3086_s4 = inlined_call_operand.vmem [shape: f32[1,1,128], index: 4, kind: output, shape index: {2}]  }
   0x1   :  { %1039 = vmatprep.subr.bf16.mxu1 %v2346_v0  ;;  %1328 = vmatprep.subr.bf16.mxu0 %v2346_v0  ;;  %v2122_v1 = vld [vmem:[%s3082_s1] sm:$0xff]   ;;  %v2124_v3 = vld [vmem:[%s3082_s1 + $0x8] sm:$0xff]   ;;  %v2126_v5 = vld [vmem:[%s3082_s1 + $0x10] sm:$0xff]  }
   0x2   :  { %v2123_v2 = vld [vmem:[%s3082_s1 + $0x80] sm:$0xff]   ;;  %1040 = vmatpush1.bf16.msra.mxu1 %v2122_v1  ;;  %v2125_v4 = vld [vmem:[%s3082_s1 + $0x88] sm:$0xff]   ;;  %v2127_v6 = vld [vmem:[%s3082_s1 + $0x90] sm:$0xff]  }
   0x3   :  { %1329 = vmatpush1.bf16.msra.mxu0 %v2123_v2  ;;  %1041 = vmatprep.subr.bf16.mxu1 %v2346_v0  ;;  %v2128_v7 = vld [vmem:[%s3082_s1 + $0x18] sm:$0xff]   ;;  %v2130_v9 = vld [vmem:[%s3082_s1 + $0x20] sm:$0xff]   ;;  %v2132_v11 = vld [vmem:[%s3082_s1 + $0x28] sm:$0xff]  }
   0x4   :  { %1330 = vmatprep.subr.bf16.mxu0 %v2346_v0  ;;  %v2129_v8 = vld [vmem:[%s3082_s1 + $0x98] sm:$0xff]   ;;  %v2131_v10 = vld [vmem:[%s3082_s1 + $0xa0] sm:$0xff]   ;;  %v2133_v12 = vld [vmem:[%s3082_s1 + $0xa8] sm:$0xff]  }
   0x5   :  { %v2134_v13 = vld [vmem:[%s3082_s1 + $0x30] sm:$0xff]   ;;  %v2136_v15 = vld [vmem:[%s3082_s1 + $0x38] sm:$0xff]   ;;  %v2138_v17 = vld [vmem:[%s3082_s1 + $0x40] sm:$0xff]  }
   0x6   :  { %1042 = vmatpush1.bf16.msra.mxu1 %v2124_v3  ;;  %v2135_v14 = vld [vmem:[%s3082_s1 + $0xb0] sm:$0xff]   ;;  %v2137_v16 = vld [vmem:[%s3082_s1 + $0xb8] sm:$0xff]   ;;  %v2139_v18 = vld [vmem:[%s3082_s1 + $0xc0] sm:$0xff]  }
   0x7   :  { %1331 = vmatpush1.bf16.msra.mxu0 %v2125_v4  ;;  %1043 = vmatprep.subr.bf16.mxu1 %v2346_v0  ;;  %v2156_v19 = vld [vmem:[%s3083_s0 + $0x4] ss:$16 sps:$4 sm:$0xff]   ;;  %v2140_v20 = vld [vmem:[%s3082_s1 + $0x48] sm:$0xff]   ;;  %v2144_v25 = vld [vmem:[%s3082_s1 + $0x58] sm:$0xff]  }
   0x8   :  { %1332 = vmatprep.subr.bf16.mxu0 %v2346_v0  ;;  %v2159_v21 = vld [vmem:[%s3083_s0 + $0xc] ss:$16 sps:$4 sm:$0xff]   ;;  %1071 = vmatprep.mubr.bf16.mxu1 %v2156_v19  ;;  %v2142_v23 = vld [vmem:[%s3082_s1 + $0x50] sm:$0xff]   ;;  %v2146_v27 = vld [vmem:[%s3082_s1 + $0x60] sm:$0xff]  }
   0x9   :  { %v2141_v22 = vld [vmem:[%s3082_s1 + $0xc8] sm:$0xff]   ;;  %1360 = vmatprep.mubr.bf16.mxu0 %v2159_v21  ;;  %v2143_v24 = vld [vmem:[%s3082_s1 + $0xd0] sm:$0xff]   ;;  %v2145_v26 = vld [vmem:[%s3082_s1 + $0xd8] sm:$0xff]  }
   0xa   :  { %1044 = vmatpush1.bf16.msra.mxu1 %v2126_v5  ;;  %v2147_v28 = vld [vmem:[%s3082_s1 + $0xe0] sm:$0xff]   ;;  %v2148_v29 = vld [vmem:[%s3082_s1 + $0x68] sm:$0xff]   ;;  %v2150_v31 = vld [vmem:[%s3082_s1 + $0x70] sm:$0xff]  }
   0xb   :  { %1333 = vmatpush1.bf16.msra.mxu0 %v2127_v6  ;;  %1045 = vmatprep.subr.bf16.mxu1 %v2346_v0  ;;  %v2149_v30 = vld [vmem:[%s3082_s1 + $0xe8] sm:$0xff]   ;;  %v2151_v32 = vld [vmem:[%s3082_s1 + $0xf0] sm:$0xff]   ;;  %v2152_v33 = vld [vmem:[%s3082_s1 + $0x78] sm:$0xff]  }
   0xc   :  { %1334 = vmatprep.subr.bf16.mxu0 %v2346_v0  ;;  %v2153_v34 = vld [vmem:[%s3082_s1 + $0xf8] sm:$0xff]   ;;  %v2154_v35 = vld [vmem:[%s3083_s0] ss:$16 sps:$4 sm:$0xff]   ;;  %v2160_v37 = vld [vmem:[%s3083_s0 + $0x24] ss:$16 sps:$4 sm:$0xff]  }
   0xd   :  { %v2157_v36 = vld [vmem:[%s3083_s0 + $0x8] ss:$16 sps:$4 sm:$0xff]   ;;  %v2162_v38 = vld [vmem:[%s3083_s0 + $0x2c] ss:$16 sps:$4 sm:$0xff]   ;;  %v2164_v39 = vld [vmem:[%s3083_s0 + $0x20] ss:$16 sps:$4 sm:$0xff]  }
   0xe   :  { %1046 = vmatpush1.bf16.msra.mxu1 %v2128_v7  ;;  %v2165_v40 = vld [vmem:[%s3083_s0 + $0x28] ss:$16 sps:$4 sm:$0xff]   ;;  %v2166_v41 = vld [vmem:[%s3083_s0 + $0x44] ss:$16 sps:$4 sm:$0xff]   ;;  %v2168_v42 = vld [vmem:[%s3083_s0 + $0x4c] ss:$16 sps:$4 sm:$0xff]  }
   0xf   :  { %1335 = vmatpush1.bf16.msra.mxu0 %v2129_v8  ;;  %1047 = vmatprep.subr.bf16.mxu1 %v2346_v0  ;;  %v2170_v43 = vld [vmem:[%s3083_s0 + $0x40] ss:$16 sps:$4 sm:$0xff]   ;;  %v2171_v44 = vld [vmem:[%s3083_s0 + $0x48] ss:$16 sps:$4 sm:$0xff]   ;;  %v2172_v45 = vld [vmem:[%s3083_s0 + $0x64] ss:$16 sps:$4 sm:$0xff]  }
  0x10   :  { %1336 = vmatprep.subr.bf16.mxu0 %v2346_v0  ;;  %v2174_v46 = vld [vmem:[%s3083_s0 + $0x6c] ss:$16 sps:$4 sm:$0xff]   ;;  %v2176_v47 = vld [vmem:[%s3083_s0 + $0x60] ss:$16 sps:$4 sm:$0xff]   ;;  %v2177_v48 = vld [vmem:[%s3083_s0 + $0x68] ss:$16 sps:$4 sm:$0xff]  }
  0x11   :  { %v2178_v49 = vld [vmem:[%s3083_s0 + $0x84] ss:$16 sps:$4 sm:$0xff]   ;;  %v2180_v50 = vld [vmem:[%s3083_s0 + $0x8c] ss:$16 sps:$4 sm:$0xff]   ;;  %v2182_v51 = vld [vmem:[%s3083_s0 + $0x80] ss:$16 sps:$4 sm:$0xff]  }
  0x12   :  { %1048 = vmatpush1.bf16.msra.mxu1 %v2130_v9  ;;  %v2183_v52 = vld [vmem:[%s3083_s0 + $0x88] ss:$16 sps:$4 sm:$0xff]   ;;  %v2184_v53 = vld [vmem:[%s3083_s0 + $0xa4] ss:$16 sps:$4 sm:$0xff]   ;;  %v2186_v54 = vld [vmem:[%s3083_s0 + $0xac] ss:$16 sps:$4 sm:$0xff]  }
  0x13   :  { %1337 = vmatpush1.bf16.msra.mxu0 %v2131_v10  ;;  %1049 = vmatprep.subr.bf16.mxu1 %v2346_v0  ;;  %v2188_v55 = vld [vmem:[%s3083_s0 + $0xa0] ss:$16 sps:$4 sm:$0xff]   ;;  %v2189_v56 = vld [vmem:[%s3083_s0 + $0xa8] ss:$16 sps:$4 sm:$0xff]   ;;  %v2190_v57 = vld [vmem:[%s3083_s0 + $0xc4] ss:$16 sps:$4 sm:$0xff]  }
  0x14   :  { %1338 = vmatprep.subr.bf16.mxu0 %v2346_v0  ;;  %v2192_v58 = vld [vmem:[%s3083_s0 + $0xcc] ss:$16 sps:$4 sm:$0xff]   ;;  %v2194_v59 = vld [vmem:[%s3083_s0 + $0xc0] ss:$16 sps:$4 sm:$0xff]   ;;  %v2195_v60 = vld [vmem:[%s3083_s0 + $0xc8] ss:$16 sps:$4 sm:$0xff]  }
  0x15   :  { %v2196_v61 = vld [vmem:[%s3083_s0 + $0xe4] ss:$16 sps:$4 sm:$0xff]   ;;  %v2198_v62 = vld [vmem:[%s3083_s0 + $0xec] ss:$16 sps:$4 sm:$0xff]   ;;  %v2200_v63 = vld [vmem:[%s3083_s0 + $0xe0] ss:$16 sps:$4 sm:$0xff]  }
  0x16   :  { %1050 = vmatpush1.bf16.msra.mxu1 %v2132_v11  ;;  %v2202_v1 = vld [vmem:[%s3083_s0 + $0x104] ss:$16 sps:$4 sm:$0xff]   ;;  %v2204_v2 = vld [vmem:[%s3083_s0 + $0x10c] ss:$16 sps:$4 sm:$0xff]   ;;  %v2206_v3 = vld [vmem:[%s3083_s0 + $0x100] ss:$16 sps:$4 sm:$0xff]  }
  0x17   :  { %1339 = vmatpush1.bf16.msra.mxu0 %v2133_v12  ;;  %1051 = vmatprep.subr.bf16.mxu1 %v2346_v0  ;;  %v2207_v4 = vld [vmem:[%s3083_s0 + $0x108] ss:$16 sps:$4 sm:$0xff]   ;;  %v2208_v5 = vld [vmem:[%s3083_s0 + $0x124] ss:$16 sps:$4 sm:$0xff]   ;;  %v2210_v6 = vld [vmem:[%s3083_s0 + $0x12c] ss:$16 sps:$4 sm:$0xff]  }
  0x18   :  { %1340 = vmatprep.subr.bf16.mxu0 %v2346_v0  ;;  %v2212_v7 = vld [vmem:[%s3083_s0 + $0x120] ss:$16 sps:$4 sm:$0xff]   ;;  %v2213_v8 = vld [vmem:[%s3083_s0 + $0x128] ss:$16 sps:$4 sm:$0xff]   ;;  %v2214_v9 = vld [vmem:[%s3083_s0 + $0x144] ss:$16 sps:$4 sm:$0xff]  }
  0x19   :  { %v2216_v10 = vld [vmem:[%s3083_s0 + $0x14c] ss:$16 sps:$4 sm:$0xff]   ;;  %v2218_v11 = vld [vmem:[%s3083_s0 + $0x140] ss:$16 sps:$4 sm:$0xff]   ;;  %v2219_v12 = vld [vmem:[%s3083_s0 + $0x148] ss:$16 sps:$4 sm:$0xff]  }
  0x1a   :  { %1052 = vmatpush1.bf16.msra.mxu1 %v2134_v13  ;;  %v2220_v13 = vld [vmem:[%s3083_s0 + $0x164] ss:$16 sps:$4 sm:$0xff]   ;;  %v2230_v19 = vld [vmem:[%s3083_s0 + $0x180] ss:$16 sps:$4 sm:$0xff]  }
  0x1b   :  { %1341 = vmatpush1.bf16.msra.mxu0 %v2135_v14  ;;  %1053 = vmatprep.subr.bf16.mxu1 %v2346_v0  ;;  %v2222_v14 = vld [vmem:[%s3083_s0 + $0x16c] ss:$16 sps:$4 sm:$0xff]   ;;  %v2232_v21 = vld [vmem:[%s3083_s0 + $0x1a4] ss:$16 sps:$4 sm:$0xff]  }
  0x1c   :  { %1342 = vmatprep.subr.bf16.mxu0 %v2346_v0 }
  0x1e   :  { %1054 = vmatpush1.bf16.msra.mxu1 %v2136_v15  ;;  %v2224_v15 = vld [vmem:[%s3083_s0 + $0x160] ss:$16 sps:$4 sm:$0xff]  }
  0x1f   :  { %1343 = vmatpush1.bf16.msra.mxu0 %v2137_v16  ;;  %1055 = vmatprep.subr.bf16.mxu1 %v2346_v0  ;;  %v2225_v16 = vld [vmem:[%s3083_s0 + $0x168] ss:$16 sps:$4 sm:$0xff]  }
  0x20   :  { %1344 = vmatprep.subr.bf16.mxu0 %v2346_v0 }
  0x22   :  { %1056 = vmatpush1.bf16.msra.mxu1 %v2138_v17  ;;  %v2226_v17 = vld [vmem:[%s3083_s0 + $0x184] ss:$16 sps:$4 sm:$0xff]  }
  0x23   :  { %1345 = vmatpush1.bf16.msra.mxu0 %v2139_v18  ;;  %1057 = vmatprep.subr.bf16.mxu1 %v2346_v0  ;;  %v2228_v18 = vld [vmem:[%s3083_s0 + $0x18c] ss:$16 sps:$4 sm:$0xff]  }
  0x24   :  { %1346 = vmatprep.subr.bf16.mxu0 %v2346_v0 }
  0x26   :  { %1058 = vmatpush1.bf16.msra.mxu1 %v2140_v20  ;;  %v2231_v20 = vld [vmem:[%s3083_s0 + $0x188] ss:$16 sps:$4 sm:$0xff]  }
  0x27   :  { %1347 = vmatpush1.bf16.msra.mxu0 %v2141_v22  ;;  %1059 = vmatprep.subr.bf16.mxu1 %v2346_v0  ;;  %v2234_v22 = vld [vmem:[%s3083_s0 + $0x1ac] ss:$16 sps:$4 sm:$0xff]  }
  0x28   :  { %1348 = vmatprep.subr.bf16.mxu0 %v2346_v0 }
  0x2a   :  { %1060 = vmatpush1.bf16.msra.mxu1 %v2142_v23  ;;  %v2236_v23 = vld [vmem:[%s3083_s0 + $0x1a0] ss:$16 sps:$4 sm:$0xff]  }
  0x2b   :  { %1349 = vmatpush1.bf16.msra.mxu0 %v2143_v24  ;;  %1061 = vmatprep.subr.bf16.mxu1 %v2346_v0  ;;  %v2237_v24 = vld [vmem:[%s3083_s0 + $0x1a8] ss:$16 sps:$4 sm:$0xff]  }
  0x2c   :  { %1350 = vmatprep.subr.bf16.mxu0 %v2346_v0 }
  0x2e   :  { %1062 = vmatpush1.bf16.msra.mxu1 %v2144_v25  ;;  %v2238_v25 = vld [vmem:[%s3083_s0 + $0x1c4] ss:$16 sps:$4 sm:$0xff]  }
  0x2f   :  { %1351 = vmatpush1.bf16.msra.mxu0 %v2145_v26  ;;  %1063 = vmatprep.subr.bf16.mxu1 %v2346_v0  ;;  %v2240_v26 = vld [vmem:[%s3083_s0 + $0x1cc] ss:$16 sps:$4 sm:$0xff]  }
  0x30   :  { %1352 = vmatprep.subr.bf16.mxu0 %v2346_v0 }
  0x32   :  { %1064 = vmatpush1.bf16.msra.mxu1 %v2146_v27  ;;  %v2242_v27 = vld [vmem:[%s3083_s0 + $0x1c0] ss:$16 sps:$4 sm:$0xff]  }
  0x33   :  { %1353 = vmatpush1.bf16.msra.mxu0 %v2147_v28  ;;  %1065 = vmatprep.subr.bf16.mxu1 %v2346_v0  ;;  %v2243_v28 = vld [vmem:[%s3083_s0 + $0x1c8] ss:$16 sps:$4 sm:$0xff]  }
  0x34   :  { %1354 = vmatprep.subr.bf16.mxu0 %v2346_v0 }
  0x36   :  { %1066 = vmatpush1.bf16.msra.mxu1 %v2148_v29  ;;  %v2244_v29 = vld [vmem:[%s3083_s0 + $0x1e4] ss:$16 sps:$4 sm:$0xff]  }
  0x37   :  { %1355 = vmatpush1.bf16.msra.mxu0 %v2149_v30  ;;  %1067 = vmatprep.subr.bf16.mxu1 %v2346_v0  ;;  %v2246_v30 = vld [vmem:[%s3083_s0 + $0x1ec] ss:$16 sps:$4 sm:$0xff]  }
  0x38   :  { %1356 = vmatprep.subr.bf16.mxu0 %v2346_v0 }
  0x3a   :  { %1068 = vmatpush1.bf16.msra.mxu1 %v2150_v31  ;;  %v2248_v31 = vld [vmem:[%s3083_s0 + $0x1e0] ss:$16 sps:$4 sm:$0xff]  }
  0x3b   :  { %1357 = vmatpush1.bf16.msra.mxu0 %v2151_v32  ;;  %1069 = vmatprep.subr.bf16.mxu1 %v2346_v0  ;;  %v2249_v32 = vld [vmem:[%s3083_s0 + $0x1e8] ss:$16 sps:$4 sm:$0xff]  }
  0x3c   :  { %1358 = vmatprep.subr.bf16.mxu0 %v2346_v0  ;;  %v2201_v0 = vld [vmem:[%s3083_s0 + $0xe8] ss:$16 sps:$4 sm:$0xff]  }
  0x3e   :  { %1070 = vmatpush1.bf16.msra.mxu1 %v2152_v33  ;;  %v2250_v33 = vld [vmem:[%s3083_s0 + $0x204] ss:$16 sps:$4 sm:$0xff]  }
  0x3f   :  { %1359 = vmatpush1.bf16.msra.mxu0 %v2153_v34  ;;  %v2252_v34 = vld [vmem:[%s3083_s0 + $0x20c] ss:$16 sps:$4 sm:$0xff]  }
  0x41   :  { %1072 = vmatmul.mubr.bf16.vlgmr.msra.gmra.mrb[0].mxu1 %v2154_v35  ;;  %v2254_v35 = vld [vmem:[%s3083_s0 + $0x200] ss:$16 sps:$4 sm:$0xff]  }
  0x42   :  { %1361 = vmatmul.mubr.bf16.vlgmr.msra.gmra.mrb[0].mxu0 %v2157_v36  ;;  %1079 = vmatprep.mubr.bf16.mxu1 %v2160_v37  ;;  %v2255_v36 = vld [vmem:[%s3083_s0 + $0x208] ss:$16 sps:$4 sm:$0xff]   ;;  %v2256_v37 = vld [vmem:[%s3083_s0 + $0x224] ss:$16 sps:$4 sm:$0xff]  }
  0x43   :  { %1368 = vmatprep.mubr.bf16.mxu0 %v2162_v38  ;;  %v2258_v38 = vld [vmem:[%s3083_s0 + $0x22c] ss:$16 sps:$4 sm:$0xff]  }
  0x49   :  { %1080 = vmatmul.mubr.bf16.gmra.mrb[4].mxu1 %v2164_v39  ;;  %v2260_v39 = vld [vmem:[%s3083_s0 + $0x220] ss:$16 sps:$4 sm:$0xff]  }
  0x4a   :  { %1369 = vmatmul.mubr.bf16.gmra.mrb[4].mxu0 %v2165_v40  ;;  %1087 = vmatprep.mubr.bf16.mxu1 %v2166_v41  ;;  %v2261_v40 = vld [vmem:[%s3083_s0 + $0x228] ss:$16 sps:$4 sm:$0xff]   ;;  %v2262_v41 = vld [vmem:[%s3083_s0 + $0x244] ss:$16 sps:$4 sm:$0xff]  }
  0x4b   :  { %1376 = vmatprep.mubr.bf16.mxu0 %v2168_v42  ;;  %v2264_v42 = vld [vmem:[%s3083_s0 + $0x24c] ss:$16 sps:$4 sm:$0xff]  }
  0x51   :  { %1088 = vmatmul.mubr.bf16.gmra.mrb[8].mxu1 %v2170_v43  ;;  %v2266_v43 = vld [vmem:[%s3083_s0 + $0x240] ss:$16 sps:$4 sm:$0xff]  }
  0x52   :  { %1377 = vmatmul.mubr.bf16.gmra.mrb[8].mxu0 %v2171_v44  ;;  %1095 = vmatprep.mubr.bf16.mxu1 %v2172_v45  ;;  %v2267_v44 = vld [vmem:[%s3083_s0 + $0x248] ss:$16 sps:$4 sm:$0xff]   ;;  %v2268_v45 = vld [vmem:[%s3083_s0 + $0x264] ss:$16 sps:$4 sm:$0xff]  }
  0x53   :  { %1384 = vmatprep.mubr.bf16.mxu0 %v2174_v46  ;;  %v2270_v46 = vld [vmem:[%s3083_s0 + $0x26c] ss:$16 sps:$4 sm:$0xff]  }
  0x59   :  { %1096 = vmatmul.mubr.bf16.gmra.mrb[12].mxu1 %v2176_v47  ;;  %v2272_v47 = vld [vmem:[%s3083_s0 + $0x260] ss:$16 sps:$4 sm:$0xff]  }
  0x5a   :  { %1385 = vmatmul.mubr.bf16.gmra.mrb[12].mxu0 %v2177_v48  ;;  %1103 = vmatprep.mubr.bf16.mxu1 %v2178_v49  ;;  %v2273_v48 = vld [vmem:[%s3083_s0 + $0x268] ss:$16 sps:$4 sm:$0xff]   ;;  %v2274_v49 = vld [vmem:[%s3083_s0 + $0x284] ss:$16 sps:$4 sm:$0xff]  }
  0x5b   :  { %1392 = vmatprep.mubr.bf16.mxu0 %v2180_v50  ;;  %v2276_v50 = vld [vmem:[%s3083_s0 + $0x28c] ss:$16 sps:$4 sm:$0xff]  }
  0x61   :  { %1104 = vmatmul.mubr.bf16.gmra.mrb[16].mxu1 %v2182_v51  ;;  %v2278_v51 = vld [vmem:[%s3083_s0 + $0x280] ss:$16 sps:$4 sm:$0xff]  }
  0x62   :  { %1393 = vmatmul.mubr.bf16.gmra.mrb[16].mxu0 %v2183_v52  ;;  %1111 = vmatprep.mubr.bf16.mxu1 %v2184_v53  ;;  %v2279_v52 = vld [vmem:[%s3083_s0 + $0x288] ss:$16 sps:$4 sm:$0xff]   ;;  %v2280_v53 = vld [vmem:[%s3083_s0 + $0x2a4] ss:$16 sps:$4 sm:$0xff]  }
  0x63   :  { %1400 = vmatprep.mubr.bf16.mxu0 %v2186_v54  ;;  %v2282_v54 = vld [vmem:[%s3083_s0 + $0x2ac] ss:$16 sps:$4 sm:$0xff]  }
  0x69   :  { %1112 = vmatmul.mubr.bf16.gmra.mrb[20].mxu1 %v2188_v55  ;;  %v2284_v55 = vld [vmem:[%s3083_s0 + $0x2a0] ss:$16 sps:$4 sm:$0xff]  }
  0x6a   :  { %1401 = vmatmul.mubr.bf16.gmra.mrb[20].mxu0 %v2189_v56  ;;  %1119 = vmatprep.mubr.bf16.mxu1 %v2190_v57  ;;  %v2285_v56 = vld [vmem:[%s3083_s0 + $0x2a8] ss:$16 sps:$4 sm:$0xff]   ;;  %v2286_v57 = vld [vmem:[%s3083_s0 + $0x2c4] ss:$16 sps:$4 sm:$0xff]  }
  0x6b   :  { %1408 = vmatprep.mubr.bf16.mxu0 %v2192_v58  ;;  %v2288_v58 = vld [vmem:[%s3083_s0 + $0x2cc] ss:$16 sps:$4 sm:$0xff]  }
  0x71   :  { %1120 = vmatmul.mubr.bf16.gmra.mrb[24].mxu1 %v2194_v59  ;;  %v2290_v59 = vld [vmem:[%s3083_s0 + $0x2c0] ss:$16 sps:$4 sm:$0xff]  }
  0x72   :  { %1409 = vmatmul.mubr.bf16.gmra.mrb[24].mxu0 %v2195_v60  ;;  %1127 = vmatprep.mubr.bf16.mxu1 %v2196_v61  ;;  %v2291_v60 = vld [vmem:[%s3083_s0 + $0x2c8] ss:$16 sps:$4 sm:$0xff]   ;;  %v2292_v61 = vld [vmem:[%s3083_s0 + $0x2e4] ss:$16 sps:$4 sm:$0xff]  }
  0x73   :  { %1416 = vmatprep.mubr.bf16.mxu0 %v2198_v62  ;;  %v2294_v62 = vld [vmem:[%s3083_s0 + $0x2ec] ss:$16 sps:$4 sm:$0xff]  }
  0x79   :  { %1128 = vmatmul.mubr.bf16.gmra.mrb[28].mxu1 %v2200_v63  ;;  %v2296_v63 = vld [vmem:[%s3083_s0 + $0x2e0] ss:$16 sps:$4 sm:$0xff]  }
  0x7a   :  { %1417 = vmatmul.mubr.bf16.gmra.mrb[28].mxu0 %v2201_v0  ;;  %1135 = vmatprep.mubr.bf16.mxu1 %v2202_v1  ;;  %v2297_v0 = vld [vmem:[%s3083_s0 + $0x2e8] ss:$16 sps:$4 sm:$0xff]   ;;  %v2298_v1 = vld [vmem:[%s3083_s0 + $0x304] ss:$16 sps:$4 sm:$0xff]  }
  0x7b   :  { %1424 = vmatprep.mubr.bf16.mxu0 %v2204_v2  ;;  %v2300_v2 = vld [vmem:[%s3083_s0 + $0x30c] ss:$16 sps:$4 sm:$0xff]  }
  0x81   :  { %1136 = vmatmul.mubr.bf16.gmra.mrb[32].mxu1 %v2206_v3  ;;  %v2302_v3 = vld [vmem:[%s3083_s0 + $0x300] ss:$16 sps:$4 sm:$0xff]  }
  0x82   :  { %1425 = vmatmul.mubr.bf16.gmra.mrb[32].mxu0 %v2207_v4  ;;  %1143 = vmatprep.mubr.bf16.mxu1 %v2208_v5  ;;  %v2303_v4 = vld [vmem:[%s3083_s0 + $0x308] ss:$16 sps:$4 sm:$0xff]   ;;  %v2304_v5 = vld [vmem:[%s3083_s0 + $0x324] ss:$16 sps:$4 sm:$0xff]  }
  0x83   :  { %1432 = vmatprep.mubr.bf16.mxu0 %v2210_v6  ;;  %v2306_v6 = vld [vmem:[%s3083_s0 + $0x32c] ss:$16 sps:$4 sm:$0xff]  }
  0x89   :  { %1144 = vmatmul.mubr.bf16.gmra.mrb[36].mxu1 %v2212_v7  ;;  %v2308_v7 = vld [vmem:[%s3083_s0 + $0x320] ss:$16 sps:$4 sm:$0xff]  }
  0x8a   :  { %1433 = vmatmul.mubr.bf16.gmra.mrb[36].mxu0 %v2213_v8  ;;  %1151 = vmatprep.mubr.bf16.mxu1 %v2214_v9  ;;  %v2309_v8 = vld [vmem:[%s3083_s0 + $0x328] ss:$16 sps:$4 sm:$0xff]   ;;  %v2310_v9 = vld [vmem:[%s3083_s0 + $0x344] ss:$16 sps:$4 sm:$0xff]  }
  0x8b   :  { %1440 = vmatprep.mubr.bf16.mxu0 %v2216_v10  ;;  %v2312_v10 = vld [vmem:[%s3083_s0 + $0x34c] ss:$16 sps:$4 sm:$0xff]  }
  0x91   :  { %1152 = vmatmul.mubr.bf16.gmra.mrb[40].mxu1 %v2218_v11  ;;  %v2314_v11 = vld [vmem:[%s3083_s0 + $0x340] ss:$16 sps:$4 sm:$0xff]  }
  0x92   :  { %1441 = vmatmul.mubr.bf16.gmra.mrb[40].mxu0 %v2219_v12  ;;  %1159 = vmatprep.mubr.bf16.mxu1 %v2220_v13  ;;  %v2315_v12 = vld [vmem:[%s3083_s0 + $0x348] ss:$16 sps:$4 sm:$0xff]   ;;  %v2316_v13 = vld [vmem:[%s3083_s0 + $0x364] ss:$16 sps:$4 sm:$0xff]  }
  0x93   :  { %1448 = vmatprep.mubr.bf16.mxu0 %v2222_v14  ;;  %v2318_v14 = vld [vmem:[%s3083_s0 + $0x36c] ss:$16 sps:$4 sm:$0xff]  }
  0x99   :  { %1160 = vmatmul.mubr.bf16.gmra.mrb[44].mxu1 %v2224_v15 }
  0x9a   :  { %1449 = vmatmul.mubr.bf16.gmra.mrb[44].mxu0 %v2225_v16  ;;  %1167 = vmatprep.mubr.bf16.mxu1 %v2226_v17 }
  0x9b   :  { %1456 = vmatprep.mubr.bf16.mxu0 %v2228_v18  ;;  %v2320_v18 = vld [vmem:[%s3083_s0 + $0x360] ss:$16 sps:$4 sm:$0xff]  }
  0xa1   :  { %1168 = vmatmul.mubr.bf16.gmra.mrb[48].mxu1 %v2230_v19 }
  0xa2   :  { %1457 = vmatmul.mubr.bf16.gmra.mrb[48].mxu0 %v2231_v20  ;;  %1175 = vmatprep.mubr.bf16.mxu1 %v2232_v21 }
  0xa3   :  { %1464 = vmatprep.mubr.bf16.mxu0 %v2234_v22  ;;  %v2321_v22 = vld [vmem:[%s3083_s0 + $0x368] ss:$16 sps:$4 sm:$0xff]  }
  0xa9   :  { %1176 = vmatmul.mubr.bf16.gmra.mrb[52].mxu1 %v2236_v23  ;;  %v2322_v23 = vld [vmem:[%s3083_s0 + $0x384] ss:$16 sps:$4 sm:$0xff]  }
  0xaa   :  { %1465 = vmatmul.mubr.bf16.gmra.mrb[52].mxu0 %v2237_v24  ;;  %1183 = vmatprep.mubr.bf16.mxu1 %v2238_v25 }
  0xab   :  { %1472 = vmatprep.mubr.bf16.mxu0 %v2240_v26  ;;  %v2324_v26 = vld [vmem:[%s3083_s0 + $0x38c] ss:$16 sps:$4 sm:$0xff]  }
  0xb1   :  { %1184 = vmatmul.mubr.bf16.gmra.mrb[56].mxu1 %v2242_v27 }
  0xb2   :  { %1473 = vmatmul.mubr.bf16.gmra.mrb[56].mxu0 %v2243_v28  ;;  %1191 = vmatprep.mubr.bf16.mxu1 %v2244_v29 }
  0xb3   :  { %1480 = vmatprep.mubr.bf16.mxu0 %v2246_v30 }
  0xb9   :  { %1192 = vmatmul.mubr.bf16.gmra.mrb[60].mxu1 %v2248_v31 }
  0xba   :  { %1481 = vmatmul.mubr.bf16.gmra.mrb[60].mxu0 %v2249_v32  ;;  %1199 = vmatprep.mubr.bf16.mxu1 %v2250_v33 }
  0xbb   :  { %1488 = vmatprep.mubr.bf16.mxu0 %v2252_v34 }
  0xc1   :  { %1200 = vmatmul.mubr.bf16.gmra.mrb[64].mxu1 %v2254_v35 }
  0xc2   :  { %1489 = vmatmul.mubr.bf16.gmra.mrb[64].mxu0 %v2255_v36  ;;  %1207 = vmatprep.mubr.bf16.mxu1 %v2256_v37  ;;  %v2326_v36 = vld [vmem:[%s3083_s0 + $0x380] ss:$16 sps:$4 sm:$0xff]  }
  0xc3   :  { %1496 = vmatprep.mubr.bf16.mxu0 %v2258_v38 }
  0xc9   :  { %1208 = vmatmul.mubr.bf16.gmra.mrb[68].mxu1 %v2260_v39 }
  0xca   :  { %1497 = vmatmul.mubr.bf16.gmra.mrb[68].mxu0 %v2261_v40  ;;  %1215 = vmatprep.mubr.bf16.mxu1 %v2262_v41  ;;  %v2327_v40 = vld [vmem:[%s3083_s0 + $0x388] ss:$16 sps:$4 sm:$0xff]   ;;  %v2328_v41 = vld [vmem:[%s3083_s0 + $0x3a4] ss:$16 sps:$4 sm:$0xff]  }
  0xcb   :  { %1504 = vmatprep.mubr.bf16.mxu0 %v2264_v42 }
  0xd1   :  { %1216 = vmatmul.mubr.bf16.gmra.mrb[72].mxu1 %v2266_v43 }
  0xd2   :  { %1505 = vmatmul.mubr.bf16.gmra.mrb[72].mxu0 %v2267_v44  ;;  %1223 = vmatprep.mubr.bf16.mxu1 %v2268_v45  ;;  %v2330_v44 = vld [vmem:[%s3083_s0 + $0x3ac] ss:$16 sps:$4 sm:$0xff]  }
  0xd3   :  { %1512 = vmatprep.mubr.bf16.mxu0 %v2270_v46 }
  0xd9   :  { %1224 = vmatmul.mubr.bf16.gmra.mrb[76].mxu1 %v2272_v47 }
  0xda   :  { %1513 = vmatmul.mubr.bf16.gmra.mrb[76].mxu0 %v2273_v48  ;;  %1231 = vmatprep.mubr.bf16.mxu1 %v2274_v49 }
  0xdb   :  { %1520 = vmatprep.mubr.bf16.mxu0 %v2276_v50 }
  0xe1   :  { %1232 = vmatmul.mubr.bf16.gmra.mrb[80].mxu1 %v2278_v51 }
  0xe2   :  { %1521 = vmatmul.mubr.bf16.gmra.mrb[80].mxu0 %v2279_v52  ;;  %1239 = vmatprep.mubr.bf16.mxu1 %v2280_v53 }
  0xe3   :  { %1528 = vmatprep.mubr.bf16.mxu0 %v2282_v54 }
  0xe9   :  { %1240 = vmatmul.mubr.bf16.gmra.mrb[84].mxu1 %v2284_v55 }
  0xea   :  { %1529 = vmatmul.mubr.bf16.gmra.mrb[84].mxu0 %v2285_v56  ;;  %1247 = vmatprep.mubr.bf16.mxu1 %v2286_v57  ;;  %v2332_v56 = vld [vmem:[%s3083_s0 + $0x3a0] ss:$16 sps:$4 sm:$0xff]  }
  0xeb   :  { %1536 = vmatprep.mubr.bf16.mxu0 %v2288_v58 }
  0xf1   :  { %1248 = vmatmul.mubr.bf16.gmra.mrb[88].mxu1 %v2290_v59 }
  0xf2   :  { %1537 = vmatmul.mubr.bf16.gmra.mrb[88].mxu0 %v2291_v60  ;;  %1255 = vmatprep.mubr.bf16.mxu1 %v2292_v61  ;;  %v2333_v60 = vld [vmem:[%s3083_s0 + $0x3a8] ss:$16 sps:$4 sm:$0xff]   ;;  %v2334_v61 = vld [vmem:[%s3083_s0 + $0x3c4] ss:$16 sps:$4 sm:$0xff]  }
  0xf3   :  { %1544 = vmatprep.mubr.bf16.mxu0 %v2294_v62 }
  0xf9   :  { %1256 = vmatmul.mubr.bf16.gmra.mrb[92].mxu1 %v2296_v63 }
  0xfa   :  { %1545 = vmatmul.mubr.bf16.gmra.mrb[92].mxu0 %v2297_v0  ;;  %1263 = vmatprep.mubr.bf16.mxu1 %v2298_v1  ;;  %v2336_v0 = vld [vmem:[%s3083_s0 + $0x3cc] ss:$16 sps:$4 sm:$0xff]  }
  0xfb   :  { %1552 = vmatprep.mubr.bf16.mxu0 %v2300_v2 }
 0x101   :  { %1264 = vmatmul.mubr.bf16.gmra.mrb[96].mxu1 %v2302_v3 }
 0x102   :  { %1553 = vmatmul.mubr.bf16.gmra.mrb[96].mxu0 %v2303_v4  ;;  %1271 = vmatprep.mubr.bf16.mxu1 %v2304_v5 }
 0x103   :  { %1560 = vmatprep.mubr.bf16.mxu0 %v2306_v6 }
 0x109   :  { %1272 = vmatmul.mubr.bf16.gmra.mrb[100].mxu1 %v2308_v7 }
 0x10a   :  { %1561 = vmatmul.mubr.bf16.gmra.mrb[100].mxu0 %v2309_v8  ;;  %1279 = vmatprep.mubr.bf16.mxu1 %v2310_v9 }
 0x10b   :  { %1568 = vmatprep.mubr.bf16.mxu0 %v2312_v10 }
 0x111   :  { %1280 = vmatmul.mubr.bf16.gmra.mrb[104].mxu1 %v2314_v11 }
 0x112   :  { %1569 = vmatmul.mubr.bf16.gmra.mrb[104].mxu0 %v2315_v12  ;;  %1287 = vmatprep.mubr.bf16.mxu1 %v2316_v13  ;;  %v2338_v12 = vld [vmem:[%s3083_s0 + $0x3c0] ss:$16 sps:$4 sm:$0xff]  }
 0x113   :  { %1576 = vmatprep.mubr.bf16.mxu0 %v2318_v14 }
 0x114   :  { %v1073_v15 = vpop.f32.mrb[0].mxu1 }
 0x115   :  { %v1362_v16 = vpop.f32.mrb[0].mxu0  ;;  %v1075_v17 = vpop.f32.mrb[1].mxu1 }
 0x116   :  { %v1363_v19 = vadd.f32 %v1362_v16, %v1073_v15  ;;  %v1364_v20 = vpop.f32.mrb[1].mxu0  ;;  %v1076_v21 = vpop.f32.mrb[2].mxu1  ;;  %v2339_v16 = vld [vmem:[%s3083_s0 + $0x3c8] ss:$16 sps:$4 sm:$0xff]   ;;  %v2340_v17 = vld [vmem:[%s3083_s0 + $0x3e4] ss:$16 sps:$4 sm:$0xff]  }
 0x117   :  { %v1365_v24 = vpop.f32.mrb[2].mxu0  ;;  %v1078_v25 = vpop.f32.mrb[3].mxu1  ;;  %v2342_v20 = vld [vmem:[%s3083_s0 + $0x3ec] ss:$16 sps:$4 sm:$0xff]  }
 0x118   :  { %1617 = vst [vmem:[%s3084_s2] sm:$0xff] %v1363_v19  ;;  %v1366_v27 = vadd.f32 %v1365_v24, %v1076_v21  ;;  %v1367_v28 = vpop.f32.mrb[3].mxu0  ;;  %v1751_v29 = vmul.f32 %v1363_v19, %v1363_v19 }
 0x119   :  { %1288 = vmatmul.mubr.bf16.gmra.mrb[108].mxu1 %v2320_v18 }
 0x11a   :  { %1618 = vst [vmem:[%s3084_s2 + $0x8] sm:$0xff] %v1366_v27  ;;  %v1681_v30 = vadd.f32 %v1366_v27, %v1363_v19  ;;  %v1752_v31 = vmul.f32 %v1366_v27, %v1366_v27  ;;  %1577 = vmatmul.mubr.bf16.gmra.mrb[108].mxu0 %v2321_v22  ;;  %1295 = vmatprep.mubr.bf16.mxu1 %v2322_v23 }
 0x11b   :  { %1584 = vmatprep.mubr.bf16.mxu0 %v2324_v26 }
 0x11c   :  { %v1815_v32 = vadd.f32 %v1752_v31, %v1751_v29  ;;  %v1081_v33 = vpop.f32.mrb[4].mxu1 }
 0x11d   :  { %v1370_v34 = vpop.f32.mrb[4].mxu0  ;;  %v1083_v35 = vpop.f32.mrb[5].mxu1 }
 0x11e   :  { %v1371_v37 = vadd.f32 %v1370_v34, %v1081_v33  ;;  %v1372_v38 = vpop.f32.mrb[5].mxu0  ;;  %v1084_v39 = vpop.f32.mrb[6].mxu1 }
 0x11f   :  { %v1373_v42 = vpop.f32.mrb[6].mxu0  ;;  %v1086_v43 = vpop.f32.mrb[7].mxu1 }
 0x120   :  { %1619 = vst [vmem:[%s3084_s2 + $0x10] sm:$0xff] %v1371_v37  ;;  %v1682_v45 = vadd.f32 %v1681_v30, %v1371_v37  ;;  %v1753_v46 = vmul.f32 %v1371_v37, %v1371_v37  ;;  %v1374_v47 = vadd.f32 %v1373_v42, %v1084_v39  ;;  %v1375_v48 = vpop.f32.mrb[7].mxu0 }
 0x121   :  { %1296 = vmatmul.mubr.bf16.gmra.mrb[112].mxu1 %v2326_v36  ;;  %v2345_v36 = vld [vmem:[%s3083_s0 + $0x3e8] ss:$16 sps:$4 sm:$0xff]  }
 0x122   :  { %v1816_v49 = vadd.f32 %v1815_v32, %v1753_v46  ;;  %1620 = vst [vmem:[%s3084_s2 + $0x18] sm:$0xff] %v1374_v47  ;;  %v1683_v50 = vadd.f32 %v1682_v45, %v1374_v47  ;;  %v1754_v51 = vmul.f32 %v1374_v47, %v1374_v47  ;;  %1585 = vmatmul.mubr.bf16.gmra.mrb[112].mxu0 %v2327_v40  ;;  %v2344_v32 = vld [vmem:[%s3083_s0 + $0x3e0] ss:$16 sps:$4 sm:$0xff]  }
 0x123   :  { %1303 = vmatprep.mubr.bf16.mxu1 %v2328_v41  ;;  %1592 = vmatprep.mubr.bf16.mxu0 %v2330_v44 }
 0x124   :  { %v1817_v52 = vadd.f32 %v1816_v49, %v1754_v51  ;;  %v1089_v53 = vpop.f32.mrb[8].mxu1 }
 0x125   :  { %v1378_v54 = vpop.f32.mrb[8].mxu0  ;;  %v1091_v55 = vpop.f32.mrb[9].mxu1 }
 0x126   :  { %v1379_v57 = vadd.f32 %v1378_v54, %v1089_v53  ;;  %v1380_v58 = vpop.f32.mrb[9].mxu0  ;;  %v1092_v59 = vpop.f32.mrb[10].mxu1 }
 0x127   :  { %v1381_v62 = vpop.f32.mrb[10].mxu0  ;;  %v1094_v63 = vpop.f32.mrb[11].mxu1 }
 0x128   :  { %1621 = vst [vmem:[%s3084_s2 + $0x20] sm:$0xff] %v1379_v57  ;;  %v1684_v1 = vadd.f32 %v1683_v50, %v1379_v57  ;;  %v1755_v2 = vmul.f32 %v1379_v57, %v1379_v57  ;;  %v1382_v3 = vadd.f32 %v1381_v62, %v1092_v59  ;;  %v1383_v4 = vpop.f32.mrb[11].mxu0 }
 0x129   :  { %1304 = vmatmul.mubr.bf16.gmra.mrb[116].mxu1 %v2332_v56 }
 0x12a   :  { %v1818_v5 = vadd.f32 %v1817_v52, %v1755_v2  ;;  %1622 = vst [vmem:[%s3084_s2 + $0x28] sm:$0xff] %v1382_v3  ;;  %v1685_v6 = vadd.f32 %v1684_v1, %v1382_v3  ;;  %v1756_v7 = vmul.f32 %v1382_v3, %v1382_v3  ;;  %1593 = vmatmul.mubr.bf16.gmra.mrb[116].mxu0 %v2333_v60 }
 0x12b   :  { %1311 = vmatprep.mubr.bf16.mxu1 %v2334_v61  ;;  %1600 = vmatprep.mubr.bf16.mxu0 %v2336_v0 }
 0x12c   :  { %v1819_v8 = vadd.f32 %v1818_v5, %v1756_v7  ;;  %v1097_v9 = vpop.f32.mrb[12].mxu1 }
 0x12d   :  { %v1386_v10 = vpop.f32.mrb[12].mxu0  ;;  %v1099_v11 = vpop.f32.mrb[13].mxu1 }
 0x12e   :  { %v1387_v13 = vadd.f32 %v1386_v10, %v1097_v9  ;;  %v1388_v14 = vpop.f32.mrb[13].mxu0  ;;  %v1100_v15 = vpop.f32.mrb[14].mxu1 }
 0x12f   :  { %v1389_v18 = vpop.f32.mrb[14].mxu0  ;;  %v1102_v19 = vpop.f32.mrb[15].mxu1 }
 0x130   :  { %1623 = vst [vmem:[%s3084_s2 + $0x30] sm:$0xff] %v1387_v13  ;;  %v1686_v21 = vadd.f32 %v1685_v6, %v1387_v13  ;;  %v1757_v22 = vmul.f32 %v1387_v13, %v1387_v13  ;;  %v1390_v23 = vadd.f32 %v1389_v18, %v1100_v15  ;;  %v1391_v24 = vpop.f32.mrb[15].mxu0 }
 0x131   :  { %1312 = vmatmul.mubr.bf16.gmra.mrb[120].mxu1 %v2338_v12 }
 0x132   :  { %v1820_v25 = vadd.f32 %v1819_v8, %v1757_v22  ;;  %1624 = vst [vmem:[%s3084_s2 + $0x38] sm:$0xff] %v1390_v23  ;;  %v1687_v26 = vadd.f32 %v1686_v21, %v1390_v23  ;;  %v1758_v27 = vmul.f32 %v1390_v23, %v1390_v23  ;;  %1601 = vmatmul.mubr.bf16.gmra.mrb[120].mxu0 %v2339_v16 }
 0x133   :  { %1319 = vmatprep.mubr.bf16.mxu1 %v2340_v17  ;;  %1608 = vmatprep.mubr.bf16.mxu0 %v2342_v20 }
 0x134   :  { %v1821_v28 = vadd.f32 %v1820_v25, %v1758_v27  ;;  %v1105_v29 = vpop.f32.mrb[16].mxu1 }
 0x135   :  { %v1394_v30 = vpop.f32.mrb[16].mxu0  ;;  %v1107_v31 = vpop.f32.mrb[17].mxu1 }
 0x136   :  { %v1395_v33 = vadd.f32 %v1394_v30, %v1105_v29  ;;  %v1396_v34 = vpop.f32.mrb[17].mxu0  ;;  %v1108_v35 = vpop.f32.mrb[18].mxu1 }
 0x137   :  { %v1397_v37 = vpop.f32.mrb[18].mxu0  ;;  %v1110_v38 = vpop.f32.mrb[19].mxu1 }
 0x138   :  { %1625 = vst [vmem:[%s3084_s2 + $0x40] sm:$0xff] %v1395_v33  ;;  %v1688_v39 = vadd.f32 %v1687_v26, %v1395_v33  ;;  %v1759_v40 = vmul.f32 %v1395_v33, %v1395_v33  ;;  %v1398_v41 = vadd.f32 %v1397_v37, %v1108_v35  ;;  %v1399_v42 = vpop.f32.mrb[19].mxu0 }
 0x139   :  { %1320 = vmatmul.mubr.bf16.gmra.mrb[124].mxu1 %v2344_v32 }
 0x13a   :  { %v1822_v43 = vadd.f32 %v1821_v28, %v1759_v40  ;;  %1626 = vst [vmem:[%s3084_s2 + $0x48] sm:$0xff] %v1398_v41  ;;  %v1689_v44 = vadd.f32 %v1688_v39, %v1398_v41  ;;  %v1760_v45 = vmul.f32 %v1398_v41, %v1398_v41  ;;  %1609 = vmatmul.mubr.bf16.gmra.mrb[124].mxu0 %v2345_v36 }
 0x13c   :  { %v1823_v46 = vadd.f32 %v1822_v43, %v1760_v45  ;;  %v1113_v47 = vpop.f32.mrb[20].mxu1 }
 0x13d   :  { %v1402_v48 = vpop.f32.mrb[20].mxu0  ;;  %v1115_v49 = vpop.f32.mrb[21].mxu1 }
 0x13e   :  { %v1403_v50 = vadd.f32 %v1402_v48, %v1113_v47  ;;  %v1404_v51 = vpop.f32.mrb[21].mxu0  ;;  %v1116_v52 = vpop.f32.mrb[22].mxu1 }
 0x13f   :  { %v1405_v53 = vpop.f32.mrb[22].mxu0  ;;  %v1118_v54 = vpop.f32.mrb[23].mxu1 }
 0x140   :  { %1627 = vst [vmem:[%s3084_s2 + $0x50] sm:$0xff] %v1403_v50  ;;  %v1690_v55 = vadd.f32 %v1689_v44, %v1403_v50  ;;  %v1761_v56 = vmul.f32 %v1403_v50, %v1403_v50  ;;  %v1406_v57 = vadd.f32 %v1405_v53, %v1116_v52  ;;  %v1407_v58 = vpop.f32.mrb[23].mxu0 }
 0x142   :  { %v1824_v59 = vadd.f32 %v1823_v46, %v1761_v56  ;;  %1628 = vst [vmem:[%s3084_s2 + $0x58] sm:$0xff] %v1406_v57  ;;  %v1691_v60 = vadd.f32 %v1690_v55, %v1406_v57  ;;  %v1762_v61 = vmul.f32 %v1406_v57, %v1406_v57 }
 0x144   :  { %v1825_v62 = vadd.f32 %v1824_v59, %v1762_v61  ;;  %v1121_v63 = vpop.f32.mrb[24].mxu1 }
 0x145   :  { %v1410_v0 = vpop.f32.mrb[24].mxu0  ;;  %v1123_v1 = vpop.f32.mrb[25].mxu1 }
 0x146   :  { %v1411_v2 = vadd.f32 %v1410_v0, %v1121_v63  ;;  %v1412_v3 = vpop.f32.mrb[25].mxu0  ;;  %v1124_v4 = vpop.f32.mrb[26].mxu1 }
 0x147   :  { %v1413_v5 = vpop.f32.mrb[26].mxu0  ;;  %v1126_v6 = vpop.f32.mrb[27].mxu1 }
 0x148   :  { %1629 = vst [vmem:[%s3084_s2 + $0x60] sm:$0xff] %v1411_v2  ;;  %v1692_v7 = vadd.f32 %v1691_v60, %v1411_v2  ;;  %v1763_v8 = vmul.f32 %v1411_v2, %v1411_v2  ;;  %v1414_v9 = vadd.f32 %v1413_v5, %v1124_v4  ;;  %v1415_v10 = vpop.f32.mrb[27].mxu0 }
 0x14a   :  { %v1826_v11 = vadd.f32 %v1825_v62, %v1763_v8  ;;  %1630 = vst [vmem:[%s3084_s2 + $0x68] sm:$0xff] %v1414_v9  ;;  %v1693_v12 = vadd.f32 %v1692_v7, %v1414_v9  ;;  %v1764_v13 = vmul.f32 %v1414_v9, %v1414_v9 }
 0x14c   :  { %v1827_v14 = vadd.f32 %v1826_v11, %v1764_v13  ;;  %v1129_v15 = vpop.f32.mrb[28].mxu1 }
 0x14d   :  { %v1418_v16 = vpop.f32.mrb[28].mxu0  ;;  %v1131_v17 = vpop.f32.mrb[29].mxu1 }
 0x14e   :  { %v1419_v18 = vadd.f32 %v1418_v16, %v1129_v15  ;;  %v1420_v19 = vpop.f32.mrb[29].mxu0  ;;  %v1132_v20 = vpop.f32.mrb[30].mxu1 }
 0x14f   :  { %v1421_v21 = vpop.f32.mrb[30].mxu0  ;;  %v1134_v22 = vpop.f32.mrb[31].mxu1 }
 0x150   :  { %1631 = vst [vmem:[%s3084_s2 + $0x70] sm:$0xff] %v1419_v18  ;;  %v1694_v23 = vadd.f32 %v1693_v12, %v1419_v18  ;;  %v1765_v24 = vmul.f32 %v1419_v18, %v1419_v18  ;;  %v1422_v25 = vadd.f32 %v1421_v21, %v1132_v20  ;;  %v1423_v26 = vpop.f32.mrb[31].mxu0 }
 0x152   :  { %v1828_v27 = vadd.f32 %v1827_v14, %v1765_v24  ;;  %1632 = vst [vmem:[%s3084_s2 + $0x78] sm:$0xff] %v1422_v25  ;;  %v1695_v28 = vadd.f32 %v1694_v23, %v1422_v25  ;;  %v1766_v29 = vmul.f32 %v1422_v25, %v1422_v25 }
 0x154   :  { %v1829_v30 = vadd.f32 %v1828_v27, %v1766_v29  ;;  %v1137_v31 = vpop.f32.mrb[32].mxu1 }
 0x155   :  { %v1426_v32 = vpop.f32.mrb[32].mxu0  ;;  %v1139_v33 = vpop.f32.mrb[33].mxu1 }
 0x156   :  { %v1427_v34 = vadd.f32 %v1426_v32, %v1137_v31  ;;  %v1428_v35 = vpop.f32.mrb[33].mxu0  ;;  %v1140_v36 = vpop.f32.mrb[34].mxu1 }
 0x157   :  { %v1429_v37 = vpop.f32.mrb[34].mxu0  ;;  %v1142_v38 = vpop.f32.mrb[35].mxu1 }
 0x158   :  { %1633 = vst [vmem:[%s3084_s2 + $0x80] sm:$0xff] %v1427_v34  ;;  %v1696_v39 = vadd.f32 %v1695_v28, %v1427_v34  ;;  %v1767_v40 = vmul.f32 %v1427_v34, %v1427_v34  ;;  %v1430_v41 = vadd.f32 %v1429_v37, %v1140_v36  ;;  %v1431_v42 = vpop.f32.mrb[35].mxu0 }
 0x15a   :  { %v1830_v43 = vadd.f32 %v1829_v30, %v1767_v40  ;;  %1634 = vst [vmem:[%s3084_s2 + $0x88] sm:$0xff] %v1430_v41  ;;  %v1697_v44 = vadd.f32 %v1696_v39, %v1430_v41  ;;  %v1768_v45 = vmul.f32 %v1430_v41, %v1430_v41 }
 0x15c   :  { %v1831_v46 = vadd.f32 %v1830_v43, %v1768_v45  ;;  %v1145_v47 = vpop.f32.mrb[36].mxu1 }
 0x15d   :  { %v1434_v48 = vpop.f32.mrb[36].mxu0  ;;  %v1147_v49 = vpop.f32.mrb[37].mxu1 }
 0x15e   :  { %v1435_v50 = vadd.f32 %v1434_v48, %v1145_v47  ;;  %v1436_v51 = vpop.f32.mrb[37].mxu0  ;;  %v1148_v52 = vpop.f32.mrb[38].mxu1 }
 0x15f   :  { %v1437_v53 = vpop.f32.mrb[38].mxu0  ;;  %v1150_v54 = vpop.f32.mrb[39].mxu1 }
 0x160   :  { %1635 = vst [vmem:[%s3084_s2 + $0x90] sm:$0xff] %v1435_v50  ;;  %v1698_v55 = vadd.f32 %v1697_v44, %v1435_v50  ;;  %v1769_v56 = vmul.f32 %v1435_v50, %v1435_v50  ;;  %v1438_v57 = vadd.f32 %v1437_v53, %v1148_v52  ;;  %v1439_v58 = vpop.f32.mrb[39].mxu0 }
 0x162   :  { %v1832_v59 = vadd.f32 %v1831_v46, %v1769_v56  ;;  %1636 = vst [vmem:[%s3084_s2 + $0x98] sm:$0xff] %v1438_v57  ;;  %v1699_v60 = vadd.f32 %v1698_v55, %v1438_v57  ;;  %v1770_v61 = vmul.f32 %v1438_v57, %v1438_v57 }
 0x164   :  { %v1833_v62 = vadd.f32 %v1832_v59, %v1770_v61  ;;  %v1153_v63 = vpop.f32.mrb[40].mxu1 }
 0x165   :  { %v1442_v0 = vpop.f32.mrb[40].mxu0  ;;  %v1155_v1 = vpop.f32.mrb[41].mxu1 }
 0x166   :  { %v1443_v2 = vadd.f32 %v1442_v0, %v1153_v63  ;;  %v1444_v3 = vpop.f32.mrb[41].mxu0  ;;  %v1156_v4 = vpop.f32.mrb[42].mxu1 }
 0x167   :  { %v1445_v5 = vpop.f32.mrb[42].mxu0  ;;  %v1158_v6 = vpop.f32.mrb[43].mxu1 }
 0x168   :  { %1637 = vst [vmem:[%s3084_s2 + $0xa0] sm:$0xff] %v1443_v2  ;;  %v1700_v7 = vadd.f32 %v1699_v60, %v1443_v2  ;;  %v1771_v8 = vmul.f32 %v1443_v2, %v1443_v2  ;;  %v1446_v9 = vadd.f32 %v1445_v5, %v1156_v4  ;;  %v1447_v10 = vpop.f32.mrb[43].mxu0 }
 0x16a   :  { %v1834_v11 = vadd.f32 %v1833_v62, %v1771_v8  ;;  %1638 = vst [vmem:[%s3084_s2 + $0xa8] sm:$0xff] %v1446_v9  ;;  %v1701_v12 = vadd.f32 %v1700_v7, %v1446_v9  ;;  %v1772_v13 = vmul.f32 %v1446_v9, %v1446_v9 }
 0x16c   :  { %v1835_v14 = vadd.f32 %v1834_v11, %v1772_v13  ;;  %v1161_v15 = vpop.f32.mrb[44].mxu1 }
 0x16d   :  { %v1450_v16 = vpop.f32.mrb[44].mxu0  ;;  %v1163_v17 = vpop.f32.mrb[45].mxu1 }
 0x16e   :  { %v1451_v18 = vadd.f32 %v1450_v16, %v1161_v15  ;;  %v1452_v19 = vpop.f32.mrb[45].mxu0  ;;  %v1164_v20 = vpop.f32.mrb[46].mxu1 }
 0x16f   :  { %v1453_v21 = vpop.f32.mrb[46].mxu0  ;;  %v1166_v22 = vpop.f32.mrb[47].mxu1 }
 0x170   :  { %1639 = vst [vmem:[%s3084_s2 + $0xb0] sm:$0xff] %v1451_v18  ;;  %v1702_v23 = vadd.f32 %v1701_v12, %v1451_v18  ;;  %v1773_v24 = vmul.f32 %v1451_v18, %v1451_v18  ;;  %v1454_v25 = vadd.f32 %v1453_v21, %v1164_v20  ;;  %v1455_v26 = vpop.f32.mrb[47].mxu0 }
 0x172   :  { %v1836_v27 = vadd.f32 %v1835_v14, %v1773_v24  ;;  %1640 = vst [vmem:[%s3084_s2 + $0xb8] sm:$0xff] %v1454_v25  ;;  %v1703_v28 = vadd.f32 %v1702_v23, %v1454_v25  ;;  %v1774_v29 = vmul.f32 %v1454_v25, %v1454_v25 }
 0x174   :  { %v1837_v30 = vadd.f32 %v1836_v27, %v1774_v29  ;;  %v1169_v31 = vpop.f32.mrb[48].mxu1 }
 0x175   :  { %v1458_v32 = vpop.f32.mrb[48].mxu0  ;;  %v1171_v33 = vpop.f32.mrb[49].mxu1 }
 0x176   :  { %v1459_v34 = vadd.f32 %v1458_v32, %v1169_v31  ;;  %v1460_v35 = vpop.f32.mrb[49].mxu0  ;;  %v1172_v36 = vpop.f32.mrb[50].mxu1 }
 0x177   :  { %v1461_v37 = vpop.f32.mrb[50].mxu0  ;;  %v1174_v38 = vpop.f32.mrb[51].mxu1 }
 0x178   :  { %1641 = vst [vmem:[%s3084_s2 + $0xc0] sm:$0xff] %v1459_v34  ;;  %v1704_v39 = vadd.f32 %v1703_v28, %v1459_v34  ;;  %v1775_v40 = vmul.f32 %v1459_v34, %v1459_v34  ;;  %v1462_v41 = vadd.f32 %v1461_v37, %v1172_v36  ;;  %v1463_v42 = vpop.f32.mrb[51].mxu0 }
 0x17a   :  { %v1838_v43 = vadd.f32 %v1837_v30, %v1775_v40  ;;  %1642 = vst [vmem:[%s3084_s2 + $0xc8] sm:$0xff] %v1462_v41  ;;  %v1705_v44 = vadd.f32 %v1704_v39, %v1462_v41  ;;  %v1776_v45 = vmul.f32 %v1462_v41, %v1462_v41 }
 0x17c   :  { %v1839_v46 = vadd.f32 %v1838_v43, %v1776_v45  ;;  %v1177_v47 = vpop.f32.mrb[52].mxu1 }
 0x17d   :  { %v1466_v48 = vpop.f32.mrb[52].mxu0  ;;  %v1179_v49 = vpop.f32.mrb[53].mxu1 }
 0x17e   :  { %v1467_v50 = vadd.f32 %v1466_v48, %v1177_v47  ;;  %v1468_v51 = vpop.f32.mrb[53].mxu0  ;;  %v1180_v52 = vpop.f32.mrb[54].mxu1 }
 0x17f   :  { %v1469_v53 = vpop.f32.mrb[54].mxu0  ;;  %v1182_v54 = vpop.f32.mrb[55].mxu1 }
 0x180   :  { %1643 = vst [vmem:[%s3084_s2 + $0xd0] sm:$0xff] %v1467_v50  ;;  %v1706_v55 = vadd.f32 %v1705_v44, %v1467_v50  ;;  %v1777_v56 = vmul.f32 %v1467_v50, %v1467_v50  ;;  %v1470_v57 = vadd.f32 %v1469_v53, %v1180_v52  ;;  %v1471_v58 = vpop.f32.mrb[55].mxu0 }
 0x182   :  { %v1840_v59 = vadd.f32 %v1839_v46, %v1777_v56  ;;  %1644 = vst [vmem:[%s3084_s2 + $0xd8] sm:$0xff] %v1470_v57  ;;  %v1707_v60 = vadd.f32 %v1706_v55, %v1470_v57  ;;  %v1778_v61 = vmul.f32 %v1470_v57, %v1470_v57 }
 0x184   :  { %v1841_v62 = vadd.f32 %v1840_v59, %v1778_v61  ;;  %v1185_v63 = vpop.f32.mrb[56].mxu1 }
 0x185   :  { %v1474_v0 = vpop.f32.mrb[56].mxu0  ;;  %v1187_v1 = vpop.f32.mrb[57].mxu1 }
 0x186   :  { %v1475_v2 = vadd.f32 %v1474_v0, %v1185_v63  ;;  %v1476_v3 = vpop.f32.mrb[57].mxu0  ;;  %v1188_v4 = vpop.f32.mrb[58].mxu1 }
 0x187   :  { %v1477_v5 = vpop.f32.mrb[58].mxu0  ;;  %v1190_v6 = vpop.f32.mrb[59].mxu1 }
 0x188   :  { %1645 = vst [vmem:[%s3084_s2 + $0xe0] sm:$0xff] %v1475_v2  ;;  %v1708_v7 = vadd.f32 %v1707_v60, %v1475_v2  ;;  %v1779_v8 = vmul.f32 %v1475_v2, %v1475_v2  ;;  %v1478_v9 = vadd.f32 %v1477_v5, %v1188_v4  ;;  %v1479_v10 = vpop.f32.mrb[59].mxu0 }
 0x18a   :  { %v1842_v11 = vadd.f32 %v1841_v62, %v1779_v8  ;;  %1646 = vst [vmem:[%s3084_s2 + $0xe8] sm:$0xff] %v1478_v9  ;;  %v1709_v12 = vadd.f32 %v1708_v7, %v1478_v9  ;;  %v1780_v13 = vmul.f32 %v1478_v9, %v1478_v9 }
 0x18c   :  { %v1843_v14 = vadd.f32 %v1842_v11, %v1780_v13  ;;  %v1193_v15 = vpop.f32.mrb[60].mxu1 }
 0x18d   :  { %v1482_v16 = vpop.f32.mrb[60].mxu0  ;;  %v1195_v17 = vpop.f32.mrb[61].mxu1 }
 0x18e   :  { %v1483_v18 = vadd.f32 %v1482_v16, %v1193_v15  ;;  %v1484_v19 = vpop.f32.mrb[61].mxu0  ;;  %v1196_v20 = vpop.f32.mrb[62].mxu1 }
 0x18f   :  { %v1485_v21 = vpop.f32.mrb[62].mxu0  ;;  %v1198_v22 = vpop.f32.mrb[63].mxu1 }
 0x190   :  { %1647 = vst [vmem:[%s3084_s2 + $0xf0] sm:$0xff] %v1483_v18  ;;  %v1710_v23 = vadd.f32 %v1709_v12, %v1483_v18  ;;  %v1781_v24 = vmul.f32 %v1483_v18, %v1483_v18  ;;  %v1486_v25 = vadd.f32 %v1485_v21, %v1196_v20  ;;  %v1487_v26 = vpop.f32.mrb[63].mxu0 }
 0x192   :  { %v1844_v27 = vadd.f32 %v1843_v14, %v1781_v24  ;;  %1648 = vst [vmem:[%s3084_s2 + $0xf8] sm:$0xff] %v1486_v25  ;;  %v1711_v28 = vadd.f32 %v1710_v23, %v1486_v25  ;;  %v1782_v29 = vmul.f32 %v1486_v25, %v1486_v25 }
 0x194   :  { %v1845_v30 = vadd.f32 %v1844_v27, %v1782_v29  ;;  %v1201_v31 = vpop.f32.mrb[64].mxu1 }
 0x195   :  { %v1490_v32 = vpop.f32.mrb[64].mxu0  ;;  %v1203_v33 = vpop.f32.mrb[65].mxu1 }
 0x196   :  { %v1491_v34 = vadd.f32 %v1490_v32, %v1201_v31  ;;  %v1492_v35 = vpop.f32.mrb[65].mxu0  ;;  %v1204_v36 = vpop.f32.mrb[66].mxu1 }
 0x197   :  { %v1493_v37 = vpop.f32.mrb[66].mxu0  ;;  %v1206_v38 = vpop.f32.mrb[67].mxu1 }
 0x198   :  { %1649 = vst [vmem:[%s3084_s2 + $0x100] sm:$0xff] %v1491_v34  ;;  %v1712_v39 = vadd.f32 %v1711_v28, %v1491_v34  ;;  %v1783_v40 = vmul.f32 %v1491_v34, %v1491_v34  ;;  %v1494_v41 = vadd.f32 %v1493_v37, %v1204_v36  ;;  %v1495_v42 = vpop.f32.mrb[67].mxu0 }
 0x19a   :  { %v1846_v43 = vadd.f32 %v1845_v30, %v1783_v40  ;;  %1650 = vst [vmem:[%s3084_s2 + $0x108] sm:$0xff] %v1494_v41  ;;  %v1713_v44 = vadd.f32 %v1712_v39, %v1494_v41  ;;  %v1784_v45 = vmul.f32 %v1494_v41, %v1494_v41 }
 0x19c   :  { %v1847_v46 = vadd.f32 %v1846_v43, %v1784_v45  ;;  %v1209_v47 = vpop.f32.mrb[68].mxu1 }
 0x19d   :  { %v1498_v48 = vpop.f32.mrb[68].mxu0  ;;  %v1211_v49 = vpop.f32.mrb[69].mxu1 }
 0x19e   :  { %v1499_v50 = vadd.f32 %v1498_v48, %v1209_v47  ;;  %v1500_v51 = vpop.f32.mrb[69].mxu0  ;;  %v1212_v52 = vpop.f32.mrb[70].mxu1 }
 0x19f   :  { %v1501_v53 = vpop.f32.mrb[70].mxu0  ;;  %v1214_v54 = vpop.f32.mrb[71].mxu1 }
 0x1a0   :  { %1651 = vst [vmem:[%s3084_s2 + $0x110] sm:$0xff] %v1499_v50  ;;  %v1714_v55 = vadd.f32 %v1713_v44, %v1499_v50  ;;  %v1785_v56 = vmul.f32 %v1499_v50, %v1499_v50  ;;  %v1502_v57 = vadd.f32 %v1501_v53, %v1212_v52  ;;  %v1503_v58 = vpop.f32.mrb[71].mxu0 }
 0x1a2   :  { %v1848_v59 = vadd.f32 %v1847_v46, %v1785_v56  ;;  %1652 = vst [vmem:[%s3084_s2 + $0x118] sm:$0xff] %v1502_v57  ;;  %v1715_v60 = vadd.f32 %v1714_v55, %v1502_v57  ;;  %v1786_v61 = vmul.f32 %v1502_v57, %v1502_v57 }
 0x1a4   :  { %v1849_v62 = vadd.f32 %v1848_v59, %v1786_v61  ;;  %v1217_v63 = vpop.f32.mrb[72].mxu1 }
 0x1a5   :  { %v1506_v0 = vpop.f32.mrb[72].mxu0  ;;  %v1219_v1 = vpop.f32.mrb[73].mxu1 }
 0x1a6   :  { %v1507_v2 = vadd.f32 %v1506_v0, %v1217_v63  ;;  %v1508_v3 = vpop.f32.mrb[73].mxu0  ;;  %v1220_v4 = vpop.f32.mrb[74].mxu1 }
 0x1a7   :  { %v1509_v5 = vpop.f32.mrb[74].mxu0  ;;  %v1222_v6 = vpop.f32.mrb[75].mxu1 }
 0x1a8   :  { %1653 = vst [vmem:[%s3084_s2 + $0x120] sm:$0xff] %v1507_v2  ;;  %v1716_v7 = vadd.f32 %v1715_v60, %v1507_v2  ;;  %v1787_v8 = vmul.f32 %v1507_v2, %v1507_v2  ;;  %v1510_v9 = vadd.f32 %v1509_v5, %v1220_v4  ;;  %v1511_v10 = vpop.f32.mrb[75].mxu0 }
 0x1aa   :  { %v1850_v11 = vadd.f32 %v1849_v62, %v1787_v8  ;;  %1654 = vst [vmem:[%s3084_s2 + $0x128] sm:$0xff] %v1510_v9  ;;  %v1717_v12 = vadd.f32 %v1716_v7, %v1510_v9  ;;  %v1788_v13 = vmul.f32 %v1510_v9, %v1510_v9 }
 0x1ac   :  { %v1851_v14 = vadd.f32 %v1850_v11, %v1788_v13  ;;  %v1225_v15 = vpop.f32.mrb[76].mxu1 }
 0x1ad   :  { %v1514_v16 = vpop.f32.mrb[76].mxu0  ;;  %v1227_v17 = vpop.f32.mrb[77].mxu1 }
 0x1ae   :  { %v1515_v18 = vadd.f32 %v1514_v16, %v1225_v15  ;;  %v1516_v19 = vpop.f32.mrb[77].mxu0  ;;  %v1228_v20 = vpop.f32.mrb[78].mxu1 }
 0x1af   :  { %v1517_v21 = vpop.f32.mrb[78].mxu0  ;;  %v1230_v22 = vpop.f32.mrb[79].mxu1 }
 0x1b0   :  { %1655 = vst [vmem:[%s3084_s2 + $0x130] sm:$0xff] %v1515_v18  ;;  %v1718_v23 = vadd.f32 %v1717_v12, %v1515_v18  ;;  %v1789_v24 = vmul.f32 %v1515_v18, %v1515_v18  ;;  %v1518_v25 = vadd.f32 %v1517_v21, %v1228_v20  ;;  %v1519_v26 = vpop.f32.mrb[79].mxu0 }
 0x1b2   :  { %v1852_v27 = vadd.f32 %v1851_v14, %v1789_v24  ;;  %1656 = vst [vmem:[%s3084_s2 + $0x138] sm:$0xff] %v1518_v25  ;;  %v1719_v28 = vadd.f32 %v1718_v23, %v1518_v25  ;;  %v1790_v29 = vmul.f32 %v1518_v25, %v1518_v25 }
 0x1b4   :  { %v1853_v30 = vadd.f32 %v1852_v27, %v1790_v29  ;;  %v1233_v31 = vpop.f32.mrb[80].mxu1 }
 0x1b5   :  { %v1522_v32 = vpop.f32.mrb[80].mxu0  ;;  %v1235_v33 = vpop.f32.mrb[81].mxu1 }
 0x1b6   :  { %v1523_v34 = vadd.f32 %v1522_v32, %v1233_v31  ;;  %v1524_v35 = vpop.f32.mrb[81].mxu0  ;;  %v1236_v36 = vpop.f32.mrb[82].mxu1 }
 0x1b7   :  { %v1525_v37 = vpop.f32.mrb[82].mxu0  ;;  %v1238_v38 = vpop.f32.mrb[83].mxu1 }
 0x1b8   :  { %1657 = vst [vmem:[%s3084_s2 + $0x140] sm:$0xff] %v1523_v34  ;;  %v1720_v39 = vadd.f32 %v1719_v28, %v1523_v34  ;;  %v1791_v40 = vmul.f32 %v1523_v34, %v1523_v34  ;;  %v1526_v41 = vadd.f32 %v1525_v37, %v1236_v36  ;;  %v1527_v42 = vpop.f32.mrb[83].mxu0 }
 0x1ba   :  { %v1854_v43 = vadd.f32 %v1853_v30, %v1791_v40  ;;  %1658 = vst [vmem:[%s3084_s2 + $0x148] sm:$0xff] %v1526_v41  ;;  %v1721_v44 = vadd.f32 %v1720_v39, %v1526_v41  ;;  %v1792_v45 = vmul.f32 %v1526_v41, %v1526_v41 }
 0x1bc   :  { %v1855_v46 = vadd.f32 %v1854_v43, %v1792_v45  ;;  %v1241_v47 = vpop.f32.mrb[84].mxu1 }
 0x1bd   :  { %v1530_v48 = vpop.f32.mrb[84].mxu0  ;;  %v1243_v49 = vpop.f32.mrb[85].mxu1 }
 0x1be   :  { %v1531_v50 = vadd.f32 %v1530_v48, %v1241_v47  ;;  %v1532_v51 = vpop.f32.mrb[85].mxu0  ;;  %v1244_v52 = vpop.f32.mrb[86].mxu1 }
 0x1bf   :  { %v1533_v53 = vpop.f32.mrb[86].mxu0  ;;  %v1246_v54 = vpop.f32.mrb[87].mxu1 }
 0x1c0   :  { %1659 = vst [vmem:[%s3084_s2 + $0x150] sm:$0xff] %v1531_v50  ;;  %v1722_v55 = vadd.f32 %v1721_v44, %v1531_v50  ;;  %v1793_v56 = vmul.f32 %v1531_v50, %v1531_v50  ;;  %v1534_v57 = vadd.f32 %v1533_v53, %v1244_v52  ;;  %v1535_v58 = vpop.f32.mrb[87].mxu0 }
 0x1c2   :  { %v1856_v59 = vadd.f32 %v1855_v46, %v1793_v56  ;;  %1660 = vst [vmem:[%s3084_s2 + $0x158] sm:$0xff] %v1534_v57  ;;  %v1723_v60 = vadd.f32 %v1722_v55, %v1534_v57  ;;  %v1794_v61 = vmul.f32 %v1534_v57, %v1534_v57 }
 0x1c4   :  { %v1857_v62 = vadd.f32 %v1856_v59, %v1794_v61  ;;  %v1249_v63 = vpop.f32.mrb[88].mxu1 }
 0x1c5   :  { %v1538_v0 = vpop.f32.mrb[88].mxu0  ;;  %v1251_v1 = vpop.f32.mrb[89].mxu1 }
 0x1c6   :  { %v1539_v2 = vadd.f32 %v1538_v0, %v1249_v63  ;;  %v1540_v3 = vpop.f32.mrb[89].mxu0  ;;  %v1252_v4 = vpop.f32.mrb[90].mxu1 }
 0x1c7   :  { %v1541_v5 = vpop.f32.mrb[90].mxu0  ;;  %v1254_v6 = vpop.f32.mrb[91].mxu1 }
 0x1c8   :  { %1661 = vst [vmem:[%s3084_s2 + $0x160] sm:$0xff] %v1539_v2  ;;  %v1724_v7 = vadd.f32 %v1723_v60, %v1539_v2  ;;  %v1795_v8 = vmul.f32 %v1539_v2, %v1539_v2  ;;  %v1542_v9 = vadd.f32 %v1541_v5, %v1252_v4  ;;  %v1543_v10 = vpop.f32.mrb[91].mxu0 }
 0x1ca   :  { %v1858_v11 = vadd.f32 %v1857_v62, %v1795_v8  ;;  %1662 = vst [vmem:[%s3084_s2 + $0x168] sm:$0xff] %v1542_v9  ;;  %v1725_v12 = vadd.f32 %v1724_v7, %v1542_v9  ;;  %v1796_v13 = vmul.f32 %v1542_v9, %v1542_v9 }
 0x1cc   :  { %v1859_v14 = vadd.f32 %v1858_v11, %v1796_v13  ;;  %v1257_v15 = vpop.f32.mrb[92].mxu1 }
 0x1cd   :  { %v1546_v16 = vpop.f32.mrb[92].mxu0  ;;  %v1259_v17 = vpop.f32.mrb[93].mxu1 }
 0x1ce   :  { %v1547_v18 = vadd.f32 %v1546_v16, %v1257_v15  ;;  %v1548_v19 = vpop.f32.mrb[93].mxu0  ;;  %v1260_v20 = vpop.f32.mrb[94].mxu1 }
 0x1cf   :  { %v1549_v21 = vpop.f32.mrb[94].mxu0  ;;  %v1262_v22 = vpop.f32.mrb[95].mxu1 }
 0x1d0   :  { %1663 = vst [vmem:[%s3084_s2 + $0x170] sm:$0xff] %v1547_v18  ;;  %v1726_v23 = vadd.f32 %v1725_v12, %v1547_v18  ;;  %v1797_v24 = vmul.f32 %v1547_v18, %v1547_v18  ;;  %v1550_v25 = vadd.f32 %v1549_v21, %v1260_v20  ;;  %v1551_v26 = vpop.f32.mrb[95].mxu0 }
 0x1d2   :  { %v1860_v27 = vadd.f32 %v1859_v14, %v1797_v24  ;;  %1664 = vst [vmem:[%s3084_s2 + $0x178] sm:$0xff] %v1550_v25  ;;  %v1727_v28 = vadd.f32 %v1726_v23, %v1550_v25  ;;  %v1798_v29 = vmul.f32 %v1550_v25, %v1550_v25 }
 0x1d4   :  { %v1861_v30 = vadd.f32 %v1860_v27, %v1798_v29  ;;  %v1265_v31 = vpop.f32.mrb[96].mxu1 }
 0x1d5   :  { %v1554_v32 = vpop.f32.mrb[96].mxu0  ;;  %v1267_v33 = vpop.f32.mrb[97].mxu1 }
 0x1d6   :  { %v1555_v34 = vadd.f32 %v1554_v32, %v1265_v31  ;;  %v1556_v35 = vpop.f32.mrb[97].mxu0  ;;  %v1268_v36 = vpop.f32.mrb[98].mxu1 }
 0x1d7   :  { %v1557_v37 = vpop.f32.mrb[98].mxu0  ;;  %v1270_v38 = vpop.f32.mrb[99].mxu1 }
 0x1d8   :  { %1665 = vst [vmem:[%s3084_s2 + $0x180] sm:$0xff] %v1555_v34  ;;  %v1728_v39 = vadd.f32 %v1727_v28, %v1555_v34  ;;  %v1799_v40 = vmul.f32 %v1555_v34, %v1555_v34  ;;  %v1558_v41 = vadd.f32 %v1557_v37, %v1268_v36  ;;  %v1559_v42 = vpop.f32.mrb[99].mxu0 }
 0x1da   :  { %v1862_v43 = vadd.f32 %v1861_v30, %v1799_v40  ;;  %1666 = vst [vmem:[%s3084_s2 + $0x188] sm:$0xff] %v1558_v41  ;;  %v1729_v44 = vadd.f32 %v1728_v39, %v1558_v41  ;;  %v1800_v45 = vmul.f32 %v1558_v41, %v1558_v41 }
 0x1dc   :  { %v1863_v46 = vadd.f32 %v1862_v43, %v1800_v45  ;;  %v1273_v47 = vpop.f32.mrb[100].mxu1 }
 0x1dd   :  { %v1562_v48 = vpop.f32.mrb[100].mxu0  ;;  %v1275_v49 = vpop.f32.mrb[101].mxu1 }
 0x1de   :  { %v1563_v50 = vadd.f32 %v1562_v48, %v1273_v47  ;;  %v1564_v51 = vpop.f32.mrb[101].mxu0  ;;  %v1276_v52 = vpop.f32.mrb[102].mxu1 }
 0x1df   :  { %v1565_v53 = vpop.f32.mrb[102].mxu0  ;;  %v1278_v54 = vpop.f32.mrb[103].mxu1 }
 0x1e0   :  { %1667 = vst [vmem:[%s3084_s2 + $0x190] sm:$0xff] %v1563_v50  ;;  %v1730_v55 = vadd.f32 %v1729_v44, %v1563_v50  ;;  %v1801_v56 = vmul.f32 %v1563_v50, %v1563_v50  ;;  %v1566_v57 = vadd.f32 %v1565_v53, %v1276_v52  ;;  %v1567_v58 = vpop.f32.mrb[103].mxu0 }
 0x1e2   :  { %v1864_v59 = vadd.f32 %v1863_v46, %v1801_v56  ;;  %1668 = vst [vmem:[%s3084_s2 + $0x198] sm:$0xff] %v1566_v57  ;;  %v1731_v60 = vadd.f32 %v1730_v55, %v1566_v57  ;;  %v1802_v61 = vmul.f32 %v1566_v57, %v1566_v57 }
 0x1e4   :  { %v1865_v62 = vadd.f32 %v1864_v59, %v1802_v61  ;;  %v1281_v63 = vpop.f32.mrb[104].mxu1 }
 0x1e5   :  { %v1570_v0 = vpop.f32.mrb[104].mxu0  ;;  %v1283_v1 = vpop.f32.mrb[105].mxu1 }
 0x1e6   :  { %v1571_v2 = vadd.f32 %v1570_v0, %v1281_v63  ;;  %v1572_v3 = vpop.f32.mrb[105].mxu0  ;;  %v1284_v4 = vpop.f32.mrb[106].mxu1 }
 0x1e7   :  { %v1573_v5 = vpop.f32.mrb[106].mxu0  ;;  %v1286_v6 = vpop.f32.mrb[107].mxu1 }
 0x1e8   :  { %1669 = vst [vmem:[%s3084_s2 + $0x1a0] sm:$0xff] %v1571_v2  ;;  %v1732_v7 = vadd.f32 %v1731_v60, %v1571_v2  ;;  %v1803_v8 = vmul.f32 %v1571_v2, %v1571_v2  ;;  %v1574_v9 = vadd.f32 %v1573_v5, %v1284_v4  ;;  %v1575_v10 = vpop.f32.mrb[107].mxu0 }
 0x1ea   :  { %v1866_v11 = vadd.f32 %v1865_v62, %v1803_v8  ;;  %1670 = vst [vmem:[%s3084_s2 + $0x1a8] sm:$0xff] %v1574_v9  ;;  %v1733_v12 = vadd.f32 %v1732_v7, %v1574_v9  ;;  %v1804_v13 = vmul.f32 %v1574_v9, %v1574_v9 }
 0x1ec   :  { %v1867_v14 = vadd.f32 %v1866_v11, %v1804_v13  ;;  %v1289_v15 = vpop.f32.mrb[108].mxu1 }
 0x1ed   :  { %v1578_v16 = vpop.f32.mrb[108].mxu0  ;;  %v1291_v17 = vpop.f32.mrb[109].mxu1 }
 0x1ee   :  { %v1579_v18 = vadd.f32 %v1578_v16, %v1289_v15  ;;  %v1580_v19 = vpop.f32.mrb[109].mxu0  ;;  %v1292_v20 = vpop.f32.mrb[110].mxu1 }
 0x1ef   :  { %v1581_v21 = vpop.f32.mrb[110].mxu0  ;;  %v1294_v22 = vpop.f32.mrb[111].mxu1 }
 0x1f0   :  { %1671 = vst [vmem:[%s3084_s2 + $0x1b0] sm:$0xff] %v1579_v18  ;;  %v1734_v23 = vadd.f32 %v1733_v12, %v1579_v18  ;;  %v1805_v24 = vmul.f32 %v1579_v18, %v1579_v18  ;;  %v1582_v25 = vadd.f32 %v1581_v21, %v1292_v20  ;;  %v1583_v26 = vpop.f32.mrb[111].mxu0 }
 0x1f2   :  { %v1868_v27 = vadd.f32 %v1867_v14, %v1805_v24  ;;  %1672 = vst [vmem:[%s3084_s2 + $0x1b8] sm:$0xff] %v1582_v25  ;;  %v1735_v28 = vadd.f32 %v1734_v23, %v1582_v25  ;;  %v1806_v29 = vmul.f32 %v1582_v25, %v1582_v25 }
 0x1f4   :  { %v1869_v30 = vadd.f32 %v1868_v27, %v1806_v29  ;;  %v1297_v31 = vpop.f32.mrb[112].mxu1 }
 0x1f5   :  { %v1586_v32 = vpop.f32.mrb[112].mxu0  ;;  %v1299_v33 = vpop.f32.mrb[113].mxu1 }
 0x1f6   :  { %v1587_v34 = vadd.f32 %v1586_v32, %v1297_v31  ;;  %v1588_v35 = vpop.f32.mrb[113].mxu0  ;;  %v1300_v36 = vpop.f32.mrb[114].mxu1 }
 0x1f7   :  { %v1589_v37 = vpop.f32.mrb[114].mxu0  ;;  %v1302_v38 = vpop.f32.mrb[115].mxu1 }
 0x1f8   :  { %1673 = vst [vmem:[%s3084_s2 + $0x1c0] sm:$0xff] %v1587_v34  ;;  %v1736_v39 = vadd.f32 %v1735_v28, %v1587_v34  ;;  %v1807_v40 = vmul.f32 %v1587_v34, %v1587_v34  ;;  %v1590_v41 = vadd.f32 %v1589_v37, %v1300_v36  ;;  %v1591_v42 = vpop.f32.mrb[115].mxu0 }
 0x1fa   :  { %v1870_v43 = vadd.f32 %v1869_v30, %v1807_v40  ;;  %1674 = vst [vmem:[%s3084_s2 + $0x1c8] sm:$0xff] %v1590_v41  ;;  %v1737_v44 = vadd.f32 %v1736_v39, %v1590_v41  ;;  %v1808_v45 = vmul.f32 %v1590_v41, %v1590_v41 }
 0x1fc   :  { %v1871_v46 = vadd.f32 %v1870_v43, %v1808_v45  ;;  %v1305_v47 = vpop.f32.mrb[116].mxu1 }
 0x1fd   :  { %v1594_v48 = vpop.f32.mrb[116].mxu0  ;;  %v1307_v49 = vpop.f32.mrb[117].mxu1 }
 0x1fe   :  { %v1595_v50 = vadd.f32 %v1594_v48, %v1305_v47  ;;  %v1596_v51 = vpop.f32.mrb[117].mxu0  ;;  %v1308_v52 = vpop.f32.mrb[118].mxu1 }
 0x1ff   :  { %v1597_v53 = vpop.f32.mrb[118].mxu0  ;;  %v1310_v54 = vpop.f32.mrb[119].mxu1 }
 0x200   :  { %1675 = vst [vmem:[%s3084_s2 + $0x1d0] sm:$0xff] %v1595_v50  ;;  %v1738_v55 = vadd.f32 %v1737_v44, %v1595_v50  ;;  %v1809_v56 = vmul.f32 %v1595_v50, %v1595_v50  ;;  %v1598_v57 = vadd.f32 %v1597_v53, %v1308_v52  ;;  %v1599_v58 = vpop.f32.mrb[119].mxu0 }
 0x202   :  { %v1872_v59 = vadd.f32 %v1871_v46, %v1809_v56  ;;  %1676 = vst [vmem:[%s3084_s2 + $0x1d8] sm:$0xff] %v1598_v57  ;;  %v1739_v60 = vadd.f32 %v1738_v55, %v1598_v57  ;;  %v1810_v61 = vmul.f32 %v1598_v57, %v1598_v57 }
 0x204   :  { %v1873_v62 = vadd.f32 %v1872_v59, %v1810_v61  ;;  %v1313_v63 = vpop.f32.mrb[120].mxu1 }
 0x205   :  { %v1602_v0 = vpop.f32.mrb[120].mxu0  ;;  %v1315_v1 = vpop.f32.mrb[121].mxu1 }
 0x206   :  { %v1603_v2 = vadd.f32 %v1602_v0, %v1313_v63  ;;  %v1604_v3 = vpop.f32.mrb[121].mxu0  ;;  %v1316_v4 = vpop.f32.mrb[122].mxu1 }
 0x207   :  { %v1605_v5 = vpop.f32.mrb[122].mxu0  ;;  %v1318_v6 = vpop.f32.mrb[123].mxu1 }
 0x208   :  { %1677 = vst [vmem:[%s3084_s2 + $0x1e0] sm:$0xff] %v1603_v2  ;;  %v1740_v7 = vadd.f32 %v1739_v60, %v1603_v2  ;;  %v1811_v8 = vmul.f32 %v1603_v2, %v1603_v2  ;;  %v1606_v9 = vadd.f32 %v1605_v5, %v1316_v4  ;;  %v1607_v10 = vpop.f32.mrb[123].mxu0 }
 0x20a   :  { %v1874_v11 = vadd.f32 %v1873_v62, %v1811_v8  ;;  %1678 = vst [vmem:[%s3084_s2 + $0x1e8] sm:$0xff] %v1606_v9  ;;  %v1741_v12 = vadd.f32 %v1740_v7, %v1606_v9  ;;  %v1812_v13 = vmul.f32 %v1606_v9, %v1606_v9 }
 0x20c   :  { %v1875_v14 = vadd.f32 %v1874_v11, %v1812_v13  ;;  %v1321_v15 = vpop.f32.mrb[124].mxu1 }
 0x20d   :  { %v1610_v16 = vpop.f32.mrb[124].mxu0  ;;  %v1323_v17 = vpop.f32.mrb[125].mxu1 }
 0x20e   :  { %v1611_v18 = vadd.f32 %v1610_v16, %v1321_v15  ;;  %v1612_v19 = vpop.f32.mrb[125].mxu0  ;;  %v1324_v20 = vpop.f32.mrb[126].mxu1 }
 0x20f   :  { %v1613_v21 = vpop.f32.mrb[126].mxu0  ;;  %v1326_v22 = vpop.f32.mrb[127].mxu1 }
 0x210   :  { %1679 = vst [vmem:[%s3084_s2 + $0x1f0] sm:$0xff] %v1611_v18  ;;  %v1742_v23 = vadd.f32 %v1741_v12, %v1611_v18  ;;  %v1813_v24 = vmul.f32 %v1611_v18, %v1611_v18  ;;  %v1614_v25 = vadd.f32 %v1613_v21, %v1324_v20  ;;  %v1615_v26 = vpop.f32.mrb[127].mxu0 }
 0x212   :  { %v1876_v27 = vadd.f32 %v1875_v14, %v1813_v24  ;;  %1680 = vst [vmem:[%s3084_s2 + $0x1f8] sm:$0xff] %v1614_v25  ;;  %v1743_v28 = vadd.f32 %v1742_v23, %v1614_v25  ;;  %v1814_v29 = vmul.f32 %v1614_v25, %v1614_v25 }
 0x214   :  { %v1744_v30 = vrot.slane %v1743_v28, 4  ;;  %v1877_v31 = vadd.f32 %v1876_v27, %v1814_v29 }
 0x216   :  { %v1745_v32 = vadd.f32 %v1744_v30, %v1743_v28  ;;  %v1878_v33 = vrot.slane %v1877_v31, 4 }
 0x218   :  { %v1746_v34 = vrot.slane %v1745_v32, 2  ;;  %v1879_v35 = vadd.f32 %v1878_v33, %v1877_v31 }
 0x21a   :  { %v1747_v36 = vadd.f32 %v1746_v34, %v1745_v32  ;;  %v1880_v37 = vrot.slane %v1879_v35, 2 }
 0x21c   :  { %v1748_v38 = vrot.slane %v1747_v36, 1  ;;  %v1881_v39 = vadd.f32 %v1880_v37, %v1879_v35 }
 0x21e   :  { %v1749_v40 = vadd.f32 %v1748_v38, %v1747_v36  ;;  %v1882_v41 = vrot.slane %v1881_v39, 1 }
 0x220   :  { %1750 = vst [vmem:[%s3085_s3] sm:$0x1] %v1749_v40  ;;  %v1883_v42 = vadd.f32 %v1882_v41, %v1881_v39 }
 0x222   :  { %1884 = vst [vmem:[%s3086_s4] sm:$0x1] %v1883_v42 }

// kernel: generator_forward.14
= control target key start
LH: loop header
LB: loop body
LE: loop exit
PB: predicated region body
PF: predicated region fallthrough
CT: control target
= control target key end

     0   :  { %10 = vsyncpa [#allocation3], 0  ;;  %s2398_s0 = inlined_call_operand.vmem [shape: bf16[2048,256], index: 0, kind: input, shape index: {}]   ;;  %s2399_s1 = inlined_call_operand.vmem [shape: bf16[256,128], index: 1, kind: input, shape index: {}]   ;;  %s2400_s2 = inlined_call_operand.vmem [shape: f32[2048,128], index: 2, kind: output, shape index: {0}]   ;;  %s2401_s3 = inlined_call_operand.hbm [shape: f32[4,1,128], index: 3, kind: output, shape index: {1}]   ;;  %s2402_s4 = inlined_call_operand.hbm [shape: f32[4,1,128], index: 4, kind: output, shape index: {2}]  }
   0x1   :  { %12 = vsyncpa [#allocation3 + $0x1], 0 }
   0x2   :  { %13 = vsyncpa [#allocation5], 0 }
   0x3   :  { %15 = vsyncpa [#allocation5 + $0x1], 0  ;;  %s1847_s15 = smov 0   ;;  %s1849_s16 = smov 0  }
   0x4   :  { %s1851_s17 = smov 0   ;;  %s1853_s18 = smov 0  }
   0x5 LB: > { %s1868_s19 = sadd.s32 4294967295, %s1817_s18   ;;  %s1440_s20 = sadd.s32 4294967294, %s1817_s18   ;;  %s1817_s18 = sphi %s1853_s18, %s2408_s18   ;;  %s1813_s17 = sphi %s1851_s17, %s2407_s17   ;;  %s1809_s16 = sphi %s1849_s16, %s2406_s16   ;;  %s1805_s15 = sphi %s1847_s15, %s2405_s15  }
   0x6   : > { %s1872_s21 = sadd.s32 1, %s1817_s18   ;;  %s101_s22 = sadd.s32 1, %s1813_s17 }
   0x7   : > { %s98_s23 = ssub.s32 %s1817_s18, %s1872_s21  ;;  %p111_p0 = scmp.ne.s32.totalorder %s1813_s17, %s1809_s16 }
   0x8   : > { %p99_p1 = scmp.eq.s32.totalorder %s98_s23, 0  ;;  %p112_p2 = scmp.eq.s32.totalorder %s1868_s19, 3 }
   0x9   : > { %p117_p3 = scmp.ne.s32.totalorder %s1809_s16, %s1805_s15  ;;  %p118_p4 = scmp.eq.s32.totalorder %s1440_s20, 3 }
   0xa   : > { %s1883_s24 = scalar_select %p99_p1, %s1813_s17, %s101_s22  }
   0xb   : > { %p1885_p5 = por %p112_p2, %p111_p0  ;;  %p1889_p6 = por %p118_p4, %p117_p3 }
   0xc   : > { %p1443_p7 = scmp.ge.s32.totalorder %s1817_s18, 1  ;;  %p175_p8 = scmp.lt.s32.totalorder %s1817_s18, 5 }
   0xe   : > { %p176_p9 = pnand %p1443_p7, %p175_p8 }
   0xf   : > { %v1611_v0 = vld [vmem:[%s2399_s1] sm:$0xff] (!%p176_p9)   ;;  %v1819_v1 = vmov (!%p176_p9), 0   ;;  %s1444_s29 = sshll.u32 (!%p176_p9), %s1868_s19, 6  ;;  %v1612_v2 = vld [vmem:[%s2399_s1 + $0x8] sm:$0xff] (!%p176_p9)   ;;  %v1613_v3 = vld [vmem:[%s2399_s1 + $0x10] sm:$0xff] (!%p176_p9)   ;;  %s1820_s7 = smov (!%p176_p9), [#allocation2]  }
  0x10   : > { %179 = sbr.rel (%p176_p9) target bundleno = 529 (0x211), region = 28  ;;  %736 = vmatprep.subr.bf16.mxu0 (!%p176_p9), %v1819_v1  ;;  %1534 = vmatprep.subr.bf16.mxu1 (!%p176_p9), %v1819_v1  ;;  %p211_p10 = scmp.lt.s32.totalorder (!%p176_p9), %s1444_s29, 255  ;;  %v1614_v4 = vld [vmem:[%s2399_s1 + $0x18] sm:$0xff] (!%p176_p9)   ;;  %v1615_v5 = vld [vmem:[%s2399_s1 + $0x20] sm:$0xff] (!%p176_p9)   ;;  %v1616_v7 = vld [vmem:[%s2399_s1 + $0x28] sm:$0xff] (!%p176_p9)  }
  0x11   : > { %737 = vmatpush1.bf16.msra.mxu0 (!%p176_p9), %v1611_v0  ;;  %1550 = vmatpush1.bf16.msra.mxu1 (!%p176_p9), %v1611_v0  ;;  %v1617_v8 = vld [vmem:[%s2399_s1 + $0x30] sm:$0xff] (!%p176_p9)   ;;  %v1618_v9 = vld [vmem:[%s2399_s1 + $0x38] sm:$0xff] (!%p176_p9)   ;;  %v1619_v11 = vld [vmem:[%s2399_s1 + $0x40] sm:$0xff] (!%p176_p9)   ;;  %s1727_s8 = sshll.u32 (!%p176_p9), %s1820_s7, 4  ;;  %s1728_s8 = int_to_ptr.vmem [resolvable:$false] %s1727_s8 }
  0x12   : > { %738 = vmatprep.subr.bf16.mxu0 (!%p176_p9), %v1819_v1  ;;  %1535 = vmatprep.subr.bf16.mxu1 (!%p176_p9), %v1819_v1  ;;  %v1620_v12 = vld [vmem:[%s2399_s1 + $0x48] sm:$0xff] (!%p176_p9)   ;;  %v1621_v13 = vld [vmem:[%s2399_s1 + $0x50] sm:$0xff] (!%p176_p9)   ;;  %v1622_v14 = vld [vmem:[%s2399_s1 + $0x58] sm:$0xff] (!%p176_p9)   ;;  %s1729_s9 = scalar_lea.vmem (!%p176_p9), %s1728_s8, 32 }
  0x13   : > { %v1623_v15 = vld [vmem:[%s2399_s1 + $0x60] sm:$0xff] (!%p176_p9)   ;;  %v1624_v16 = vld [vmem:[%s2399_s1 + $0x68] sm:$0xff] (!%p176_p9)   ;;  %v1625_v17 = vld [vmem:[%s2399_s1 + $0x70] sm:$0xff] (!%p176_p9)  }
  0x14   : > { %v1626_v18 = vld [vmem:[%s2399_s1 + $0x78] sm:$0xff] (!%p176_p9)  }
  0x15   : > { %739 = vmatpush1.bf16.msra.mxu0 (!%p176_p9), %v1612_v2  ;;  %1551 = vmatpush1.bf16.msra.mxu1 (!%p176_p9), %v1612_v2 }
  0x16   : > { %740 = vmatprep.subr.bf16.mxu0 (!%p176_p9), %v1819_v1  ;;  %1536 = vmatprep.subr.bf16.mxu1 (!%p176_p9), %v1819_v1 }
  0x17   : > { %s2410_s29 = smov (!%p211_p10, %s1444_s29), 255 }
  0x18   : > { %s1533_s10 = sshll.u32 %s2410_s29, 3  ;;  %s2314_s29 = sand.u32 1, %s1809_s16  }
  0x19   : > { %741 = vmatpush1.bf16.msra.mxu0 %v1613_v3  ;;  %1552 = vmatpush1.bf16.msra.mxu1 %v1613_v3  ;;  %s1927_s20 = scalar_lea.vmem %s2398_s0, %s1533_s10  ;;  %s2055_s11 = scalar_lea.vmem %s2400_s2, %s1533_s10 }
  0x1a   : > { %742 = vmatprep.subr.bf16.mxu0 %v1819_v1  ;;  %1537 = vmatprep.subr.bf16.mxu1 %v1819_v1  ;;  %v1629_v6 = vld [vmem:[%s1927_s20 + $0x4] ss:$8 sps:$4 sm:$0xff]   ;;  %v1627_v19 = vld [vmem:[%s1927_s20] ss:$8 sps:$4 sm:$0xff]   ;;  %v1630_v21 = vld [vmem:[%s1927_s20 + $0x14] ss:$8 sps:$4 sm:$0xff]  }
  0x1b   : > { %768 = vmatprep.mubr.bf16.mxu0 %v1629_v6  ;;  %v1653_v10 = vld [vmem:[%s1927_s20 + $0x104] ss:$8 sps:$4 sm:$0xff]   ;;  %v1651_v20 = vld [vmem:[%s1927_s20 + $0x100] ss:$8 sps:$4 sm:$0xff]   ;;  %v1657_v22 = vld [vmem:[%s1927_s20 + $0x114] ss:$8 sps:$4 sm:$0xff]  }
  0x1c   : > { %896 = vmatprep.mubr.bf16.mxu1 %v1653_v10  ;;  %v1632_v23 = vld [vmem:[%s1927_s20 + $0x10] ss:$8 sps:$4 sm:$0xff]   ;;  %v1633_v25 = vld [vmem:[%s1927_s20 + $0x24] ss:$8 sps:$4 sm:$0xff]   ;;  %v1635_v27 = vld [vmem:[%s1927_s20 + $0x20] ss:$8 sps:$4 sm:$0xff]  }
  0x1d   : > { %743 = vmatpush1.bf16.msra.mxu0 %v1614_v4  ;;  %1553 = vmatpush1.bf16.msra.mxu1 %v1614_v4  ;;  %v1659_v24 = vld [vmem:[%s1927_s20 + $0x110] ss:$8 sps:$4 sm:$0xff]   ;;  %v1663_v26 = vld [vmem:[%s1927_s20 + $0x124] ss:$8 sps:$4 sm:$0xff]   ;;  %v1665_v28 = vld [vmem:[%s1927_s20 + $0x120] ss:$8 sps:$4 sm:$0xff]  }
  0x1e   : > { %744 = vmatprep.subr.bf16.mxu0 %v1819_v1  ;;  %1538 = vmatprep.subr.bf16.mxu1 %v1819_v1  ;;  %v1636_v29 = vld [vmem:[%s1927_s20 + $0x34] ss:$8 sps:$4 sm:$0xff]   ;;  %v1638_v31 = vld [vmem:[%s1927_s20 + $0x30] ss:$8 sps:$4 sm:$0xff]   ;;  %v1639_v33 = vld [vmem:[%s1927_s20 + $0x44] ss:$8 sps:$4 sm:$0xff]  }
  0x1f   : > { %v1669_v30 = vld [vmem:[%s1927_s20 + $0x134] ss:$8 sps:$4 sm:$0xff]   ;;  %v1671_v32 = vld [vmem:[%s1927_s20 + $0x130] ss:$8 sps:$4 sm:$0xff]   ;;  %v1675_v34 = vld [vmem:[%s1927_s20 + $0x144] ss:$8 sps:$4 sm:$0xff]  }
  0x20   : > { %v1641_v35 = vld [vmem:[%s1927_s20 + $0x40] ss:$8 sps:$4 sm:$0xff]   ;;  %v1642_v37 = vld [vmem:[%s1927_s20 + $0x54] ss:$8 sps:$4 sm:$0xff]   ;;  %v1644_v39 = vld [vmem:[%s1927_s20 + $0x50] ss:$8 sps:$4 sm:$0xff]  }
  0x21   : > { %745 = vmatpush1.bf16.msra.mxu0 %v1615_v5  ;;  %1554 = vmatpush1.bf16.msra.mxu1 %v1615_v5  ;;  %v1677_v36 = vld [vmem:[%s1927_s20 + $0x140] ss:$8 sps:$4 sm:$0xff]   ;;  %v1681_v38 = vld [vmem:[%s1927_s20 + $0x154] ss:$8 sps:$4 sm:$0xff]   ;;  %v1683_v40 = vld [vmem:[%s1927_s20 + $0x150] ss:$8 sps:$4 sm:$0xff]  }
  0x22   : > { %746 = vmatprep.subr.bf16.mxu0 %v1819_v1  ;;  %1539 = vmatprep.subr.bf16.mxu1 %v1819_v1  ;;  %v1645_v41 = vld [vmem:[%s1927_s20 + $0x64] ss:$8 sps:$4 sm:$0xff]   ;;  %v1647_v43 = vld [vmem:[%s1927_s20 + $0x60] ss:$8 sps:$4 sm:$0xff]   ;;  %v1648_v45 = vld [vmem:[%s1927_s20 + $0x74] ss:$8 sps:$4 sm:$0xff]  }
  0x23   : > { %v1687_v42 = vld [vmem:[%s1927_s20 + $0x164] ss:$8 sps:$4 sm:$0xff]   ;;  %v1689_v44 = vld [vmem:[%s1927_s20 + $0x160] ss:$8 sps:$4 sm:$0xff]   ;;  %v1693_v46 = vld [vmem:[%s1927_s20 + $0x174] ss:$8 sps:$4 sm:$0xff]  }
  0x24   : > { %v1650_v47 = vld [vmem:[%s1927_s20 + $0x70] ss:$8 sps:$4 sm:$0xff]   ;;  %v1654_v49 = vld [vmem:[%s1927_s20 + $0x84] ss:$8 sps:$4 sm:$0xff]   ;;  %v1656_v51 = vld [vmem:[%s1927_s20 + $0x80] ss:$8 sps:$4 sm:$0xff]  }
  0x25   : > { %747 = vmatpush1.bf16.msra.mxu0 %v1616_v7  ;;  %1555 = vmatpush1.bf16.msra.mxu1 %v1616_v7  ;;  %v1695_v48 = vld [vmem:[%s1927_s20 + $0x170] ss:$8 sps:$4 sm:$0xff]   ;;  %v1699_v50 = vld [vmem:[%s1927_s20 + $0x184] ss:$8 sps:$4 sm:$0xff]   ;;  %v1701_v52 = vld [vmem:[%s1927_s20 + $0x180] ss:$8 sps:$4 sm:$0xff]  }
  0x26   : > { %748 = vmatprep.subr.bf16.mxu0 %v1819_v1  ;;  %1540 = vmatprep.subr.bf16.mxu1 %v1819_v1  ;;  %v1660_v53 = vld [vmem:[%s1927_s20 + $0x94] ss:$8 sps:$4 sm:$0xff]   ;;  %v1662_v55 = vld [vmem:[%s1927_s20 + $0x90] ss:$8 sps:$4 sm:$0xff]   ;;  %v1666_v57 = vld [vmem:[%s1927_s20 + $0xa4] ss:$8 sps:$4 sm:$0xff]  }
  0x27   : > { %v1702_v54 = vld [vmem:[%s1927_s20 + $0x194] ss:$8 sps:$4 sm:$0xff]   ;;  %v1704_v56 = vld [vmem:[%s1927_s20 + $0x190] ss:$8 sps:$4 sm:$0xff]   ;;  %v1705_v58 = vld [vmem:[%s1927_s20 + $0x1a4] ss:$8 sps:$4 sm:$0xff]  }
  0x28   : > { %v1668_v59 = vld [vmem:[%s1927_s20 + $0xa0] ss:$8 sps:$4 sm:$0xff]   ;;  %v1672_v61 = vld [vmem:[%s1927_s20 + $0xb4] ss:$8 sps:$4 sm:$0xff]   ;;  %v1674_v63 = vld [vmem:[%s1927_s20 + $0xb0] ss:$8 sps:$4 sm:$0xff]  }
  0x29   : > { %749 = vmatpush1.bf16.msra.mxu0 %v1617_v8  ;;  %1556 = vmatpush1.bf16.msra.mxu1 %v1617_v8  ;;  %v1707_v60 = vld [vmem:[%s1927_s20 + $0x1a0] ss:$8 sps:$4 sm:$0xff]   ;;  %v1708_v62 = vld [vmem:[%s1927_s20 + $0x1b4] ss:$8 sps:$4 sm:$0xff]   ;;  %v1710_v0 = vld [vmem:[%s1927_s20 + $0x1b0] ss:$8 sps:$4 sm:$0xff]  }
  0x2a   : > { %750 = vmatprep.subr.bf16.mxu0 %v1819_v1  ;;  %1541 = vmatprep.subr.bf16.mxu1 %v1819_v1  ;;  %v1711_v2 = vld [vmem:[%s1927_s20 + $0x1c4] ss:$8 sps:$4 sm:$0xff]   ;;  %v1680_v3 = vld [vmem:[%s1927_s20 + $0xc0] ss:$8 sps:$4 sm:$0xff]   ;;  %v1684_v5 = vld [vmem:[%s1927_s20 + $0xd4] ss:$8 sps:$4 sm:$0xff]  }
  0x2b   : > { %v1713_v4 = vld [vmem:[%s1927_s20 + $0x1c0] ss:$8 sps:$4 sm:$0xff]   ;;  %v1714_v6 = vld [vmem:[%s1927_s20 + $0x1d4] ss:$8 sps:$4 sm:$0xff]   ;;  %v1686_v7 = vld [vmem:[%s1927_s20 + $0xd0] ss:$8 sps:$4 sm:$0xff]  }
  0x2c   : > { %v1716_v8 = vld [vmem:[%s1927_s20 + $0x1d0] ss:$8 sps:$4 sm:$0xff]   ;;  %v1717_v10 = vld [vmem:[%s1927_s20 + $0x1e4] ss:$8 sps:$4 sm:$0xff]   ;;  %s1529_s10 = sshll.u32 %s1868_s19, 4  ;;  %s209_s13 = scalar_lea.vmem [#allocation4], %s2314_s29 }
  0x2d   : > { %751 = vmatpush1.bf16.msra.mxu0 %v1618_v9  ;;  %1557 = vmatpush1.bf16.msra.mxu1 %v1618_v9  ;;  %v1690_v9 = vld [vmem:[%s1927_s20 + $0xe4] ss:$8 sps:$4 sm:$0xff]   ;;  %s1332_s14 = sshll.u32 %s209_s13, 4  ;;  %s2324_s27 = scalar_lea.hbm %s2401_s3, %s1529_s10  ;;  %s2333_s14 = int_to_ptr.vmem [resolvable:$true] %s1332_s14 }
  0x2e   : > { %752 = vmatprep.subr.bf16.mxu0 %v1819_v1  ;;  %1542 = vmatprep.subr.bf16.mxu1 %v1819_v1  ;;  %s2331_s30 = scalar_lea.hbm %s2402_s4, %s1529_s10  ;;  %s1299_s5 = scalar_lea.sflag [#allocation3], %s2314_s29 }
  0x31   : > { %753 = vmatpush1.bf16.msra.mxu0 %v1619_v11  ;;  %1558 = vmatpush1.bf16.msra.mxu1 %v1619_v11  ;;  %v1692_v11 = vld [vmem:[%s1927_s20 + $0xe0] ss:$8 sps:$4 sm:$0xff]  }
  0x32   : > { %754 = vmatprep.subr.bf16.mxu0 %v1819_v1  ;;  %1543 = vmatprep.subr.bf16.mxu1 %v1819_v1 }
  0x35   : > { %755 = vmatpush1.bf16.msra.mxu0 %v1620_v12  ;;  %1559 = vmatpush1.bf16.msra.mxu1 %v1620_v12  ;;  %v1719_v12 = vld [vmem:[%s1927_s20 + $0x1e0] ss:$8 sps:$4 sm:$0xff]  }
  0x36   : > { %756 = vmatprep.subr.bf16.mxu0 %v1819_v1  ;;  %1544 = vmatprep.subr.bf16.mxu1 %v1819_v1 }
  0x39   : > { %757 = vmatpush1.bf16.msra.mxu0 %v1621_v13  ;;  %1560 = vmatpush1.bf16.msra.mxu1 %v1621_v13  ;;  %v1696_v13 = vld [vmem:[%s1927_s20 + $0xf4] ss:$8 sps:$4 sm:$0xff]  }
  0x3a   : > { %758 = vmatprep.subr.bf16.mxu0 %v1819_v1  ;;  %1545 = vmatprep.subr.bf16.mxu1 %v1819_v1 }
  0x3d   : > { %759 = vmatpush1.bf16.msra.mxu0 %v1622_v14  ;;  %1561 = vmatpush1.bf16.msra.mxu1 %v1622_v14  ;;  %v1720_v14 = vld [vmem:[%s1927_s20 + $0x1f4] ss:$8 sps:$4 sm:$0xff]  }
  0x3e   : > { %760 = vmatprep.subr.bf16.mxu0 %v1819_v1  ;;  %1546 = vmatprep.subr.bf16.mxu1 %v1819_v1 }
  0x41   : > { %761 = vmatpush1.bf16.msra.mxu0 %v1623_v15  ;;  %1562 = vmatpush1.bf16.msra.mxu1 %v1623_v15  ;;  %v1698_v15 = vld [vmem:[%s1927_s20 + $0xf0] ss:$8 sps:$4 sm:$0xff]  }
  0x42   : > { %762 = vmatprep.subr.bf16.mxu0 %v1819_v1  ;;  %1547 = vmatprep.subr.bf16.mxu1 %v1819_v1 }
  0x45   : > { %763 = vmatpush1.bf16.msra.mxu0 %v1624_v16  ;;  %1563 = vmatpush1.bf16.msra.mxu1 %v1624_v16  ;;  %v1722_v16 = vld [vmem:[%s1927_s20 + $0x1f0] ss:$8 sps:$4 sm:$0xff]  }
  0x46   : > { %764 = vmatprep.subr.bf16.mxu0 %v1819_v1  ;;  %1548 = vmatprep.subr.bf16.mxu1 %v1819_v1 }
  0x49   : > { %765 = vmatpush1.bf16.msra.mxu0 %v1625_v17  ;;  %1564 = vmatpush1.bf16.msra.mxu1 %v1625_v17 }
  0x4a   : > { %766 = vmatprep.subr.bf16.mxu0 %v1819_v1  ;;  %1549 = vmatprep.subr.bf16.mxu1 %v1819_v1  ;;  %v1678_v1 = vld [vmem:[%s1927_s20 + $0xc4] ss:$8 sps:$4 sm:$0xff]   ;;  %s203_s20 = scalar_lea.vmem [#allocation2], %s2314_s29 }
  0x4b   : > { %s1319_s12 = sshll.u32 %s203_s20, 4  ;;  %s2326_s12 = int_to_ptr.vmem [resolvable:$true] %s1319_s12 }
  0x4c   : > { %s1723_s6 = scalar_lea.vmem %s2326_s12, 16  ;;  %p1730_p0 = scmp.lt.s32.totalorder %s2326_s12, %s1728_s8 }
  0x4d   : > { %767 = vmatpush1.bf16.msra.mxu0 %v1626_v18  ;;  %1565 = vmatpush1.bf16.msra.mxu1 %v1626_v18  ;;  %p1724_p11 = scmp.ne.s32.totalorder %s2326_s12, %s1723_s6  ;;  %p1731_p1 = scmp.lt.s32.totalorder %s1729_s9, %s1723_s6 }
  0x4f   : > { %p1725_p12 = pnand %p1724_p11, %p1885_p5  ;;  %p1732_p2 = por %p1731_p1, %p1730_p0 }
  0x50   : > { %769 = vmatmul.mubr.bf16.vlgmr.msra.gmra.mrb[0].mxu0 %v1627_v19  ;;  %897 = vmatmul.mubr.bf16.vlgmr.msra.gmra.mrb[0].mxu1 %v1651_v20 }
  0x51   : > { %776 = vmatprep.mubr.bf16.mxu0 %v1630_v21  ;;  %904 = vmatprep.mubr.bf16.mxu1 %v1657_v22  ;;  %p1726_p13 = pneg %p1725_p12 }
  0x53   : > { %p1733_p3 = pnand %p1732_p2, %p1726_p13 }
  0x58   : > { %777 = vmatmul.mubr.bf16.gmra.mrb[4].mxu0 %v1632_v23  ;;  %905 = vmatmul.mubr.bf16.gmra.mrb[4].mxu1 %v1659_v24 }
  0x59   : > { %784 = vmatprep.mubr.bf16.mxu0 %v1633_v25  ;;  %912 = vmatprep.mubr.bf16.mxu1 %v1663_v26 }
  0x60   : > { %785 = vmatmul.mubr.bf16.gmra.mrb[8].mxu0 %v1635_v27  ;;  %913 = vmatmul.mubr.bf16.gmra.mrb[8].mxu1 %v1665_v28 }
  0x61   : > { %792 = vmatprep.mubr.bf16.mxu0 %v1636_v29  ;;  %920 = vmatprep.mubr.bf16.mxu1 %v1669_v30 }
  0x68   : > { %793 = vmatmul.mubr.bf16.gmra.mrb[12].mxu0 %v1638_v31  ;;  %921 = vmatmul.mubr.bf16.gmra.mrb[12].mxu1 %v1671_v32 }
  0x69   : > { %800 = vmatprep.mubr.bf16.mxu0 %v1639_v33  ;;  %928 = vmatprep.mubr.bf16.mxu1 %v1675_v34 }
  0x70   : > { %801 = vmatmul.mubr.bf16.gmra.mrb[16].mxu0 %v1641_v35  ;;  %929 = vmatmul.mubr.bf16.gmra.mrb[16].mxu1 %v1677_v36 }
  0x71   : > { %808 = vmatprep.mubr.bf16.mxu0 %v1642_v37  ;;  %936 = vmatprep.mubr.bf16.mxu1 %v1681_v38 }
  0x78   : > { %809 = vmatmul.mubr.bf16.gmra.mrb[20].mxu0 %v1644_v39  ;;  %937 = vmatmul.mubr.bf16.gmra.mrb[20].mxu1 %v1683_v40 }
  0x79   : > { %816 = vmatprep.mubr.bf16.mxu0 %v1645_v41  ;;  %944 = vmatprep.mubr.bf16.mxu1 %v1687_v42 }
  0x80   : > { %817 = vmatmul.mubr.bf16.gmra.mrb[24].mxu0 %v1647_v43  ;;  %945 = vmatmul.mubr.bf16.gmra.mrb[24].mxu1 %v1689_v44 }
  0x81   : > { %824 = vmatprep.mubr.bf16.mxu0 %v1648_v45  ;;  %952 = vmatprep.mubr.bf16.mxu1 %v1693_v46 }
  0x88   : > { %825 = vmatmul.mubr.bf16.gmra.mrb[28].mxu0 %v1650_v47  ;;  %953 = vmatmul.mubr.bf16.gmra.mrb[28].mxu1 %v1695_v48 }
  0x89   : > { %832 = vmatprep.mubr.bf16.mxu0 %v1654_v49  ;;  %960 = vmatprep.mubr.bf16.mxu1 %v1699_v50 }
  0x90   : > { %833 = vmatmul.mubr.bf16.gmra.mrb[32].mxu0 %v1656_v51  ;;  %961 = vmatmul.mubr.bf16.gmra.mrb[32].mxu1 %v1701_v52 }
  0x91   : > { %840 = vmatprep.mubr.bf16.mxu0 %v1660_v53  ;;  %968 = vmatprep.mubr.bf16.mxu1 %v1702_v54 }
  0x98   : > { %841 = vmatmul.mubr.bf16.gmra.mrb[36].mxu0 %v1662_v55  ;;  %969 = vmatmul.mubr.bf16.gmra.mrb[36].mxu1 %v1704_v56 }
  0x99   : > { %848 = vmatprep.mubr.bf16.mxu0 %v1666_v57  ;;  %976 = vmatprep.mubr.bf16.mxu1 %v1705_v58 }
  0xa0   : > { %849 = vmatmul.mubr.bf16.gmra.mrb[40].mxu0 %v1668_v59  ;;  %977 = vmatmul.mubr.bf16.gmra.mrb[40].mxu1 %v1707_v60 }
  0xa1   : > { %856 = vmatprep.mubr.bf16.mxu0 %v1672_v61  ;;  %984 = vmatprep.mubr.bf16.mxu1 %v1708_v62 }
  0xa8   : > { %857 = vmatmul.mubr.bf16.gmra.mrb[44].mxu0 %v1674_v63  ;;  %985 = vmatmul.mubr.bf16.gmra.mrb[44].mxu1 %v1710_v0 }
  0xa9   : > { %864 = vmatprep.mubr.bf16.mxu0 %v1678_v1  ;;  %992 = vmatprep.mubr.bf16.mxu1 %v1711_v2 }
  0xb0   : > { %865 = vmatmul.mubr.bf16.gmra.mrb[48].mxu0 %v1680_v3  ;;  %993 = vmatmul.mubr.bf16.gmra.mrb[48].mxu1 %v1713_v4 }
  0xb1   : > { %872 = vmatprep.mubr.bf16.mxu0 %v1684_v5  ;;  %1000 = vmatprep.mubr.bf16.mxu1 %v1714_v6 }
  0xb8   : > { %873 = vmatmul.mubr.bf16.gmra.mrb[52].mxu0 %v1686_v7  ;;  %1001 = vmatmul.mubr.bf16.gmra.mrb[52].mxu1 %v1716_v8 }
  0xb9   : > { %880 = vmatprep.mubr.bf16.mxu0 %v1690_v9  ;;  %1008 = vmatprep.mubr.bf16.mxu1 %v1717_v10 }
  0xc0   : > { %881 = vmatmul.mubr.bf16.gmra.mrb[56].mxu0 %v1692_v11  ;;  %1009 = vmatmul.mubr.bf16.gmra.mrb[56].mxu1 %v1719_v12 }
  0xc1   : > { %888 = vmatprep.mubr.bf16.mxu0 %v1696_v13  ;;  %1016 = vmatprep.mubr.bf16.mxu1 %v1720_v14 }
  0xc8   : > { %889 = vmatmul.mubr.bf16.gmra.mrb[60].mxu0 %v1698_v15  ;;  %1017 = vmatmul.mubr.bf16.gmra.mrb[60].mxu1 %v1722_v16 }
 0x123   : > { %v770_v17 = vpop.f32.mrb[0].mxu0  ;;  %v2057_v18 = vpop.f32.mrb[0].mxu1 }
 0x124   : > { %1025 = vst [vmem:[%s2055_s11] sm:$0xff] %v770_v17  ;;  %v772_v19 = vpop.f32.mrb[1].mxu0  ;;  %1057 = vst [vmem:[%s2055_s11 + $0x100] sm:$0xff] %v2057_v18  ;;  %v900_v20 = vpop.f32.mrb[1].mxu1  ;;  %v1159_v23 = vmul.f32 %v770_v17, %v770_v17 }
 0x125   : > { %v773_v21 = vpop.f32.mrb[2].mxu0  ;;  %v2062_v22 = vpop.f32.mrb[2].mxu1 }
 0x126   : > { %1026 = vst [vmem:[%s2055_s11 + $0x8] sm:$0xff] %v773_v21  ;;  %v1089_v24 = vadd.f32 %v773_v21, %v770_v17  ;;  %v1160_v25 = vmul.f32 %v773_v21, %v773_v21  ;;  %v775_v26 = vpop.f32.mrb[3].mxu0  ;;  %1058 = vst [vmem:[%s2055_s11 + $0x108] sm:$0xff] %v2062_v22  ;;  %v903_v27 = vpop.f32.mrb[3].mxu1 }
 0x128   : > { %v1223_v28 = vadd.f32 %v1160_v25, %v1159_v23 }
 0x12b   : > { %v778_v29 = vpop.f32.mrb[4].mxu0  ;;  %v2067_v30 = vpop.f32.mrb[4].mxu1 }
 0x12c   : > { %1027 = vst [vmem:[%s2055_s11 + $0x10] sm:$0xff] %v778_v29  ;;  %v1090_v31 = vadd.f32 %v1089_v24, %v778_v29  ;;  %v1161_v32 = vmul.f32 %v778_v29, %v778_v29  ;;  %v780_v33 = vpop.f32.mrb[5].mxu0  ;;  %1059 = vst [vmem:[%s2055_s11 + $0x110] sm:$0xff] %v2067_v30  ;;  %v908_v34 = vpop.f32.mrb[5].mxu1 }
 0x12d   : > { %v781_v35 = vpop.f32.mrb[6].mxu0  ;;  %v2072_v36 = vpop.f32.mrb[6].mxu1 }
 0x12e   : > { %v1224_v37 = vadd.f32 %v1223_v28, %v1161_v32  ;;  %1028 = vst [vmem:[%s2055_s11 + $0x18] sm:$0xff] %v781_v35  ;;  %v1091_v38 = vadd.f32 %v1090_v31, %v781_v35  ;;  %v1162_v39 = vmul.f32 %v781_v35, %v781_v35  ;;  %v783_v40 = vpop.f32.mrb[7].mxu0  ;;  %1060 = vst [vmem:[%s2055_s11 + $0x118] sm:$0xff] %v2072_v36  ;;  %v911_v41 = vpop.f32.mrb[7].mxu1 }
 0x130   : > { %v1225_v42 = vadd.f32 %v1224_v37, %v1162_v39 }
 0x133   : > { %v786_v43 = vpop.f32.mrb[8].mxu0  ;;  %v2077_v44 = vpop.f32.mrb[8].mxu1 }
 0x134   : > { %1029 = vst [vmem:[%s2055_s11 + $0x20] sm:$0xff] %v786_v43  ;;  %v1092_v45 = vadd.f32 %v1091_v38, %v786_v43  ;;  %v1163_v46 = vmul.f32 %v786_v43, %v786_v43  ;;  %v788_v47 = vpop.f32.mrb[9].mxu0  ;;  %1061 = vst [vmem:[%s2055_s11 + $0x120] sm:$0xff] %v2077_v44  ;;  %v916_v48 = vpop.f32.mrb[9].mxu1 }
 0x135   : > { %v789_v49 = vpop.f32.mrb[10].mxu0  ;;  %v2082_v50 = vpop.f32.mrb[10].mxu1 }
 0x136   : > { %v1226_v51 = vadd.f32 %v1225_v42, %v1163_v46  ;;  %1030 = vst [vmem:[%s2055_s11 + $0x28] sm:$0xff] %v789_v49  ;;  %v1093_v52 = vadd.f32 %v1092_v45, %v789_v49  ;;  %v1164_v53 = vmul.f32 %v789_v49, %v789_v49  ;;  %v791_v54 = vpop.f32.mrb[11].mxu0  ;;  %1062 = vst [vmem:[%s2055_s11 + $0x128] sm:$0xff] %v2082_v50  ;;  %v919_v55 = vpop.f32.mrb[11].mxu1 }
 0x138   : > { %v1227_v56 = vadd.f32 %v1226_v51, %v1164_v53 }
 0x13b   : > { %v794_v57 = vpop.f32.mrb[12].mxu0  ;;  %v2087_v58 = vpop.f32.mrb[12].mxu1 }
 0x13c   : > { %1031 = vst [vmem:[%s2055_s11 + $0x30] sm:$0xff] %v794_v57  ;;  %v1094_v59 = vadd.f32 %v1093_v52, %v794_v57  ;;  %v1165_v60 = vmul.f32 %v794_v57, %v794_v57  ;;  %v796_v61 = vpop.f32.mrb[13].mxu0  ;;  %1063 = vst [vmem:[%s2055_s11 + $0x130] sm:$0xff] %v2087_v58  ;;  %v924_v62 = vpop.f32.mrb[13].mxu1 }
 0x13d   : > { %v797_v63 = vpop.f32.mrb[14].mxu0  ;;  %v2092_v0 = vpop.f32.mrb[14].mxu1 }
 0x13e   : > { %v1228_v1 = vadd.f32 %v1227_v56, %v1165_v60  ;;  %1032 = vst [vmem:[%s2055_s11 + $0x38] sm:$0xff] %v797_v63  ;;  %v1095_v2 = vadd.f32 %v1094_v59, %v797_v63  ;;  %v1166_v3 = vmul.f32 %v797_v63, %v797_v63  ;;  %v799_v4 = vpop.f32.mrb[15].mxu0  ;;  %1064 = vst [vmem:[%s2055_s11 + $0x138] sm:$0xff] %v2092_v0  ;;  %v927_v5 = vpop.f32.mrb[15].mxu1 }
 0x140   : > { %v1229_v6 = vadd.f32 %v1228_v1, %v1166_v3 }
 0x143   : > { %v802_v7 = vpop.f32.mrb[16].mxu0  ;;  %v2097_v8 = vpop.f32.mrb[16].mxu1 }
 0x144   : > { %1033 = vst [vmem:[%s2055_s11 + $0x40] sm:$0xff] %v802_v7  ;;  %v1096_v9 = vadd.f32 %v1095_v2, %v802_v7  ;;  %v1167_v10 = vmul.f32 %v802_v7, %v802_v7  ;;  %v804_v11 = vpop.f32.mrb[17].mxu0  ;;  %1065 = vst [vmem:[%s2055_s11 + $0x140] sm:$0xff] %v2097_v8  ;;  %v932_v12 = vpop.f32.mrb[17].mxu1 }
 0x145   : > { %v805_v13 = vpop.f32.mrb[18].mxu0  ;;  %v2102_v14 = vpop.f32.mrb[18].mxu1 }
 0x146   : > { %v1230_v15 = vadd.f32 %v1229_v6, %v1167_v10  ;;  %1034 = vst [vmem:[%s2055_s11 + $0x48] sm:$0xff] %v805_v13  ;;  %v1097_v16 = vadd.f32 %v1096_v9, %v805_v13  ;;  %v1168_v17 = vmul.f32 %v805_v13, %v805_v13  ;;  %v807_v19 = vpop.f32.mrb[19].mxu0  ;;  %1066 = vst [vmem:[%s2055_s11 + $0x148] sm:$0xff] %v2102_v14  ;;  %v935_v20 = vpop.f32.mrb[19].mxu1 }
 0x148   : > { %v1231_v21 = vadd.f32 %v1230_v15, %v1168_v17 }
 0x14b   : > { %v810_v23 = vpop.f32.mrb[20].mxu0  ;;  %v2107_v24 = vpop.f32.mrb[20].mxu1 }
 0x14c   : > { %1035 = vst [vmem:[%s2055_s11 + $0x50] sm:$0xff] %v810_v23  ;;  %v1098_v25 = vadd.f32 %v1097_v16, %v810_v23  ;;  %v1169_v26 = vmul.f32 %v810_v23, %v810_v23  ;;  %v812_v27 = vpop.f32.mrb[21].mxu0  ;;  %1067 = vst [vmem:[%s2055_s11 + $0x150] sm:$0xff] %v2107_v24  ;;  %v940_v28 = vpop.f32.mrb[21].mxu1 }
 0x14d   : > { %v813_v29 = vpop.f32.mrb[22].mxu0  ;;  %v2112_v31 = vpop.f32.mrb[22].mxu1 }
 0x14e   : > { %v1232_v32 = vadd.f32 %v1231_v21, %v1169_v26  ;;  %1036 = vst [vmem:[%s2055_s11 + $0x58] sm:$0xff] %v813_v29  ;;  %v1099_v33 = vadd.f32 %v1098_v25, %v813_v29  ;;  %v1170_v34 = vmul.f32 %v813_v29, %v813_v29  ;;  %v815_v35 = vpop.f32.mrb[23].mxu0  ;;  %1068 = vst [vmem:[%s2055_s11 + $0x158] sm:$0xff] %v2112_v31  ;;  %v943_v37 = vpop.f32.mrb[23].mxu1 }
 0x150   : > { %v1233_v38 = vadd.f32 %v1232_v32, %v1170_v34 }
 0x153   : > { %v818_v39 = vpop.f32.mrb[24].mxu0  ;;  %v2117_v40 = vpop.f32.mrb[24].mxu1 }
 0x154   : > { %1037 = vst [vmem:[%s2055_s11 + $0x60] sm:$0xff] %v818_v39  ;;  %v1100_v41 = vadd.f32 %v1099_v33, %v818_v39  ;;  %v1171_v42 = vmul.f32 %v818_v39, %v818_v39  ;;  %v820_v43 = vpop.f32.mrb[25].mxu0  ;;  %1069 = vst [vmem:[%s2055_s11 + $0x160] sm:$0xff] %v2117_v40  ;;  %v948_v45 = vpop.f32.mrb[25].mxu1 }
 0x155   : > { %v821_v46 = vpop.f32.mrb[26].mxu0  ;;  %v2122_v47 = vpop.f32.mrb[26].mxu1 }
 0x156   : > { %v1234_v48 = vadd.f32 %v1233_v38, %v1171_v42  ;;  %1038 = vst [vmem:[%s2055_s11 + $0x68] sm:$0xff] %v821_v46  ;;  %v1101_v49 = vadd.f32 %v1100_v41, %v821_v46  ;;  %v1172_v51 = vmul.f32 %v821_v46, %v821_v46  ;;  %v823_v52 = vpop.f32.mrb[27].mxu0  ;;  %1070 = vst [vmem:[%s2055_s11 + $0x168] sm:$0xff] %v2122_v47  ;;  %v951_v53 = vpop.f32.mrb[27].mxu1 }
 0x158   : > { %v1235_v54 = vadd.f32 %v1234_v48, %v1172_v51 }
 0x15b   : > { %v826_v55 = vpop.f32.mrb[28].mxu0  ;;  %v2127_v56 = vpop.f32.mrb[28].mxu1 }
 0x15c   : > { %1039 = vst [vmem:[%s2055_s11 + $0x70] sm:$0xff] %v826_v55  ;;  %v1102_v57 = vadd.f32 %v1101_v49, %v826_v55  ;;  %v1173_v59 = vmul.f32 %v826_v55, %v826_v55  ;;  %v828_v60 = vpop.f32.mrb[29].mxu0  ;;  %1071 = vst [vmem:[%s2055_s11 + $0x170] sm:$0xff] %v2127_v56  ;;  %v956_v61 = vpop.f32.mrb[29].mxu1 }
 0x15d   : > { %v829_v62 = vpop.f32.mrb[30].mxu0  ;;  %v2132_v63 = vpop.f32.mrb[30].mxu1 }
 0x15e   : > { %v1236_v1 = vadd.f32 %v1235_v54, %v1173_v59  ;;  %1040 = vst [vmem:[%s2055_s11 + $0x78] sm:$0xff] %v829_v62  ;;  %v1103_v2 = vadd.f32 %v1102_v57, %v829_v62  ;;  %v1174_v3 = vmul.f32 %v829_v62, %v829_v62  ;;  %v831_v4 = vpop.f32.mrb[31].mxu0  ;;  %1072 = vst [vmem:[%s2055_s11 + $0x178] sm:$0xff] %v2132_v63  ;;  %v959_v5 = vpop.f32.mrb[31].mxu1 }
 0x160   : > { %v1237_v6 = vadd.f32 %v1236_v1, %v1174_v3 }
 0x163   : > { %v834_v7 = vpop.f32.mrb[32].mxu0  ;;  %v2137_v9 = vpop.f32.mrb[32].mxu1 }
 0x164   : > { %1041 = vst [vmem:[%s2055_s11 + $0x80] sm:$0xff] %v834_v7  ;;  %v1104_v10 = vadd.f32 %v1103_v2, %v834_v7  ;;  %v1175_v11 = vmul.f32 %v834_v7, %v834_v7  ;;  %v836_v12 = vpop.f32.mrb[33].mxu0  ;;  %1073 = vst [vmem:[%s2055_s11 + $0x180] sm:$0xff] %v2137_v9  ;;  %v964_v13 = vpop.f32.mrb[33].mxu1 }
 0x165   : > { %v837_v15 = vpop.f32.mrb[34].mxu0  ;;  %v2142_v16 = vpop.f32.mrb[34].mxu1 }
 0x166   : > { %v1238_v17 = vadd.f32 %v1237_v6, %v1175_v11  ;;  %1042 = vst [vmem:[%s2055_s11 + $0x88] sm:$0xff] %v837_v15  ;;  %v1105_v19 = vadd.f32 %v1104_v10, %v837_v15  ;;  %v1176_v20 = vmul.f32 %v837_v15, %v837_v15  ;;  %v839_v21 = vpop.f32.mrb[35].mxu0  ;;  %1074 = vst [vmem:[%s2055_s11 + $0x188] sm:$0xff] %v2142_v16  ;;  %v967_v23 = vpop.f32.mrb[35].mxu1 }
 0x168   : > { %v1239_v25 = vadd.f32 %v1238_v17, %v1176_v20 }
 0x16b   : > { %v842_v26 = vpop.f32.mrb[36].mxu0  ;;  %v2147_v27 = vpop.f32.mrb[36].mxu1 }
 0x16c   : > { %1043 = vst [vmem:[%s2055_s11 + $0x90] sm:$0xff] %v842_v26  ;;  %v1106_v28 = vadd.f32 %v1105_v19, %v842_v26  ;;  %v1177_v29 = vmul.f32 %v842_v26, %v842_v26  ;;  %v844_v32 = vpop.f32.mrb[37].mxu0  ;;  %1075 = vst [vmem:[%s2055_s11 + $0x190] sm:$0xff] %v2147_v27  ;;  %v972_v33 = vpop.f32.mrb[37].mxu1 }
 0x16d   : > { %v845_v34 = vpop.f32.mrb[38].mxu0  ;;  %v2152_v35 = vpop.f32.mrb[38].mxu1 }
 0x16e   : > { %v1240_v37 = vadd.f32 %v1239_v25, %v1177_v29  ;;  %1044 = vst [vmem:[%s2055_s11 + $0x98] sm:$0xff] %v845_v34  ;;  %v1107_v38 = vadd.f32 %v1106_v28, %v845_v34  ;;  %v1178_v39 = vmul.f32 %v845_v34, %v845_v34  ;;  %v847_v41 = vpop.f32.mrb[39].mxu0  ;;  %1076 = vst [vmem:[%s2055_s11 + $0x198] sm:$0xff] %v2152_v35  ;;  %v975_v42 = vpop.f32.mrb[39].mxu1 }
 0x170   : > { %v1241_v43 = vadd.f32 %v1240_v37, %v1178_v39 }
 0x173   : > { %v850_v45 = vpop.f32.mrb[40].mxu0  ;;  %v2157_v46 = vpop.f32.mrb[40].mxu1 }
 0x174   : > { %1045 = vst [vmem:[%s2055_s11 + $0xa0] sm:$0xff] %v850_v45  ;;  %v1108_v48 = vadd.f32 %v1107_v38, %v850_v45  ;;  %v1179_v49 = vmul.f32 %v850_v45, %v850_v45  ;;  %v852_v51 = vpop.f32.mrb[41].mxu0  ;;  %1077 = vst [vmem:[%s2055_s11 + $0x1a0] sm:$0xff] %v2157_v46  ;;  %v980_v52 = vpop.f32.mrb[41].mxu1 }
 0x175   : > { %v853_v53 = vpop.f32.mrb[42].mxu0  ;;  %v2162_v54 = vpop.f32.mrb[42].mxu1 }
 0x176   : > { %v1242_v55 = vadd.f32 %v1241_v43, %v1179_v49  ;;  %1046 = vst [vmem:[%s2055_s11 + $0xa8] sm:$0xff] %v853_v53  ;;  %v1109_v57 = vadd.f32 %v1108_v48, %v853_v53  ;;  %v1180_v59 = vmul.f32 %v853_v53, %v853_v53  ;;  %v855_v60 = vpop.f32.mrb[43].mxu0  ;;  %1078 = vst [vmem:[%s2055_s11 + $0x1a8] sm:$0xff] %v2162_v54  ;;  %v983_v61 = vpop.f32.mrb[43].mxu1 }
 0x178   : > { %v1243_v62 = vadd.f32 %v1242_v55, %v1180_v59 }
 0x17b   : > { %v858_v1 = vpop.f32.mrb[44].mxu0  ;;  %v2167_v2 = vpop.f32.mrb[44].mxu1 }
 0x17c   : > { %1047 = vst [vmem:[%s2055_s11 + $0xb0] sm:$0xff] %v858_v1  ;;  %v1110_v3 = vadd.f32 %v1109_v57, %v858_v1  ;;  %v1181_v4 = vmul.f32 %v858_v1, %v858_v1  ;;  %v860_v5 = vpop.f32.mrb[45].mxu0  ;;  %1079 = vst [vmem:[%s2055_s11 + $0x1b0] sm:$0xff] %v2167_v2  ;;  %v988_v6 = vpop.f32.mrb[45].mxu1 }
 0x17d   : > { %v861_v7 = vpop.f32.mrb[46].mxu0  ;;  %v2172_v10 = vpop.f32.mrb[46].mxu1 }
 0x17e   : > { %v1244_v11 = vadd.f32 %v1243_v62, %v1181_v4  ;;  %1048 = vst [vmem:[%s2055_s11 + $0xb8] sm:$0xff] %v861_v7  ;;  %v1111_v12 = vadd.f32 %v1110_v3, %v861_v7  ;;  %v1182_v13 = vmul.f32 %v861_v7, %v861_v7  ;;  %v863_v15 = vpop.f32.mrb[47].mxu0  ;;  %1080 = vst [vmem:[%s2055_s11 + $0x1b8] sm:$0xff] %v2172_v10  ;;  %v991_v17 = vpop.f32.mrb[47].mxu1 }
 0x180   : > { %v1245_v19 = vadd.f32 %v1244_v11, %v1182_v13 }
 0x183   : > { %v866_v20 = vpop.f32.mrb[48].mxu0  ;;  %v2177_v21 = vpop.f32.mrb[48].mxu1 }
 0x184   : > { %1049 = vst [vmem:[%s2055_s11 + $0xc0] sm:$0xff] %v866_v20  ;;  %v1112_v23 = vadd.f32 %v1111_v12, %v866_v20  ;;  %v1183_v25 = vmul.f32 %v866_v20, %v866_v20  ;;  %v868_v26 = vpop.f32.mrb[49].mxu0  ;;  %1081 = vst [vmem:[%s2055_s11 + $0x1c0] sm:$0xff] %v2177_v21  ;;  %v996_v28 = vpop.f32.mrb[49].mxu1 }
 0x185   : > { %v869_v29 = vpop.f32.mrb[50].mxu0  ;;  %v2182_v32 = vpop.f32.mrb[50].mxu1 }
 0x186   : > { %v1246_v33 = vadd.f32 %v1245_v19, %v1183_v25  ;;  %1050 = vst [vmem:[%s2055_s11 + $0xc8] sm:$0xff] %v869_v29  ;;  %v1113_v34 = vadd.f32 %v1112_v23, %v869_v29  ;;  %v1184_v37 = vmul.f32 %v869_v29, %v869_v29  ;;  %v871_v38 = vpop.f32.mrb[51].mxu0  ;;  %1082 = vst [vmem:[%s2055_s11 + $0x1c8] sm:$0xff] %v2182_v32  ;;  %v999_v39 = vpop.f32.mrb[51].mxu1 }
 0x188   : > { %v1247_v41 = vadd.f32 %v1246_v33, %v1184_v37 }
 0x18b   : > { %v874_v42 = vpop.f32.mrb[52].mxu0  ;;  %v2187_v43 = vpop.f32.mrb[52].mxu1 }
 0x18c   : > { %1051 = vst [vmem:[%s2055_s11 + $0xd0] sm:$0xff] %v874_v42  ;;  %v1114_v45 = vadd.f32 %v1113_v34, %v874_v42  ;;  %v1185_v48 = vmul.f32 %v874_v42, %v874_v42  ;;  %v876_v49 = vpop.f32.mrb[53].mxu0  ;;  %1083 = vst [vmem:[%s2055_s11 + $0x1d0] sm:$0xff] %v2187_v43  ;;  %v1004_v51 = vpop.f32.mrb[53].mxu1 }
 0x18d   : > { %v877_v52 = vpop.f32.mrb[54].mxu0  ;;  %v2192_v53 = vpop.f32.mrb[54].mxu1  ;;  %v1191_v49 = vmul.f32 %v2057_v18, %v2057_v18 }
 0x18e   : > { %v1248_v55 = vadd.f32 %v1247_v41, %v1185_v48  ;;  %1052 = vst [vmem:[%s2055_s11 + $0xd8] sm:$0xff] %v877_v52  ;;  %v1115_v57 = vadd.f32 %v1114_v45, %v877_v52  ;;  %v1186_v59 = vmul.f32 %v877_v52, %v877_v52  ;;  %v879_v60 = vpop.f32.mrb[55].mxu0  ;;  %1084 = vst [vmem:[%s2055_s11 + $0x1d8] sm:$0xff] %v2192_v53  ;;  %v1007_v61 = vpop.f32.mrb[55].mxu1 }
 0x18f   : > { %v1193_v60 = vmul.f32 %v2067_v30, %v2067_v30 }
 0x190   : > { %v1249_v62 = vadd.f32 %v1248_v55, %v1186_v59  ;;  %v1192_v55 = vmul.f32 %v2062_v22, %v2062_v22 }
 0x193   : > { %v882_v1 = vpop.f32.mrb[56].mxu0  ;;  %v2197_v3 = vpop.f32.mrb[56].mxu1 }
 0x194   : > { %1053 = vst [vmem:[%s2055_s11 + $0xe0] sm:$0xff] %v882_v1  ;;  %v1116_v4 = vadd.f32 %v1115_v57, %v882_v1  ;;  %v1187_v5 = vmul.f32 %v882_v1, %v882_v1  ;;  %v884_v6 = vpop.f32.mrb[57].mxu0  ;;  %1085 = vst [vmem:[%s2055_s11 + $0x1e0] sm:$0xff] %v2197_v3  ;;  %v1012_v7 = vpop.f32.mrb[57].mxu1  ;;  %v1194_v1 = vmul.f32 %v2072_v36, %v2072_v36 }
 0x195   : > { %v885_v11 = vpop.f32.mrb[58].mxu0  ;;  %v2202_v12 = vpop.f32.mrb[58].mxu1 }
 0x196   : > { %v1250_v13 = vadd.f32 %v1249_v62, %v1187_v5  ;;  %1054 = vst [vmem:[%s2055_s11 + $0xe8] sm:$0xff] %v885_v11  ;;  %v1117_v15 = vadd.f32 %v1116_v4, %v885_v11  ;;  %v1188_v17 = vmul.f32 %v885_v11, %v885_v11  ;;  %v887_v19 = vpop.f32.mrb[59].mxu0  ;;  %1086 = vst [vmem:[%s2055_s11 + $0x1e8] sm:$0xff] %v2202_v12  ;;  %v1015_v20 = vpop.f32.mrb[59].mxu1 }
 0x198   : > { %v1251_v23 = vadd.f32 %v1250_v13, %v1188_v17 }
 0x19b   : > { %v890_v25 = vpop.f32.mrb[60].mxu0  ;;  %v2207_v26 = vpop.f32.mrb[60].mxu1 }
 0x19c   : > { %1055 = vst [vmem:[%s2055_s11 + $0xf0] sm:$0xff] %v890_v25  ;;  %v1118_v28 = vadd.f32 %v1117_v15, %v890_v25  ;;  %v1189_v29 = vmul.f32 %v890_v25, %v890_v25  ;;  %v892_v33 = vpop.f32.mrb[61].mxu0  ;;  %1087 = vst [vmem:[%s2055_s11 + $0x1f0] sm:$0xff] %v2207_v26  ;;  %v1020_v34 = vpop.f32.mrb[61].mxu1 }
 0x19d   : > { %v893_v37 = vpop.f32.mrb[62].mxu0  ;;  %v2212_v38 = vpop.f32.mrb[62].mxu1 }
 0x19e   : > { %v1252_v39 = vadd.f32 %v1251_v23, %v1189_v29  ;;  %1056 = vst [vmem:[%s2055_s11 + $0xf8] sm:$0xff] %v893_v37  ;;  %v1119_v41 = vadd.f32 %v1118_v28, %v893_v37  ;;  %v1190_v42 = vmul.f32 %v893_v37, %v893_v37  ;;  %v895_v45 = vpop.f32.mrb[63].mxu0  ;;  %1088 = vst [vmem:[%s2055_s11 + $0x1f8] sm:$0xff] %v2212_v38  ;;  %v1023_v48 = vpop.f32.mrb[63].mxu1 }
 0x1a0   : > { %v1120_v51 = vadd.f32 %v1119_v41, %v2057_v18  ;;  %v1253_v52 = vadd.f32 %v1252_v39, %v1190_v42  ;;  %v1195_v18 = vmul.f32 %v2077_v44, %v2077_v44 }
 0x1a2   : > { %v1121_v57 = vadd.f32 %v1120_v51, %v2062_v22  ;;  %v1254_v59 = vadd.f32 %v1253_v52, %v1191_v49  ;;  %v1196_v22 = vmul.f32 %v2082_v50, %v2082_v50 }
 0x1a4   : > { %v1122_v61 = vadd.f32 %v1121_v57, %v2067_v30  ;;  %v1255_v62 = vadd.f32 %v1254_v59, %v1192_v55  ;;  %v1197_v30 = vmul.f32 %v2087_v58, %v2087_v58  ;;  %v1207_v57 = vmul.f32 %v2137_v9, %v2137_v9 }
 0x1a6   : > { %v1123_v4 = vadd.f32 %v1122_v61, %v2072_v36  ;;  %v1256_v5 = vadd.f32 %v1255_v62, %v1193_v60  ;;  %v1198_v36 = vmul.f32 %v2092_v0, %v2092_v0  ;;  %v1208_v61 = vmul.f32 %v2142_v16, %v2142_v16 }
 0x1a8   : > { %v1124_v6 = vadd.f32 %v1123_v4, %v2077_v44  ;;  %v1257_v7 = vadd.f32 %v1256_v5, %v1194_v1  ;;  %v1199_v44 = vmul.f32 %v2097_v8, %v2097_v8  ;;  %v1209_v1 = vmul.f32 %v2147_v27, %v2147_v27 }
 0x1a9   : > { %v1210_v5 = vmul.f32 %v2152_v35, %v2152_v35 }
 0x1aa   : > { %v1125_v11 = vadd.f32 %v1124_v6, %v2082_v50  ;;  %v1258_v13 = vadd.f32 %v1257_v7, %v1195_v18  ;;  %v1200_v50 = vmul.f32 %v2102_v14, %v2102_v14  ;;  %v1211_v6 = vmul.f32 %v2157_v46, %v2157_v46 }
 0x1ac   : > { %v1126_v15 = vadd.f32 %v1125_v11, %v2087_v58  ;;  %v1259_v17 = vadd.f32 %v1258_v13, %v1196_v22  ;;  %v1201_v58 = vmul.f32 %v2107_v24, %v2107_v24  ;;  %v1212_v22 = vmul.f32 %v2162_v54, %v2162_v54 }
 0x1ad   : > { %v1213_v13 = vmul.f32 %v2167_v2, %v2167_v2 }
 0x1ae   : > { %v1127_v19 = vadd.f32 %v1126_v15, %v2092_v0  ;;  %v1260_v20 = vadd.f32 %v1259_v17, %v1197_v30  ;;  %v1202_v0 = vmul.f32 %v2112_v31, %v2112_v31  ;;  %v1214_v15 = vmul.f32 %v2172_v10, %v2172_v10 }
 0x1b0   : > { %v1261_v23 = vadd.f32 %v1260_v20, %v1198_v36  ;;  %v1128_v25 = vadd.f32 %v1127_v19, %v2097_v8  ;;  %v1203_v8 = vmul.f32 %v2117_v40, %v2117_v40  ;;  %v1215_v36 = vmul.f32 %v2177_v21, %v2177_v21 }
 0x1b1   : > { %v1216_v20 = vmul.f32 %v2182_v32, %v2182_v32 }
 0x1b2   : > { %v1129_v28 = vadd.f32 %v1128_v25, %v2102_v14  ;;  %v1262_v29 = vadd.f32 %v1261_v23, %v1199_v44  ;;  %v1204_v14 = vmul.f32 %v2122_v47, %v2122_v47  ;;  %v1217_v23 = vmul.f32 %v2187_v43, %v2187_v43 }
 0x1b4   : > { %v1130_v33 = vadd.f32 %v1129_v28, %v2107_v24  ;;  %v1263_v34 = vadd.f32 %v1262_v29, %v1200_v50  ;;  %v1205_v24 = vmul.f32 %v2127_v56, %v2127_v56  ;;  %v1218_v50 = vmul.f32 %v2192_v53, %v2192_v53 }
 0x1b5   : > { %v1219_v29 = vmul.f32 %v2197_v3, %v2197_v3 }
 0x1b6   : > { %v1131_v37 = vadd.f32 %v1130_v33, %v2112_v31  ;;  %v1264_v39 = vadd.f32 %v1263_v34, %v1201_v58  ;;  %v1206_v31 = vmul.f32 %v2132_v63, %v2132_v63  ;;  %v1220_v33 = vmul.f32 %v2202_v12, %v2202_v12 }
 0x1b8   : > { %v1132_v41 = vadd.f32 %v1131_v37, %v2117_v40  ;;  %v1265_v42 = vadd.f32 %v1264_v39, %v1202_v0  ;;  %v1222_v39 = vmul.f32 %v2212_v38, %v2212_v38 }
 0x1ba   : > { %v1133_v45 = vadd.f32 %v1132_v41, %v2122_v47  ;;  %v1266_v48 = vadd.f32 %v1265_v42, %v1203_v8 }
 0x1bc   : > { %v1134_v49 = vadd.f32 %v1133_v45, %v2127_v56  ;;  %v1267_v51 = vadd.f32 %v1266_v48, %v1204_v14 }
 0x1be   : > { %v1135_v52 = vadd.f32 %v1134_v49, %v2132_v63  ;;  %v1268_v55 = vadd.f32 %v1267_v51, %v1205_v24 }
 0x1c0   : > { %v1136_v40 = vadd.f32 %v1135_v52, %v2137_v9  ;;  %v1269_v59 = vadd.f32 %v1268_v55, %v1206_v31 }
 0x1c2   : > { %v1270_v47 = vadd.f32 %v1269_v59, %v1207_v57  ;;  %v1137_v60 = vadd.f32 %v1136_v40, %v2142_v16 }
 0x1c4   : > { %v1271_v56 = vadd.f32 %v1270_v47, %v1208_v61  ;;  %v1138_v62 = vadd.f32 %v1137_v60, %v2147_v27 }
 0x1c6   : > { %v1272_v63 = vadd.f32 %v1271_v56, %v1209_v1  ;;  %v1139_v4 = vadd.f32 %v1138_v62, %v2152_v35 }
 0x1c8   : > { %v1273_v9 = vadd.f32 %v1272_v63, %v1210_v5  ;;  %v1140_v18 = vadd.f32 %v1139_v4, %v2157_v46 }
 0x1ca   : > { %v1274_v7 = vadd.f32 %v1273_v9, %v1211_v6  ;;  %v1141_v16 = vadd.f32 %v1140_v18, %v2162_v54 }
 0x1cc   : > { %v1275_v11 = vadd.f32 %v1274_v7, %v1212_v22  ;;  %v1142_v27 = vadd.f32 %v1141_v16, %v2167_v2 }
 0x1ce   : > { %v1276_v30 = vadd.f32 %v1275_v11, %v1213_v13  ;;  %v1143_v35 = vadd.f32 %v1142_v27, %v2172_v10 }
 0x1d0   : > { %v1277_v17 = vadd.f32 %v1276_v30, %v1214_v15  ;;  %v1144_v46 = vadd.f32 %v1143_v35, %v2177_v21 }
 0x1d2   : > { %v1278_v19 = vadd.f32 %v1277_v17, %v1215_v36  ;;  %v1145_v54 = vadd.f32 %v1144_v46, %v2182_v32 }
 0x1d4   : > { %v1279_v44 = vadd.f32 %v1278_v19, %v1216_v20  ;;  %v1146_v2 = vadd.f32 %v1145_v54, %v2187_v43  ;;  %v1221_v43 = vmul.f32 %v2207_v26, %v2207_v26 }
 0x1d6   : > { %v1280_v25 = vadd.f32 %v1279_v44, %v1217_v23  ;;  %v1147_v10 = vadd.f32 %v1146_v2, %v2192_v53 }
 0x1d8   : > { %v1281_v21 = vadd.f32 %v1280_v25, %v1218_v50  ;;  %v1148_v28 = vadd.f32 %v1147_v10, %v2197_v3 }
 0x1da   : > { %v1282_v32 = vadd.f32 %v1281_v21, %v1219_v29  ;;  %v1149_v58 = vadd.f32 %v1148_v28, %v2202_v12 }
 0x1dc   : > { %v1283_v34 = vadd.f32 %v1282_v32, %v1220_v33  ;;  %v1150_v0 = vadd.f32 %v1149_v58, %v2207_v26 }
 0x1de   : > { %v1284_v53 = vadd.f32 %v1283_v34, %v1221_v43  ;;  %v1151_v37 = vadd.f32 %v1150_v0, %v2212_v38 }
 0x1e0   : > { %v1152_v3 = vrot.slane %v1151_v37, 4  ;;  %v1285_v8 = vadd.f32 %v1284_v53, %v1222_v39 }
 0x1e2   : > { %v1153_v12 = vadd.f32 %v1152_v3, %v1151_v37  ;;  %v1286_v41 = vrot.slane %v1285_v8, 4 }
 0x1e4   : > { %v1154_v42 = vrot.slane %v1153_v12, 2  ;;  %v1287_v14 = vadd.f32 %v1286_v41, %v1285_v8 }
 0x1e6   : > { %v1155_v45 = vadd.f32 %v1154_v42, %v1153_v12  ;;  %v1288_v48 = vrot.slane %v1287_v14, 2 }
 0x1e8   : > { %v1156_v26 = vrot.slane %v1155_v45, 1  ;;  %v1289_v38 = vadd.f32 %v1288_v48, %v1287_v14 }
 0x1ea   : > { %v1157_v24 = vadd.f32 %v1156_v26, %v1155_v45  ;;  %v1290_v49 = vrot.slane %v1289_v38, 1 }
 0x1ec   : > { %1158 = vst [vmem:[%s203_s20] sm:$0x1] %v1157_v24  ;;  %v1291_v51 = vadd.f32 %v1290_v49, %v1289_v38 }
 0x1ed   : > { %1736 = shalt.err (!%p1733_p3)
}
 0x1ee   : > { %s1737_s11 = scalar_lea.hbm %s2324_s27, 16  ;;  %s1741_s22 = scalar_lea.hbm %s2401_s3, 64 }
 0x1ef   : > { %p1738_p4 = scmp.ne.s32.totalorder %s2324_s27, %s1737_s11  ;;  %p1742_p9 = scmp.lt.u32.totalorder %s2324_s27, %s2401_s3 }
 0x1f0   : > { %p1743_p10 = scmp.lt.u32.totalorder %s1741_s22, %s1737_s11  ;;  %p1745_p12 = scmp.lt.u32.totalorder %s1737_s11, %s2324_s27 }
 0x1f1   : > { %p1739_p7 = pnand %p1738_p4, %p1885_p5 }
 0x1f2   : > { %p1744_p11 = por %p1743_p10, %p1742_p9 }
 0x1f3   : > { %p1740_p8 = pneg %p1739_p7 }
 0x1f4   : > { %p1746_p13 = por %p1745_p12, %p1744_p11 }
 0x1f6   : > { %p1747_p0 = pnand %p1746_p13, %p1740_p8 }
 0x1f8   : > { %1750 = shalt.err (!%p1747_p0)
}
 0x1f9   : > { %1566 = dma.vmem_to_hbm [thread:$0]  (%p1885_p5), %s2326_s12, 16, %s2324_s27, %s1299_s5   ;;  %1292 = vst [vmem:[%s209_s13] sm:$0x1] %v1291_v51 }
 0x1fa   : > { %s1303_s28 = scalar_lea.sflag [#allocation5], %s2314_s29  ;;  %s1751_s6 = scalar_lea.vmem %s2333_s14, 16 }
 0x1fb   : > { %p1752_p1 = scmp.ne.s32.totalorder %s2333_s14, %s1751_s6  ;;  %s1821_s7 = smov [#allocation4]  }
 0x1fc   : > { %s1755_s8 = sshll.u32 %s1821_s7, 4  ;;  %s1756_s8 = int_to_ptr.vmem [resolvable:$false] %s1755_s8 }
 0x1fd   : > { %p1753_p2 = pnand %p1752_p1, %p1885_p5  ;;  %s1757_s9 = scalar_lea.vmem %s1756_s8, 32 }
 0x1fe   : > { %p1758_p4 = scmp.lt.s32.totalorder %s2333_s14, %s1756_s8  ;;  %p1759_p7 = scmp.lt.s32.totalorder %s1757_s9, %s1751_s6 }
 0x1ff   : > { %p1754_p3 = pneg %p1753_p2 }
 0x200   : > { %p1760_p8 = por %p1759_p7, %p1758_p4 }
 0x202   : > { %p1761_p9 = pnand %p1760_p8, %p1754_p3 }
 0x204   : > { %1764 = shalt.err (!%p1761_p9)
}
 0x205   : > { %s1765_s29 = scalar_lea.hbm %s2331_s30, 16  ;;  %s1769_s27 = scalar_lea.hbm %s2402_s4, 64 }
 0x206   : > { %p1766_p10 = scmp.ne.s32.totalorder %s2331_s30, %s1765_s29  ;;  %p1770_p13 = scmp.lt.u32.totalorder %s2331_s30, %s2402_s4 }
 0x207   : > { %p1771_p0 = scmp.lt.u32.totalorder %s1769_s27, %s1765_s29  ;;  %p1773_p2 = scmp.lt.u32.totalorder %s1765_s29, %s2331_s30 }
 0x208   : > { %p1767_p11 = pnand %p1766_p10, %p1885_p5 }
 0x209   : > { %p1772_p1 = por %p1771_p0, %p1770_p13 }
 0x20a   : > { %p1768_p12 = pneg %p1767_p11 }
 0x20b   : > { %p1774_p3 = por %p1773_p2, %p1772_p1 }
 0x20d   : > { %p1775_p4 = pnand %p1774_p3, %p1768_p12 }
 0x20f   : > { %1778 = shalt.err (!%p1775_p4)
}
 0x210   : > { %1567 = dma.vmem_to_hbm [thread:$0]  (%p1885_p5), %s2333_s14, 16, %s2331_s30, %s1303_s28  }
 0x211 PF: > { %p1577_p7 = scmp.ge.s32.totalorder %s1817_s18, 2  ;;  %s1352_s10 = sand.u32 1, %s1805_s15  }
 0x212   : > { %s1353_s20 = scalar_lea.sflag [#allocation3], %s1352_s10 }
 0x213   : > { %p1571_p8 = pnand %p1577_p7, %p1889_p6 }
 0x215   : > { %1796 = dma.done.wait (!%p1571_p8), %s1353_s20, 16  }
 0x216   : > { %1798 = vsyncadd (!%p1571_p8), %s1353_s20, 4294967280  ;;  %s1361_s22 = scalar_lea.sflag [#allocation5], %s1352_s10 }
 0x217   : > { %1800 = dma.done.wait (!%p1571_p8), %s1361_s22, 16  }
 0x218   : > { %1802 = vsyncadd (!%p1571_p8), %s1361_s22, 4294967280  ;;  %p18_p5 = scmp.ge.s32.totalorder %s1872_s21, 6   ;;  %s2405_s15 = smov %s1809_s16 }
 0x219   : > { %s2406_s16 = smov %s1813_s17  ;;  %s2407_s17 = smov %s1883_s24 }
 0x21a   : > { %s2408_s18 = smov %s1872_s21  ;;  %20 = sbr.rel (!%p18_p5) target bundleno = 5 (0x5), region = 92 }
 0x221   :  { %1365 = vsyncpa [#allocation3], 1 }
 0x222   :  { %1367 = vsyncpa [#allocation3 + $0x1], 1 }
 0x223   :  { %1368 = vsyncpa [#allocation5], 1 }
 0x224   :  { %1370 = vsyncpa [#allocation5 + $0x1], 1 }

// kernel: generator_forward.15
= control target key start
LH: loop header
LB: loop body
LE: loop exit
PB: predicated region body
PF: predicated region fallthrough
CT: control target
= control target key end

     0   :  { %s741_s12 = smov 0   ;;  %s1035_s0 = inlined_call_operand.vmem [shape: f32[2048,128], index: 0, kind: input, shape index: {}]   ;;  %s1036_s1 = inlined_call_operand.vmem [shape: f32[1,128], index: 1, kind: input, shape index: {}]   ;;  %s1037_s2 = inlined_call_operand.vmem [shape: f32[1,128], index: 2, kind: input, shape index: {}]   ;;  %s1038_s3 = inlined_call_operand.vmem [shape: f32[2048,128], index: 3, kind: output, shape index: {}]  }
   0x1 LB: > { %s564_s13 = sadd.s32 4294967295, %s719_s12   ;;  %p568_p0 = scmp.ge.s32.totalorder %s719_s12, 1  ;;  %s719_s12 = sphi %s741_s12, %s13_s12  }
   0x2   : > { %p138_p1 = scmp.lt.s32.totalorder %s719_s12, 5 }
   0x4   : > { %p139_p2 = pnand %p568_p0, %p138_p1 }
   0x5   : > { %s569_s14 = sshll.u32 (!%p139_p2), %s564_s13, 6  ;;  %v755_v0 = vld [vmem:[%s1036_s1] ss:$0 sm:$0xff] (!%p139_p2) }
   0x6   : > { %142 = sbr.rel (%p139_p2) target bundleno = 96 (0x60), region = 32  ;;  %p163_p3 = scmp.lt.s32.totalorder (!%p139_p2), %s569_s14, 255  ;;  %v767_v1 = vld [vmem:[%s1037_s2] ss:$0 sm:$0xff] (!%p139_p2) }
   0xd   : > { %s1040_s14 = smov (!%p163_p3, %s569_s14), 255 }
   0xe   : > { %s570_s15 = sshll.u32 %s1040_s14, 3 }
   0xf   : > { %s762_s20 = scalar_lea.vmem %s1035_s0, %s570_s15  ;;  %s821_s25 = scalar_lea.vmem %s1038_s3, %s570_s15 }
  0x10   : > { %v174_v2 = vld [vmem:[%s762_s20] sm:$0xff]  ;;  %v175_v3 = vld [vmem:[%s762_s20 + $0x8] sm:$0xff]  ;;  %v176_v4 = vld [vmem:[%s762_s20 + $0x10] sm:$0xff] }
  0x11   : > { %v245_v5 = vmul.f32 %v755_v0, %v174_v2  ;;  %v246_v6 = vmul.f32 %v755_v0, %v175_v3  ;;  %v247_v7 = vmul.f32 %v755_v0, %v176_v4  ;;  %v177_v8 = vld [vmem:[%s762_s20 + $0x18] sm:$0xff]  ;;  %v178_v9 = vld [vmem:[%s762_s20 + $0x20] sm:$0xff]  ;;  %v179_v10 = vld [vmem:[%s762_s20 + $0x28] sm:$0xff] }
  0x12   : > { %v248_v11 = vmul.f32 %v755_v0, %v177_v8  ;;  %v249_v12 = vmul.f32 %v755_v0, %v178_v9  ;;  %v250_v13 = vmul.f32 %v755_v0, %v179_v10  ;;  %v180_v14 = vld [vmem:[%s762_s20 + $0x30] sm:$0xff]  ;;  %v181_v15 = vld [vmem:[%s762_s20 + $0x38] sm:$0xff]  ;;  %v182_v16 = vld [vmem:[%s762_s20 + $0x40] sm:$0xff] }
  0x13   : > { %v316_v17 = vadd.f32 %v767_v1, %v245_v5  ;;  %v317_v18 = vadd.f32 %v767_v1, %v246_v6  ;;  %v318_v19 = vadd.f32 %v767_v1, %v247_v7  ;;  %v251_v20 = vmul.f32 %v755_v0, %v180_v14  ;;  %v183_v21 = vld [vmem:[%s762_s20 + $0x48] sm:$0xff]  ;;  %v184_v24 = vld [vmem:[%s762_s20 + $0x50] sm:$0xff]  ;;  %v185_v27 = vld [vmem:[%s762_s20 + $0x58] sm:$0xff] }
  0x14   : > { %v319_v22 = vadd.f32 %v767_v1, %v248_v11  ;;  %v252_v23 = vmul.f32 %v755_v0, %v181_v15  ;;  %v320_v25 = vadd.f32 %v767_v1, %v249_v12  ;;  %v253_v26 = vmul.f32 %v755_v0, %v182_v16  ;;  %v186_v30 = vld [vmem:[%s762_s20 + $0x60] sm:$0xff]  ;;  %v187_v33 = vld [vmem:[%s762_s20 + $0x68] sm:$0xff]  ;;  %v188_v36 = vld [vmem:[%s762_s20 + $0x70] sm:$0xff] }
  0x15   : > { %585 = vtanh.f32 %v316_v17  ;;  %v321_v28 = vadd.f32 %v767_v1, %v250_v13  ;;  %v254_v29 = vmul.f32 %v755_v0, %v183_v21  ;;  %v322_v31 = vadd.f32 %v767_v1, %v251_v20  ;;  %v189_v39 = vld [vmem:[%s762_s20 + $0x78] sm:$0xff]  ;;  %v190_v42 = vld [vmem:[%s762_s20 + $0x80] sm:$0xff]  ;;  %v191_v45 = vld [vmem:[%s762_s20 + $0x88] sm:$0xff] }
  0x16   : > { %587 = vtanh.f32 %v317_v18  ;;  %v255_v32 = vmul.f32 %v755_v0, %v184_v24  ;;  %v323_v34 = vadd.f32 %v767_v1, %v252_v23  ;;  %v256_v35 = vmul.f32 %v755_v0, %v185_v27  ;;  %v192_v48 = vld [vmem:[%s762_s20 + $0x90] sm:$0xff]  ;;  %v193_v51 = vld [vmem:[%s762_s20 + $0x98] sm:$0xff]  ;;  %v194_v54 = vld [vmem:[%s762_s20 + $0xa0] sm:$0xff] }
  0x17   : > { %589 = vtanh.f32 %v318_v19  ;;  %v324_v37 = vadd.f32 %v767_v1, %v253_v26  ;;  %v257_v38 = vmul.f32 %v755_v0, %v186_v30  ;;  %v325_v40 = vadd.f32 %v767_v1, %v254_v29  ;;  %v195_v58 = vld [vmem:[%s762_s20 + $0xa8] sm:$0xff]  ;;  %v196_v62 = vld [vmem:[%s762_s20 + $0xb0] sm:$0xff]  ;;  %v197_v4 = vld [vmem:[%s762_s20 + $0xb8] sm:$0xff] }
  0x18   : > { %591 = vtanh.f32 %v319_v22  ;;  %v258_v41 = vmul.f32 %v755_v0, %v187_v33  ;;  %v326_v43 = vadd.f32 %v767_v1, %v255_v32  ;;  %v259_v44 = vmul.f32 %v755_v0, %v188_v36  ;;  %v198_v8 = vld [vmem:[%s762_s20 + $0xc0] sm:$0xff]  ;;  %v199_v12 = vld [vmem:[%s762_s20 + $0xc8] sm:$0xff]  ;;  %v200_v16 = vld [vmem:[%s762_s20 + $0xd0] sm:$0xff] }
  0x19   : > { %593 = vtanh.f32 %v320_v25  ;;  %v327_v46 = vadd.f32 %v767_v1, %v256_v35  ;;  %v260_v47 = vmul.f32 %v755_v0, %v189_v39  ;;  %v328_v49 = vadd.f32 %v767_v1, %v257_v38  ;;  %v201_v20 = vld [vmem:[%s762_s20 + $0xd8] sm:$0xff]  ;;  %v202_v24 = vld [vmem:[%s762_s20 + $0xe0] sm:$0xff]  ;;  %v204_v32 = vld [vmem:[%s762_s20 + $0xf0] sm:$0xff] }
  0x1a   : > { %595 = vtanh.f32 %v321_v28  ;;  %v261_v50 = vmul.f32 %v755_v0, %v190_v42  ;;  %v329_v52 = vadd.f32 %v767_v1, %v258_v41  ;;  %v262_v53 = vmul.f32 %v755_v0, %v191_v45  ;;  %v203_v28 = vld [vmem:[%s762_s20 + $0xe8] sm:$0xff]  ;;  %v205_v36 = vld [vmem:[%s762_s20 + $0xf8] sm:$0xff] }
  0x1b   : > { %597 = vtanh.f32 %v322_v31  ;;  %v330_v56 = vadd.f32 %v767_v1, %v259_v44  ;;  %v263_v57 = vmul.f32 %v755_v0, %v192_v48  ;;  %v331_v60 = vadd.f32 %v767_v1, %v260_v47  ;;  %v207_v44 = vld [vmem:[%s762_s20 + $0x108] sm:$0xff]  ;;  %v208_v48 = vld [vmem:[%s762_s20 + $0x110] sm:$0xff] }
  0x1c   : > { %599 = vtanh.f32 %v323_v34  ;;  %v264_v61 = vmul.f32 %v755_v0, %v193_v51  ;;  %v332_v2 = vadd.f32 %v767_v1, %v261_v50  ;;  %v265_v3 = vmul.f32 %v755_v0, %v194_v54 }
  0x1d   : > { %601 = vtanh.f32 %v324_v37  ;;  %v333_v6 = vadd.f32 %v767_v1, %v262_v53  ;;  %v266_v7 = vmul.f32 %v755_v0, %v195_v58  ;;  %v334_v10 = vadd.f32 %v767_v1, %v263_v57 }
  0x1e   : > { %603 = vtanh.f32 %v325_v40  ;;  %v267_v11 = vmul.f32 %v755_v0, %v196_v62  ;;  %v335_v14 = vadd.f32 %v767_v1, %v264_v61  ;;  %v268_v15 = vmul.f32 %v755_v0, %v197_v4  ;;  %v206_v40 = vld [vmem:[%s762_s20 + $0x100] sm:$0xff] }
  0x1f   : > { %v586_v55 = vpop.eup %585  ;;  %605 = vtanh.f32 %v326_v43  ;;  %v336_v18 = vadd.f32 %v767_v1, %v265_v3  ;;  %v269_v19 = vmul.f32 %v755_v0, %v198_v8  ;;  %v337_v22 = vadd.f32 %v767_v1, %v266_v7 }
  0x20   : > { %v588_v59 = vpop.eup %587  ;;  %444 = vst [vmem:[%s821_s25] sm:$0xff] %v586_v55  ;;  %607 = vtanh.f32 %v327_v46  ;;  %v270_v23 = vmul.f32 %v755_v0, %v199_v12  ;;  %v338_v26 = vadd.f32 %v767_v1, %v267_v11  ;;  %v271_v27 = vmul.f32 %v755_v0, %v200_v16 }
  0x21   : > { %v590_v63 = vpop.eup %589  ;;  %445 = vst [vmem:[%s821_s25 + $0x8] sm:$0xff] %v588_v59  ;;  %609 = vtanh.f32 %v328_v49  ;;  %v339_v30 = vadd.f32 %v767_v1, %v268_v15  ;;  %v272_v31 = vmul.f32 %v755_v0, %v201_v20  ;;  %v340_v34 = vadd.f32 %v767_v1, %v269_v19 }
  0x22   : > { %v592_v5 = vpop.eup %591  ;;  %446 = vst [vmem:[%s821_s25 + $0x10] sm:$0xff] %v590_v63  ;;  %611 = vtanh.f32 %v329_v52  ;;  %v273_v35 = vmul.f32 %v755_v0, %v202_v24  ;;  %v341_v38 = vadd.f32 %v767_v1, %v270_v23  ;;  %v274_v39 = vmul.f32 %v755_v0, %v203_v28  ;;  %v209_v52 = vld [vmem:[%s762_s20 + $0x118] sm:$0xff] }
  0x23   : > { %v594_v9 = vpop.eup %593  ;;  %447 = vst [vmem:[%s821_s25 + $0x18] sm:$0xff] %v592_v5  ;;  %613 = vtanh.f32 %v330_v56  ;;  %v342_v42 = vadd.f32 %v767_v1, %v271_v27  ;;  %v275_v43 = vmul.f32 %v755_v0, %v204_v32  ;;  %v343_v46 = vadd.f32 %v767_v1, %v272_v31  ;;  %v210_v56 = vld [vmem:[%s762_s20 + $0x120] sm:$0xff] }
  0x24   : > { %v596_v13 = vpop.eup %595  ;;  %448 = vst [vmem:[%s821_s25 + $0x20] sm:$0xff] %v594_v9  ;;  %615 = vtanh.f32 %v331_v60  ;;  %v276_v47 = vmul.f32 %v755_v0, %v205_v36  ;;  %v344_v50 = vadd.f32 %v767_v1, %v273_v35  ;;  %v277_v51 = vmul.f32 %v755_v0, %v206_v40  ;;  %v211_v60 = vld [vmem:[%s762_s20 + $0x128] sm:$0xff] }
  0x25   : > { %v598_v17 = vpop.eup %597  ;;  %449 = vst [vmem:[%s821_s25 + $0x28] sm:$0xff] %v596_v13  ;;  %617 = vtanh.f32 %v332_v2  ;;  %v345_v54 = vadd.f32 %v767_v1, %v274_v39  ;;  %v278_v55 = vmul.f32 %v755_v0, %v207_v44  ;;  %v346_v58 = vadd.f32 %v767_v1, %v275_v43  ;;  %v212_v2 = vld [vmem:[%s762_s20 + $0x130] sm:$0xff] }
  0x26   : > { %v600_v21 = vpop.eup %599  ;;  %450 = vst [vmem:[%s821_s25 + $0x30] sm:$0xff] %v598_v17  ;;  %619 = vtanh.f32 %v333_v6  ;;  %v279_v59 = vmul.f32 %v755_v0, %v208_v48  ;;  %v347_v62 = vadd.f32 %v767_v1, %v276_v47  ;;  %v280_v63 = vmul.f32 %v755_v0, %v209_v52  ;;  %v213_v6 = vld [vmem:[%s762_s20 + $0x138] sm:$0xff] }
  0x27   : > { %v602_v25 = vpop.eup %601  ;;  %451 = vst [vmem:[%s821_s25 + $0x38] sm:$0xff] %v600_v21  ;;  %621 = vtanh.f32 %v334_v10  ;;  %v348_v4 = vadd.f32 %v767_v1, %v277_v51  ;;  %v281_v5 = vmul.f32 %v755_v0, %v210_v56  ;;  %v349_v8 = vadd.f32 %v767_v1, %v278_v55  ;;  %v214_v10 = vld [vmem:[%s762_s20 + $0x140] sm:$0xff] }
  0x28   : > { %v604_v29 = vpop.eup %603  ;;  %452 = vst [vmem:[%s821_s25 + $0x40] sm:$0xff] %v602_v25  ;;  %623 = vtanh.f32 %v335_v14  ;;  %v282_v9 = vmul.f32 %v755_v0, %v211_v60  ;;  %v350_v12 = vadd.f32 %v767_v1, %v279_v59  ;;  %v283_v13 = vmul.f32 %v755_v0, %v212_v2  ;;  %v215_v14 = vld [vmem:[%s762_s20 + $0x148] sm:$0xff] }
  0x29   : > { %v606_v33 = vpop.eup %605  ;;  %453 = vst [vmem:[%s821_s25 + $0x48] sm:$0xff] %v604_v29  ;;  %625 = vtanh.f32 %v336_v18  ;;  %v351_v16 = vadd.f32 %v767_v1, %v280_v63  ;;  %v284_v17 = vmul.f32 %v755_v0, %v213_v6  ;;  %v216_v18 = vld [vmem:[%s762_s20 + $0x150] sm:$0xff]  ;;  %v352_v20 = vadd.f32 %v767_v1, %v281_v5 }
  0x2a   : > { %v608_v37 = vpop.eup %607  ;;  %454 = vst [vmem:[%s821_s25 + $0x50] sm:$0xff] %v606_v33  ;;  %627 = vtanh.f32 %v337_v22  ;;  %v285_v21 = vmul.f32 %v755_v0, %v214_v10  ;;  %v217_v22 = vld [vmem:[%s762_s20 + $0x158] sm:$0xff]  ;;  %v353_v24 = vadd.f32 %v767_v1, %v282_v9  ;;  %v286_v25 = vmul.f32 %v755_v0, %v215_v14 }
  0x2b   : > { %v610_v41 = vpop.eup %609  ;;  %455 = vst [vmem:[%s821_s25 + $0x58] sm:$0xff] %v608_v37  ;;  %629 = vtanh.f32 %v338_v26  ;;  %v218_v26 = vld [vmem:[%s762_s20 + $0x160] sm:$0xff]  ;;  %v354_v28 = vadd.f32 %v767_v1, %v283_v13  ;;  %v287_v29 = vmul.f32 %v755_v0, %v216_v18  ;;  %v355_v32 = vadd.f32 %v767_v1, %v284_v17 }
  0x2c   : > { %v612_v45 = vpop.eup %611  ;;  %456 = vst [vmem:[%s821_s25 + $0x60] sm:$0xff] %v610_v41  ;;  %631 = vtanh.f32 %v339_v30  ;;  %v219_v30 = vld [vmem:[%s762_s20 + $0x168] sm:$0xff]  ;;  %v288_v33 = vmul.f32 %v755_v0, %v217_v22  ;;  %v356_v36 = vadd.f32 %v767_v1, %v285_v21  ;;  %v289_v37 = vmul.f32 %v755_v0, %v218_v26 }
  0x2d   : > { %v614_v49 = vpop.eup %613  ;;  %457 = vst [vmem:[%s821_s25 + $0x68] sm:$0xff] %v612_v45  ;;  %633 = vtanh.f32 %v340_v34  ;;  %v220_v34 = vld [vmem:[%s762_s20 + $0x170] sm:$0xff]  ;;  %v357_v40 = vadd.f32 %v767_v1, %v286_v25  ;;  %v290_v41 = vmul.f32 %v755_v0, %v219_v30  ;;  %v358_v44 = vadd.f32 %v767_v1, %v287_v29 }
  0x2e   : > { %v616_v53 = vpop.eup %615  ;;  %458 = vst [vmem:[%s821_s25 + $0x70] sm:$0xff] %v614_v49  ;;  %635 = vtanh.f32 %v341_v38  ;;  %v221_v38 = vld [vmem:[%s762_s20 + $0x178] sm:$0xff]  ;;  %v291_v45 = vmul.f32 %v755_v0, %v220_v34  ;;  %v359_v48 = vadd.f32 %v767_v1, %v288_v33  ;;  %v360_v52 = vadd.f32 %v767_v1, %v289_v37 }
  0x2f   : > { %v618_v57 = vpop.eup %617  ;;  %459 = vst [vmem:[%s821_s25 + $0x78] sm:$0xff] %v616_v53  ;;  %637 = vtanh.f32 %v342_v42  ;;  %v222_v42 = vld [vmem:[%s762_s20 + $0x180] sm:$0xff]  ;;  %v292_v49 = vmul.f32 %v755_v0, %v221_v38  ;;  %v361_v56 = vadd.f32 %v767_v1, %v290_v41 }
  0x30   : > { %v620_v61 = vpop.eup %619  ;;  %460 = vst [vmem:[%s821_s25 + $0x80] sm:$0xff] %v618_v57  ;;  %639 = vtanh.f32 %v343_v46  ;;  %v223_v46 = vld [vmem:[%s762_s20 + $0x188] sm:$0xff]  ;;  %v293_v53 = vmul.f32 %v755_v0, %v222_v42  ;;  %v362_v60 = vadd.f32 %v767_v1, %v291_v45 }
  0x31   : > { %v622_v3 = vpop.eup %621  ;;  %461 = vst [vmem:[%s821_s25 + $0x88] sm:$0xff] %v620_v61  ;;  %641 = vtanh.f32 %v344_v50  ;;  %v224_v50 = vld [vmem:[%s762_s20 + $0x190] sm:$0xff]  ;;  %v294_v57 = vmul.f32 %v755_v0, %v223_v46  ;;  %v363_v2 = vadd.f32 %v767_v1, %v292_v49 }
  0x32   : > { %v624_v7 = vpop.eup %623  ;;  %462 = vst [vmem:[%s821_s25 + $0x90] sm:$0xff] %v622_v3  ;;  %643 = vtanh.f32 %v345_v54  ;;  %v225_v54 = vld [vmem:[%s762_s20 + $0x198] sm:$0xff]  ;;  %v295_v61 = vmul.f32 %v755_v0, %v224_v50  ;;  %v364_v6 = vadd.f32 %v767_v1, %v293_v53 }
  0x33   : > { %v626_v11 = vpop.eup %625  ;;  %463 = vst [vmem:[%s821_s25 + $0x98] sm:$0xff] %v624_v7  ;;  %645 = vtanh.f32 %v346_v58  ;;  %v226_v58 = vld [vmem:[%s762_s20 + $0x1a0] sm:$0xff]  ;;  %v296_v3 = vmul.f32 %v755_v0, %v225_v54  ;;  %v365_v10 = vadd.f32 %v767_v1, %v294_v57 }
  0x34   : > { %v628_v15 = vpop.eup %627  ;;  %464 = vst [vmem:[%s821_s25 + $0xa0] sm:$0xff] %v626_v11  ;;  %647 = vtanh.f32 %v347_v62  ;;  %v227_v62 = vld [vmem:[%s762_s20 + $0x1a8] sm:$0xff]  ;;  %v297_v7 = vmul.f32 %v755_v0, %v226_v58  ;;  %v366_v14 = vadd.f32 %v767_v1, %v295_v61 }
  0x35   : > { %v630_v19 = vpop.eup %629  ;;  %465 = vst [vmem:[%s821_s25 + $0xa8] sm:$0xff] %v628_v15  ;;  %649 = vtanh.f32 %v348_v4  ;;  %v228_v4 = vld [vmem:[%s762_s20 + $0x1b0] sm:$0xff]  ;;  %v298_v11 = vmul.f32 %v755_v0, %v227_v62  ;;  %v367_v18 = vadd.f32 %v767_v1, %v296_v3 }
  0x36   : > { %v632_v23 = vpop.eup %631  ;;  %466 = vst [vmem:[%s821_s25 + $0xb0] sm:$0xff] %v630_v19  ;;  %651 = vtanh.f32 %v349_v8  ;;  %v229_v8 = vld [vmem:[%s762_s20 + $0x1b8] sm:$0xff]  ;;  %v299_v15 = vmul.f32 %v755_v0, %v228_v4  ;;  %v368_v22 = vadd.f32 %v767_v1, %v297_v7 }
  0x37   : > { %v634_v27 = vpop.eup %633  ;;  %467 = vst [vmem:[%s821_s25 + $0xb8] sm:$0xff] %v632_v23  ;;  %653 = vtanh.f32 %v350_v12  ;;  %v230_v12 = vld [vmem:[%s762_s20 + $0x1c0] sm:$0xff]  ;;  %v300_v19 = vmul.f32 %v755_v0, %v229_v8  ;;  %v369_v26 = vadd.f32 %v767_v1, %v298_v11 }
  0x38   : > { %v636_v31 = vpop.eup %635  ;;  %468 = vst [vmem:[%s821_s25 + $0xc0] sm:$0xff] %v634_v27  ;;  %655 = vtanh.f32 %v351_v16  ;;  %v231_v16 = vld [vmem:[%s762_s20 + $0x1c8] sm:$0xff]  ;;  %v301_v23 = vmul.f32 %v755_v0, %v230_v12  ;;  %v370_v30 = vadd.f32 %v767_v1, %v299_v15 }
  0x39   : > { %v638_v35 = vpop.eup %637  ;;  %469 = vst [vmem:[%s821_s25 + $0xc8] sm:$0xff] %v636_v31  ;;  %657 = vtanh.f32 %v352_v20  ;;  %v232_v20 = vld [vmem:[%s762_s20 + $0x1d0] sm:$0xff]  ;;  %v302_v27 = vmul.f32 %v755_v0, %v231_v16  ;;  %v371_v34 = vadd.f32 %v767_v1, %v300_v19 }
  0x3a   : > { %v640_v39 = vpop.eup %639  ;;  %470 = vst [vmem:[%s821_s25 + $0xd0] sm:$0xff] %v638_v35  ;;  %659 = vtanh.f32 %v353_v24  ;;  %v233_v24 = vld [vmem:[%s762_s20 + $0x1d8] sm:$0xff]  ;;  %v303_v31 = vmul.f32 %v755_v0, %v232_v20  ;;  %v372_v38 = vadd.f32 %v767_v1, %v301_v23 }
  0x3b   : > { %v642_v43 = vpop.eup %641  ;;  %471 = vst [vmem:[%s821_s25 + $0xd8] sm:$0xff] %v640_v39  ;;  %661 = vtanh.f32 %v354_v28  ;;  %v234_v28 = vld [vmem:[%s762_s20 + $0x1e0] sm:$0xff]  ;;  %v304_v35 = vmul.f32 %v755_v0, %v233_v24  ;;  %v373_v42 = vadd.f32 %v767_v1, %v302_v27 }
  0x3c   : > { %v644_v47 = vpop.eup %643  ;;  %472 = vst [vmem:[%s821_s25 + $0xe0] sm:$0xff] %v642_v43  ;;  %663 = vtanh.f32 %v355_v32  ;;  %v235_v32 = vld [vmem:[%s762_s20 + $0x1e8] sm:$0xff]  ;;  %v305_v39 = vmul.f32 %v755_v0, %v234_v28  ;;  %v374_v45 = vadd.f32 %v767_v1, %v303_v31 }
  0x3d   : > { %v646_v51 = vpop.eup %645  ;;  %473 = vst [vmem:[%s821_s25 + $0xe8] sm:$0xff] %v644_v47  ;;  %665 = vtanh.f32 %v356_v36  ;;  %v236_v36 = vld [vmem:[%s762_s20 + $0x1f0] sm:$0xff]  ;;  %v306_v43 = vmul.f32 %v755_v0, %v235_v32 }
  0x3e   : > { %v648_v55 = vpop.eup %647  ;;  %474 = vst [vmem:[%s821_s25 + $0xf0] sm:$0xff] %v646_v51  ;;  %667 = vtanh.f32 %v357_v40  ;;  %v237_v40 = vld [vmem:[%s762_s20 + $0x1f8] sm:$0xff]  ;;  %v307_v46 = vmul.f32 %v755_v0, %v236_v36  ;;  %v376_v51 = vadd.f32 %v767_v1, %v305_v39 }
  0x3f   : > { %v650_v59 = vpop.eup %649  ;;  %475 = vst [vmem:[%s821_s25 + $0xf8] sm:$0xff] %v648_v55  ;;  %669 = vtanh.f32 %v358_v44  ;;  %v308_v49 = vmul.f32 %v755_v0, %v237_v40  ;;  %v377_v53 = vadd.f32 %v767_v1, %v306_v43 }
  0x40   : > { %v652_v63 = vpop.eup %651  ;;  %476 = vst [vmem:[%s821_s25 + $0x100] sm:$0xff] %v650_v59  ;;  %671 = vtanh.f32 %v359_v48  ;;  %v375_v48 = vadd.f32 %v767_v1, %v304_v35  ;;  %v378_v55 = vadd.f32 %v767_v1, %v307_v46 }
  0x41   : > { %v654_v5 = vpop.eup %653  ;;  %477 = vst [vmem:[%s821_s25 + $0x108] sm:$0xff] %v652_v63  ;;  %673 = vtanh.f32 %v360_v52 }
  0x42   : > { %v656_v9 = vpop.eup %655  ;;  %478 = vst [vmem:[%s821_s25 + $0x110] sm:$0xff] %v654_v5  ;;  %675 = vtanh.f32 %v361_v56  ;;  %v379_v56 = vadd.f32 %v767_v1, %v308_v49 }
  0x43   : > { %v658_v13 = vpop.eup %657  ;;  %479 = vst [vmem:[%s821_s25 + $0x118] sm:$0xff] %v656_v9  ;;  %677 = vtanh.f32 %v362_v60 }
  0x44   : > { %v660_v17 = vpop.eup %659  ;;  %480 = vst [vmem:[%s821_s25 + $0x120] sm:$0xff] %v658_v13  ;;  %679 = vtanh.f32 %v363_v2 }
  0x45   : > { %v662_v21 = vpop.eup %661  ;;  %481 = vst [vmem:[%s821_s25 + $0x128] sm:$0xff] %v660_v17  ;;  %681 = vtanh.f32 %v364_v6 }
  0x46   : > { %v664_v25 = vpop.eup %663  ;;  %482 = vst [vmem:[%s821_s25 + $0x130] sm:$0xff] %v662_v21  ;;  %683 = vtanh.f32 %v365_v10 }
  0x47   : > { %v666_v29 = vpop.eup %665  ;;  %483 = vst [vmem:[%s821_s25 + $0x138] sm:$0xff] %v664_v25  ;;  %685 = vtanh.f32 %v366_v14 }
  0x48   : > { %v668_v33 = vpop.eup %667  ;;  %484 = vst [vmem:[%s821_s25 + $0x140] sm:$0xff] %v666_v29  ;;  %687 = vtanh.f32 %v367_v18 }
  0x49   : > { %v670_v37 = vpop.eup %669  ;;  %485 = vst [vmem:[%s821_s25 + $0x148] sm:$0xff] %v668_v33  ;;  %689 = vtanh.f32 %v368_v22 }
  0x4a   : > { %v672_v41 = vpop.eup %671  ;;  %486 = vst [vmem:[%s821_s25 + $0x150] sm:$0xff] %v670_v37  ;;  %691 = vtanh.f32 %v369_v26 }
  0x4b   : > { %v674_v44 = vpop.eup %673  ;;  %487 = vst [vmem:[%s821_s25 + $0x158] sm:$0xff] %v672_v41  ;;  %693 = vtanh.f32 %v370_v30 }
  0x4c   : > { %v676_v47 = vpop.eup %675  ;;  %488 = vst [vmem:[%s821_s25 + $0x160] sm:$0xff] %v674_v44  ;;  %695 = vtanh.f32 %v371_v34 }
  0x4d   : > { %v678_v50 = vpop.eup %677  ;;  %489 = vst [vmem:[%s821_s25 + $0x168] sm:$0xff] %v676_v47  ;;  %697 = vtanh.f32 %v372_v38 }
  0x4e   : > { %v680_v52 = vpop.eup %679  ;;  %490 = vst [vmem:[%s821_s25 + $0x170] sm:$0xff] %v678_v50  ;;  %699 = vtanh.f32 %v373_v42 }
  0x4f   : > { %v682_v54 = vpop.eup %681  ;;  %491 = vst [vmem:[%s821_s25 + $0x178] sm:$0xff] %v680_v52  ;;  %701 = vtanh.f32 %v374_v45 }
  0x50   : > { %v684_v0 = vpop.eup %683  ;;  %492 = vst [vmem:[%s821_s25 + $0x180] sm:$0xff] %v682_v54  ;;  %703 = vtanh.f32 %v375_v48 }
  0x51   : > { %v686_v57 = vpop.eup %685  ;;  %493 = vst [vmem:[%s821_s25 + $0x188] sm:$0xff] %v684_v0  ;;  %705 = vtanh.f32 %v376_v51 }
  0x52   : > { %v688_v58 = vpop.eup %687  ;;  %494 = vst [vmem:[%s821_s25 + $0x190] sm:$0xff] %v686_v57  ;;  %707 = vtanh.f32 %v377_v53 }
  0x53   : > { %v690_v59 = vpop.eup %689  ;;  %495 = vst [vmem:[%s821_s25 + $0x198] sm:$0xff] %v688_v58  ;;  %709 = vtanh.f32 %v378_v55 }
  0x54   : > { %v692_v60 = vpop.eup %691  ;;  %496 = vst [vmem:[%s821_s25 + $0x1a0] sm:$0xff] %v690_v59  ;;  %711 = vtanh.f32 %v379_v56 }
  0x55   : > { %v694_v1 = vpop.eup %693  ;;  %497 = vst [vmem:[%s821_s25 + $0x1a8] sm:$0xff] %v692_v60 }
  0x56   : > { %v696_v61 = vpop.eup %695  ;;  %498 = vst [vmem:[%s821_s25 + $0x1b0] sm:$0xff] %v694_v1 }
  0x57   : > { %v698_v62 = vpop.eup %697  ;;  %499 = vst [vmem:[%s821_s25 + $0x1b8] sm:$0xff] %v696_v61 }
  0x58   : > { %v700_v63 = vpop.eup %699  ;;  %500 = vst [vmem:[%s821_s25 + $0x1c0] sm:$0xff] %v698_v62 }
  0x59   : > { %v702_v2 = vpop.eup %701  ;;  %501 = vst [vmem:[%s821_s25 + $0x1c8] sm:$0xff] %v700_v63 }
  0x5a   : > { %v704_v3 = vpop.eup %703  ;;  %502 = vst [vmem:[%s821_s25 + $0x1d0] sm:$0xff] %v702_v2 }
  0x5b   : > { %v706_v4 = vpop.eup %705  ;;  %503 = vst [vmem:[%s821_s25 + $0x1d8] sm:$0xff] %v704_v3 }
  0x5c   : > { %v708_v5 = vpop.eup %707  ;;  %504 = vst [vmem:[%s821_s25 + $0x1e0] sm:$0xff] %v706_v4 }
  0x5d   : > { %v710_v6 = vpop.eup %709  ;;  %505 = vst [vmem:[%s821_s25 + $0x1e8] sm:$0xff] %v708_v5 }
  0x5e   : > { %v712_v7 = vpop.eup %711  ;;  %506 = vst [vmem:[%s821_s25 + $0x1f0] sm:$0xff] %v710_v6 }
  0x5f   : > { %507 = vst [vmem:[%s821_s25 + $0x1f8] sm:$0xff] %v712_v7 }
  0x60 PF: > { %s13_s12 = sadd.s32 1, %s719_s12  }
  0x61   : > { %p10_p4 = scmp.ge.s32.totalorder %s13_s12, 6  }
  0x63   :  { %12 = sbr.rel (!%p10_p4) target bundleno = 1 (0x1), region = 62 }

</bundles_post_ra>
